<compile_context>
chip_gen: v6e
topology: v6e:2x2x1
jax: 0.10.0
libtpu: 0.0.40
codegen_flags: <defaults>
</compile_context>

<pallas_src>
import jax
import jax.numpy as jnp
from jax.experimental import pallas as pl
from jax.experimental.pallas import tpu as pltpu

BN_EPS = 1e-5

IN_DIM, HIDDEN, OUT_DIM = 51, 1028, 5
IN_P, HIDDEN_P, OUT_P = 128, 1152, 128     # zero-padded, lane-aligned dims
N_MID = 5                                  # the five 1028->1028 hidden Linears

# Per-layer plan of the PyTorch Sequential (post-matmul op order):
_PLAN = [
    (IN_DIM, HIDDEN, "relu_bn"),   # Linear, ReLU, BatchNorm1d
    (HIDDEN, HIDDEN, "relu"),      # Linear, ReLU
    (HIDDEN, HIDDEN, "bn_relu"),   # Linear, BatchNorm1d, ReLU
    (HIDDEN, HIDDEN, "bn_relu"),
    (HIDDEN, HIDDEN, "bn_relu"),
    (HIDDEN, HIDDEN, "bn_relu"),
    (HIDDEN, OUT_DIM, "none"),     # final Linear
]


def _bn(v, gamma, beta):
    """Training-mode BatchNorm1d: batch mean + biased batch variance."""
    mu = jnp.mean(v, axis=0, keepdims=True)
    d = v - mu
    var = jnp.mean(d * d, axis=0, keepdims=True)
    return d * jax.lax.rsqrt(var + BN_EPS) * gamma + beta


def _fused_mlp_kernel(x_ref, w0_ref, b0_ref, g0_ref, be0_ref, b1_ref,
                      wm_ref, gm_ref, bem_ref, wl_ref, bl_ref,
                      o_ref, act_ref):
    """Grid axis = the 5 identical 1028->1028 hidden layers.

    Step 0 additionally runs the input layer (Linear 51->1028 + ReLU + BN);
    the last step additionally runs the output layer (Linear 1028->5).
    The activation stays in the VMEM scratch `act_ref` across grid steps.
    """
    i = pl.program_id(0)
    last = pl.num_programs(0) - 1

    # ---- input layer (runs once, at step 0) ----
    @pl.when(i == 0)
    def _():
        y0 = jnp.dot(x_ref[...].astype(jnp.bfloat16), w0_ref[...],
                     preferred_element_type=jnp.float32)
        y0 = jnp.maximum(y0 + b0_ref[...], 0.0)
        act_ref[...] = _bn(y0, g0_ref[...], be0_ref[...])

    # ---- hidden layer i: bf16 MXU matmul, f32 accumulate ----
    y = jnp.dot(act_ref[...].astype(jnp.bfloat16), wm_ref[...],
                preferred_element_type=jnp.float32)

    @pl.when(i == 0)        # model layer 1: bias + ReLU (no BN)
    def _():
        act_ref[...] = jnp.maximum(y + b1_ref[...], 0.0)

    @pl.when(i > 0)         # model layers 2..5: BN + ReLU
    def _():                # (bias omitted: exactly cancelled by BN mean-sub)
        act_ref[...] = jnp.maximum(_bn(y, gm_ref[...], bem_ref[...]), 0.0)

    # ---- output layer (runs once, at the last step) ----
    @pl.when(i == last)
    def _():
        o = jnp.dot(act_ref[...].astype(jnp.bfloat16), wl_ref[...],
                    preferred_element_type=jnp.float32)
        o_ref[...] = (o + bl_ref[...]).astype(o_ref.dtype)


def _const_spec(shape):
    # Whole array resident in VMEM; block index constant across the grid.
    return pl.BlockSpec(shape, lambda i: (0,) * len(shape))


@jax.jit
def baseline_forward(x, w0, b0, g0, be0, b1, wm, gm, bem, wl, bl):
    batch = x.shape[0]
    x_p = jnp.pad(x, ((0, 0), (0, IN_P - x.shape[1])))

    grid_spec = pltpu.PrefetchScalarGridSpec(
        num_scalar_prefetch=0,
        grid=(N_MID,),
        in_specs=[
            _const_spec((batch, IN_P)),                                      # x
            _const_spec((IN_P, HIDDEN_P)),                                   # W layer0
            _const_spec((1, HIDDEN_P)),                                      # b layer0
            _const_spec((1, HIDDEN_P)),                                      # gamma layer0
            _const_spec((1, HIDDEN_P)),                                      # beta  layer0
            _const_spec((1, HIDDEN_P)),                                      # b layer1
            pl.BlockSpec((None, HIDDEN_P, HIDDEN_P), lambda i: (i, 0, 0)),   # W layers1-5 (streamed)
            pl.BlockSpec((None, 1, HIDDEN_P), lambda i: (i, 0, 0)),          # gamma layers1-5
            pl.BlockSpec((None, 1, HIDDEN_P), lambda i: (i, 0, 0)),          # beta  layers1-5
            _const_spec((HIDDEN_P, OUT_P)),                                  # W layer6
            _const_spec((1, OUT_P)),                                         # b layer6
        ],
        out_specs=pl.BlockSpec((batch, OUT_P), lambda i: (0, 0)),
        scratch_shapes=[pltpu.VMEM((batch, HIDDEN_P), jnp.float32)],
    )

    out = pl.pallas_call(
        _fused_mlp_kernel,
        out_shape=jax.ShapeDtypeStruct((batch, OUT_P), jnp.float32),
        grid_spec=grid_spec,
        compiler_params=pltpu.CompilerParams(
            dimension_semantics=("arbitrary",),          # layers are sequential
            vmem_limit_bytes=32 * 1024 * 1024,           # fits v5e/v6e/v7x with headroom
        ),
    )(x_p, w0, b0, g0, be0, b1, wm, gm, bem, wl, bl)
    return out[:, :OUT_DIM]


# ----------------------------------------------------------------------------
# Parameter construction (deterministic, synthetic — no checkpoint load).
# ----------------------------------------------------------------------------
def init_params(key):
    """Unpadded f32 parameters mirroring the PyTorch module (per-layer tuples)."""
    params = []
    for (d_in, d_out, mode) in _PLAN:
        key, kw, kb, kg, kbe = jax.random.split(key, 5)
        bound = 1.0 / jnp.sqrt(jnp.float32(d_in))        # PyTorch Linear default range
        w = jax.random.uniform(kw, (d_in, d_out), jnp.float32, -bound, bound)
        b = jax.random.uniform(kb, (1, d_out), jnp.float32, -bound, bound)
        if "bn" in mode:
            gamma = 1.0 + 0.1 * jax.random.normal(kg, (1, d_out), jnp.float32)
            beta = 0.1 * jax.random.normal(kbe, (1, d_out), jnp.float32)
        else:
            gamma = jnp.ones((1, d_out), jnp.float32)
            beta = jnp.zeros((1, d_out), jnp.float32)
        params.append((w, b, gamma, beta, mode))
    return params


def _pad2(a, rows, cols):
    return jnp.pad(a, ((0, rows - a.shape[0]), (0, cols - a.shape[1])))


def pack_params(params):
    """Zero-pad to lane-aligned shapes, cast weights to bf16, and stack the
    five identical hidden layers so the kernel can stream them over the grid."""
    w0, b0, g0, be0, _ = params[0]
    b1 = params[1][1]
    wl, bl = params[6][0], params[6][1]

    w0_p = _pad2(w0, IN_P, HIDDEN_P).astype(jnp.bfloat16)
    wm = jnp.stack([_pad2(params[j][0], HIDDEN_P, HIDDEN_P)
                    for j in range(1, 6)]).astype(jnp.bfloat16)
    gm = jnp.stack([_pad2(params[j][2], 1, HIDDEN_P) for j in range(1, 6)])
    bem = jnp.stack([_pad2(params[j][3], 1, HIDDEN_P) for j in range(1, 6)])
    wl_p = _pad2(wl, HIDDEN_P, OUT_P).astype(jnp.bfloat16)

    return (w0_p, _pad2(b0, 1, HIDDEN_P), _pad2(g0, 1, HIDDEN_P),
            _pad2(be0, 1, HIDDEN_P), _pad2(b1, 1, HIDDEN_P),
            wm, gm, bem, wl_p, _pad2(bl, 1, OUT_P))


def baseline_reference(x, params):
    """Pure-JAX reference at matching precision (bf16 matmul inputs, f32 acc)."""
    def bdot(a, w):
        return jnp.dot(a.astype(jnp.bfloat16), w.astype(jnp.bfloat16),
                       preferred_element_type=jnp.float32)
    y = x
    for (w, b, g, be, mode) in params:
        y = bdot(y, w) + b
        if mode == "relu_bn":
            y = _bn(jnp.maximum(y, 0.0), g, be)
        elif mode == "relu":
            y = jnp.maximum(y, 0.0)
        elif mode == "bn_relu":
            y = jnp.maximum(_bn(y, g, be), 0.0)
    return y


if __name__ == "__main__":
    key = jax.random.PRNGKey(0)
    key, kx = jax.random.split(key)

    batch = 8   # BatchNorm uses batch statistics; the whole batch is one block
    x = jax.random.normal(kx, (batch, IN_DIM), jnp.float32)

    params = init_params(key)
    packed = pack_params(params)

    out = baseline_forward(x, *packed)
    out = jax.block_until_ready(out)
    assert out.shape == (batch, OUT_DIM), out.shape

    ref = baseline_reference(x, params)
    max_err = float(jnp.max(jnp.abs(out - ref)))
    assert jnp.allclose(out, ref, atol=2e-2, rtol=2e-2), max_err

    print("KERNEL_OK")
</pallas_src>

<mosaic_0001>
module attributes {stable_mosaic.version = 11 : i64} {
  func.func @_fused_mlp_kernel(%arg0: i32, %arg1: memref<8x128xf32, #tpu.memory_space<vmem>>, %arg2: memref<128x1152xbf16, #tpu.memory_space<vmem>>, %arg3: memref<1x1152xf32, #tpu.memory_space<vmem>>, %arg4: memref<1x1152xf32, #tpu.memory_space<vmem>>, %arg5: memref<1x1152xf32, #tpu.memory_space<vmem>>, %arg6: memref<1x1152xf32, #tpu.memory_space<vmem>>, %arg7: memref<1x1152x1152xbf16, #tpu.memory_space<vmem>>, %arg8: memref<1x1x1152xf32, #tpu.memory_space<vmem>>, %arg9: memref<1x1x1152xf32, #tpu.memory_space<vmem>>, %arg10: memref<1152x128xbf16, #tpu.memory_space<vmem>>, %arg11: memref<1x128xf32, #tpu.memory_space<vmem>>, %arg12: memref<8x128xf32, #tpu.memory_space<vmem>>, %arg13: memref<8x1152xf32, #tpu.memory_space<vmem>>) attributes {dimension_semantics = [#tpu.dimension_semantics<arbitrary>], iteration_bounds = array<i64: 5>, scalar_prefetch = 0 : i64, scratch_operands = 1 : i64, tpu.core_type = #tpu.core_type<tc>, window_params = [{pipeline_mode = #tpu.pipeline_mode<synchronous>, transform_indices = @transform_0, window_bounds = array<i64: 8, 128>}, {pipeline_mode = #tpu.pipeline_mode<synchronous>, transform_indices = @transform_1, window_bounds = array<i64: 128, 1152>}, {pipeline_mode = #tpu.pipeline_mode<synchronous>, transform_indices = @transform_2, window_bounds = array<i64: 1, 1152>}, {pipeline_mode = #tpu.pipeline_mode<synchronous>, transform_indices = @transform_3, window_bounds = array<i64: 1, 1152>}, {pipeline_mode = #tpu.pipeline_mode<synchronous>, transform_indices = @transform_4, window_bounds = array<i64: 1, 1152>}, {pipeline_mode = #tpu.pipeline_mode<synchronous>, transform_indices = @transform_5, window_bounds = array<i64: 1, 1152>}, {transform_indices = @transform_6, window_bounds = array<i64: 1, 1152, 1152>}, {transform_indices = @transform_7, window_bounds = array<i64: 1, 1, 1152>}, {transform_indices = @transform_8, window_bounds = array<i64: 1, 1, 1152>}, {pipeline_mode = #tpu.pipeline_mode<synchronous>, transform_indices = @transform_9, window_bounds = array<i64: 1152, 128>}, {pipeline_mode = #tpu.pipeline_mode<synchronous>, transform_indices = @transform_10, window_bounds = array<i64: 1, 128>}, {pipeline_mode = #tpu.pipeline_mode<synchronous>, transform_indices = @transform_11, window_bounds = array<i64: 8, 128>}]} {
    %c0_i32 = arith.constant 0 : i32
    %0 = arith.cmpi eq, %arg0, %c0_i32 : i32
    %1 = arith.extui %0 : i1 to i32
    %c0_i32_0 = arith.constant 0 : i32
    %2 = arith.cmpi ne, %1, %c0_i32_0 : i32
    scf.if %2 {
      %c0_10 = arith.constant 0 : index
      %c0_11 = arith.constant 0 : index
      %17 = vector.load %arg1[%c0_10, %c0_11] : memref<8x128xf32, #tpu.memory_space<vmem>>, vector<8x128xf32>
      %18 = arith.truncf %17 : vector<8x128xf32> to vector<8x128xbf16>
      %c0_12 = arith.constant 0 : index
      %c0_13 = arith.constant 0 : index
      %19 = vector.load %arg2[%c0_12, %c0_13] : memref<128x1152xbf16, #tpu.memory_space<vmem>>, vector<128x1152xbf16>
      %cst_14 = arith.constant dense<0.000000e+00> : vector<8x1152xf32>
      %20 = tpu.matmul %18, %19, %cst_14 {dimension_numbers = #tpu.dot_dimension_numbers<[1], [0], [0], [1], [0, 0, 1, 1], [], []>} : vector<8x128xbf16>, vector<128x1152xbf16>, vector<8x1152xf32> -> vector<8x1152xf32>
      %c0_15 = arith.constant 0 : index
      %c0_16 = arith.constant 0 : index
      %21 = vector.load %arg3[%c0_15, %c0_16] : memref<1x1152xf32, #tpu.memory_space<vmem>>, vector<1x1152xf32>
      %22 = vector.broadcast %21 : vector<1x1152xf32> to vector<8x1152xf32>
      %23 = arith.addf %20, %22 : vector<8x1152xf32>
      %cst_17 = arith.constant 0.000000e+00 : f32
      %24 = vector.broadcast %cst_17 : f32 to vector<8x1152xf32>
      %25 = arith.maximumf %23, %24 : vector<8x1152xf32>
      %c0_18 = arith.constant 0 : index
      %c0_19 = arith.constant 0 : index
      %26 = vector.load %arg4[%c0_18, %c0_19] : memref<1x1152xf32, #tpu.memory_space<vmem>>, vector<1x1152xf32>
      %c0_20 = arith.constant 0 : index
      %c0_21 = arith.constant 0 : index
      %27 = vector.load %arg5[%c0_20, %c0_21] : memref<1x1152xf32, #tpu.memory_space<vmem>>, vector<1x1152xf32>
      %cst_22 = arith.constant dense<0.000000e+00> : vector<1152xf32>
      %28 = vector.multi_reduction <add>, %25, %cst_22 [0] : vector<8x1152xf32> to vector<1152xf32>
      %29 = vector.shape_cast %28 : vector<1152xf32> to vector<1x1152xf32>
      %cst_23 = arith.constant 8.000000e+00 : f32
      %30 = vector.broadcast %cst_23 : f32 to vector<1x1152xf32>
      %31 = arith.divf %29, %30 : vector<1x1152xf32>
      %32 = vector.broadcast %31 : vector<1x1152xf32> to vector<8x1152xf32>
      %33 = arith.subf %25, %32 : vector<8x1152xf32>
      %34 = arith.mulf %33, %33 : vector<8x1152xf32>
      %cst_24 = arith.constant dense<0.000000e+00> : vector<1152xf32>
      %35 = vector.multi_reduction <add>, %34, %cst_24 [0] : vector<8x1152xf32> to vector<1152xf32>
      %36 = vector.shape_cast %35 : vector<1152xf32> to vector<1x1152xf32>
      %cst_25 = arith.constant 8.000000e+00 : f32
      %37 = vector.broadcast %cst_25 : f32 to vector<1x1152xf32>
      %38 = arith.divf %36, %37 : vector<1x1152xf32>
      %cst_26 = arith.constant 9.99999974E-6 : f32
      %39 = vector.broadcast %cst_26 : f32 to vector<1x1152xf32>
      %40 = arith.addf %38, %39 : vector<1x1152xf32>
      %41 = math.rsqrt %40 : vector<1x1152xf32>
      %42 = vector.broadcast %41 : vector<1x1152xf32> to vector<8x1152xf32>
      %43 = arith.mulf %33, %42 : vector<8x1152xf32>
      %44 = vector.broadcast %26 : vector<1x1152xf32> to vector<8x1152xf32>
      %45 = arith.mulf %43, %44 : vector<8x1152xf32>
      %46 = vector.broadcast %27 : vector<1x1152xf32> to vector<8x1152xf32>
      %47 = arith.addf %45, %46 : vector<8x1152xf32>
      %c0_27 = arith.constant 0 : index
      %c0_28 = arith.constant 0 : index
      %48 = vector.load %arg13[%c0_27, %c0_28] : memref<8x1152xf32, #tpu.memory_space<vmem>>, vector<8x1152xf32>
      tpu.vector_store %arg13[%c0_27, %c0_28], %47 {strides = array<i32>} : memref<8x1152xf32, #tpu.memory_space<vmem>>, vector<8x1152xf32>,
    } else {
    }
    %c0 = arith.constant 0 : index
    %c0_1 = arith.constant 0 : index
    %3 = vector.load %arg13[%c0, %c0_1] : memref<8x1152xf32, #tpu.memory_space<vmem>>, vector<8x1152xf32>
    %4 = arith.truncf %3 : vector<8x1152xf32> to vector<8x1152xbf16>
    %c0_2 = arith.constant 0 : index
    %c0_3 = arith.constant 0 : index
    %c0_4 = arith.constant 0 : index
    %5 = vector.load %arg7[%c0_2, %c0_3, %c0_4] : memref<1x1152x1152xbf16, #tpu.memory_space<vmem>>, vector<1x1152x1152xbf16>
    %6 = vector.shape_cast %5 : vector<1x1152x1152xbf16> to vector<1152x1152xbf16>
    %cst = arith.constant dense<0.000000e+00> : vector<8x1152xf32>
    %7 = tpu.matmul %4, %6, %cst {dimension_numbers = #tpu.dot_dimension_numbers<[1], [0], [0], [1], [0, 0, 1, 1], [], []>} : vector<8x1152xbf16>, vector<1152x1152xbf16>, vector<8x1152xf32> -> vector<8x1152xf32>
    %c0_i32_5 = arith.constant 0 : i32
    %8 = arith.cmpi eq, %arg0, %c0_i32_5 : i32
    %9 = arith.extui %8 : i1 to i32
    %c0_i32_6 = arith.constant 0 : i32
    %10 = arith.cmpi ne, %9, %c0_i32_6 : i32
    scf.if %10 {
      %c0_10 = arith.constant 0 : index
      %c0_11 = arith.constant 0 : index
      %17 = vector.load %arg6[%c0_10, %c0_11] : memref<1x1152xf32, #tpu.memory_space<vmem>>, vector<1x1152xf32>
      %18 = vector.broadcast %17 : vector<1x1152xf32> to vector<8x1152xf32>
      %19 = arith.addf %7, %18 : vector<8x1152xf32>
      %cst_12 = arith.constant 0.000000e+00 : f32
      %20 = vector.broadcast %cst_12 : f32 to vector<8x1152xf32>
      %21 = arith.maximumf %19, %20 : vector<8x1152xf32>
      %c0_13 = arith.constant 0 : index
      %c0_14 = arith.constant 0 : index
      %22 = vector.load %arg13[%c0_13, %c0_14] : memref<8x1152xf32, #tpu.memory_space<vmem>>, vector<8x1152xf32>
      tpu.vector_store %arg13[%c0_13, %c0_14], %21 {strides = array<i32>} : memref<8x1152xf32, #tpu.memory_space<vmem>>, vector<8x1152xf32>,
    } else {
    }
    %c0_i32_7 = arith.constant 0 : i32
    %11 = arith.cmpi sgt, %arg0, %c0_i32_7 : i32
    %12 = arith.extui %11 : i1 to i32
    %c0_i32_8 = arith.constant 0 : i32
    %13 = arith.cmpi ne, %12, %c0_i32_8 : i32
    scf.if %13 {
      %c0_10 = arith.constant 0 : index
      %c0_11 = arith.constant 0 : index
      %c0_12 = arith.constant 0 : index
      %17 = vector.load %arg8[%c0_10, %c0_11, %c0_12] : memref<1x1x1152xf32, #tpu.memory_space<vmem>>, vector<1x1x1152xf32>
      %18 = vector.shape_cast %17 : vector<1x1x1152xf32> to vector<1x1152xf32>
      %c0_13 = arith.constant 0 : index
      %c0_14 = arith.constant 0 : index
      %c0_15 = arith.constant 0 : index
      %19 = vector.load %arg9[%c0_13, %c0_14, %c0_15] : memref<1x1x1152xf32, #tpu.memory_space<vmem>>, vector<1x1x1152xf32>
      %20 = vector.shape_cast %19 : vector<1x1x1152xf32> to vector<1x1152xf32>
      %cst_16 = arith.constant dense<0.000000e+00> : vector<1152xf32>
      %21 = vector.multi_reduction <add>, %7, %cst_16 [0] : vector<8x1152xf32> to vector<1152xf32>
      %22 = vector.shape_cast %21 : vector<1152xf32> to vector<1x1152xf32>
      %cst_17 = arith.constant 8.000000e+00 : f32
      %23 = vector.broadcast %cst_17 : f32 to vector<1x1152xf32>
      %24 = arith.divf %22, %23 : vector<1x1152xf32>
      %25 = vector.broadcast %24 : vector<1x1152xf32> to vector<8x1152xf32>
      %26 = arith.subf %7, %25 : vector<8x1152xf32>
      %27 = arith.mulf %26, %26 : vector<8x1152xf32>
      %cst_18 = arith.constant dense<0.000000e+00> : vector<1152xf32>
      %28 = vector.multi_reduction <add>, %27, %cst_18 [0] : vector<8x1152xf32> to vector<1152xf32>
      %29 = vector.shape_cast %28 : vector<1152xf32> to vector<1x1152xf32>
      %cst_19 = arith.constant 8.000000e+00 : f32
      %30 = vector.broadcast %cst_19 : f32 to vector<1x1152xf32>
      %31 = arith.divf %29, %30 : vector<1x1152xf32>
      %cst_20 = arith.constant 9.99999974E-6 : f32
      %32 = vector.broadcast %cst_20 : f32 to vector<1x1152xf32>
      %33 = arith.addf %31, %32 : vector<1x1152xf32>
      %34 = math.rsqrt %33 : vector<1x1152xf32>
      %35 = vector.broadcast %34 : vector<1x1152xf32> to vector<8x1152xf32>
      %36 = arith.mulf %26, %35 : vector<8x1152xf32>
      %37 = vector.broadcast %18 : vector<1x1152xf32> to vector<8x1152xf32>
      %38 = arith.mulf %36, %37 : vector<8x1152xf32>
      %39 = vector.broadcast %20 : vector<1x1152xf32> to vector<8x1152xf32>
      %40 = arith.addf %38, %39 : vector<8x1152xf32>
      %cst_21 = arith.constant 0.000000e+00 : f32
      %41 = vector.broadcast %cst_21 : f32 to vector<8x1152xf32>
      %42 = arith.maximumf %40, %41 : vector<8x1152xf32>
      %c0_22 = arith.constant 0 : index
      %c0_23 = arith.constant 0 : index
      %43 = vector.load %arg13[%c0_22, %c0_23] : memref<8x1152xf32, #tpu.memory_space<vmem>>, vector<8x1152xf32>
      tpu.vector_store %arg13[%c0_22, %c0_23], %42 {strides = array<i32>} : memref<8x1152xf32, #tpu.memory_space<vmem>>, vector<8x1152xf32>,
    } else {
    }
    %c4_i32 = arith.constant 4 : i32
    %14 = arith.cmpi eq, %arg0, %c4_i32 : i32
    %15 = arith.extui %14 : i1 to i32
    %c0_i32_9 = arith.constant 0 : i32
    %16 = arith.cmpi ne, %15, %c0_i32_9 : i32
    scf.if %16 {
      %c0_10 = arith.constant 0 : index
      %c0_11 = arith.constant 0 : index
      %17 = vector.load %arg13[%c0_10, %c0_11] : memref<8x1152xf32, #tpu.memory_space<vmem>>, vector<8x1152xf32>
      %18 = arith.truncf %17 : vector<8x1152xf32> to vector<8x1152xbf16>
      %c0_12 = arith.constant 0 : index
      %c0_13 = arith.constant 0 : index
      %19 = vector.load %arg10[%c0_12, %c0_13] : memref<1152x128xbf16, #tpu.memory_space<vmem>>, vector<1152x128xbf16>
      %cst_14 = arith.constant dense<0.000000e+00> : vector<8x128xf32>
      %20 = tpu.matmul %18, %19, %cst_14 {dimension_numbers = #tpu.dot_dimension_numbers<[1], [0], [0], [1], [0, 0, 1, 1], [], []>} : vector<8x1152xbf16>, vector<1152x128xbf16>, vector<8x128xf32> -> vector<8x128xf32>
      %c0_15 = arith.constant 0 : index
      %c0_16 = arith.constant 0 : index
      %21 = vector.load %arg11[%c0_15, %c0_16] : memref<1x128xf32, #tpu.memory_space<vmem>>, vector<1x128xf32>
      %22 = vector.broadcast %21 : vector<1x128xf32> to vector<8x128xf32>
      %23 = arith.addf %20, %22 : vector<8x128xf32>
      %c0_17 = arith.constant 0 : index
      %c0_18 = arith.constant 0 : index
      %24 = vector.load %arg12[%c0_17, %c0_18] : memref<8x128xf32, #tpu.memory_space<vmem>>, vector<8x128xf32>
      tpu.vector_store %arg12[%c0_17, %c0_18], %23 {strides = array<i32>} : memref<8x128xf32, #tpu.memory_space<vmem>>, vector<8x128xf32>,
    } else {
    }
    return
  }
  func.func @transform_0(%arg0: i32) -> (i32, i32) {
    %c0_i32 = arith.constant 0 : i32
    %c0_i32_0 = arith.constant 0 : i32
    %c0_i32_1 = arith.constant 0 : i32
    return %c0_i32, %c0_i32_0 : i32, i32
  }
  func.func @transform_1(%arg0: i32) -> (i32, i32) {
    %c0_i32 = arith.constant 0 : i32
    %c0_i32_0 = arith.constant 0 : i32
    %c0_i32_1 = arith.constant 0 : i32
    return %c0_i32, %c0_i32_0 : i32, i32
  }
  func.func @transform_2(%arg0: i32) -> (i32, i32) {
    %c0_i32 = arith.constant 0 : i32
    %c0_i32_0 = arith.constant 0 : i32
    %c0_i32_1 = arith.constant 0 : i32
    return %c0_i32, %c0_i32_0 : i32, i32
  }
  func.func @transform_3(%arg0: i32) -> (i32, i32) {
    %c0_i32 = arith.constant 0 : i32
    %c0_i32_0 = arith.constant 0 : i32
    %c0_i32_1 = arith.constant 0 : i32
    return %c0_i32, %c0_i32_0 : i32, i32
  }
  func.func @transform_4(%arg0: i32) -> (i32, i32) {
    %c0_i32 = arith.constant 0 : i32
    %c0_i32_0 = arith.constant 0 : i32
    %c0_i32_1 = arith.constant 0 : i32
    return %c0_i32, %c0_i32_0 : i32, i32
  }
  func.func @transform_5(%arg0: i32) -> (i32, i32) {
    %c0_i32 = arith.constant 0 : i32
    %c0_i32_0 = arith.constant 0 : i32
    %c0_i32_1 = arith.constant 0 : i32
    return %c0_i32, %c0_i32_0 : i32, i32
  }
  func.func @transform_6(%arg0: i32) -> (i32, i32, i32) {
    %c0_i32 = arith.constant 0 : i32
    %c0_i32_0 = arith.constant 0 : i32
    %c0_i32_1 = arith.constant 0 : i32
    return %arg0, %c0_i32, %c0_i32_0 : i32, i32, i32
  }
  func.func @transform_7(%arg0: i32) -> (i32, i32, i32) {
    %c0_i32 = arith.constant 0 : i32
    %c0_i32_0 = arith.constant 0 : i32
    %c0_i32_1 = arith.constant 0 : i32
    return %arg0, %c0_i32, %c0_i32_0 : i32, i32, i32
  }
  func.func @transform_8(%arg0: i32) -> (i32, i32, i32) {
    %c0_i32 = arith.constant 0 : i32
    %c0_i32_0 = arith.constant 0 : i32
    %c0_i32_1 = arith.constant 0 : i32
    return %arg0, %c0_i32, %c0_i32_0 : i32, i32, i32
  }
  func.func @transform_9(%arg0: i32) -> (i32, i32) {
    %c0_i32 = arith.constant 0 : i32
    %c0_i32_0 = arith.constant 0 : i32
    %c0_i32_1 = arith.constant 0 : i32
    return %c0_i32, %c0_i32_0 : i32, i32
  }
  func.func @transform_10(%arg0: i32) -> (i32, i32) {
    %c0_i32 = arith.constant 0 : i32
    %c0_i32_0 = arith.constant 0 : i32
    %c0_i32_1 = arith.constant 0 : i32
    return %c0_i32, %c0_i32_0 : i32, i32
  }
  func.func @transform_11(%arg0: i32) -> (i32, i32) {
    %c0_i32 = arith.constant 0 : i32
    %c0_i32_0 = arith.constant 0 : i32
    %c0_i32_1 = arith.constant 0 : i32
    return %c0_i32, %c0_i32_0 : i32, i32
  }
}

</mosaic_0001>

<bundles_post_ra>
// kernel: baseline_forward.1
= control target key start
LH: loop header
LB: loop body
LE: loop exit
PB: predicated region body
PF: predicated region fallthrough
CT: control target
= control target key end

     0   :  { %s12140_s0 = inlined_call_operand.vmem [shape: f32[8,128], index: 0, kind: input, shape index: {}]   ;;  %s12141_s1 = inlined_call_operand.hbm [shape: bf16[128,1152], index: 1, kind: input, shape index: {}]   ;;  %s12142_s2 = inlined_call_operand.hbm [shape: f32[1,1152], index: 2, kind: input, shape index: {}]   ;;  %s12143_s3 = inlined_call_operand.hbm [shape: f32[1,1152], index: 3, kind: input, shape index: {}]   ;;  %s12144_s4 = inlined_call_operand.hbm [shape: f32[1,1152], index: 4, kind: input, shape index: {}]   ;;  %s12145_s5 = inlined_call_operand.hbm [shape: f32[1,1152], index: 5, kind: input, shape index: {}]   ;;  %s12146_s6 = inlined_call_operand.hbm [shape: bf16[5,1152,1152], index: 6, kind: input, shape index: {}]   ;;  %s12147_s7 = inlined_call_operand.hbm [shape: f32[5,1,1152], index: 7, kind: input, shape index: {}]   ;;  %s12148_s8 = inlined_call_operand.hbm [shape: f32[5,1,1152], index: 8, kind: input, shape index: {}]   ;;  %s12149_s9 = inlined_call_operand.hbm [shape: bf16[1152,128], index: 9, kind: input, shape index: {}]   ;;  %s12150_s10 = inlined_call_operand.hbm [shape: f32[1,128], index: 10, kind: input, shape index: {}]   ;;  %s12151_s11 = inlined_call_operand.hbm [shape: f32[8,128], index: 11, kind: output, shape index: {}]  }
   0x1   :  { %12164 = sst [smem:[#allocation31_spill]] %s12141_s1 }
   0x2   :  { %12165 = sst [smem:[#allocation32_spill]] %s12142_s2 }
   0x3   :  { %12166 = sst [smem:[#allocation33_spill]] %s12144_s4 }
   0x4   :  { %12167 = sst [smem:[#allocation34_spill]] %s12149_s9 }
   0x5   :  { %16 = vsyncpa [#allocation4], 0 }
   0x6   :  { %17 = vsyncpa [#allocation7], 0 }
   0x7   :  { %18 = vsyncpa [#allocation10], 0 }
   0x8   :  { %19 = vsyncpa [#allocation13], 0 }
   0x9   :  { %21 = vsyncpa [#allocation13 + $0x1], 0 }
   0xa   :  { %22 = vsyncpa [#allocation16], 0 }
   0xb   :  { %24 = vsyncpa [#allocation16 + $0x1], 0 }
   0xc   :  { %25 = vsyncpa [#allocation19], 0 }
   0xd   :  { %26 = vsyncpa [#allocation5], 0  ;;  %s10829_s17 = smov 0   ;;  %s10831_s18 = smov 0  }
   0xe   :  { %s10833_s19 = smov 0   ;;  %s10835_s20 = smov 0  }
   0xf LB: > { %s10746_s21 = smov [#allocation6]   ;;  %s10850_s23 = sadd.s32 4294967295, %s10744_s20   ;;  %s10744_s20 = sphi %s10835_s20, %s12201_s20   ;;  %s10740_s19 = sphi %s10833_s19, %s12205_s19   ;;  %s10736_s18 = sphi %s10831_s18, %s12204_s18   ;;  %s10732_s17 = sphi %s10829_s17, %s12203_s17  }
  0x10   : > { %s333_s22 = sshll.u32 %s10746_s21, 4  ;;  %p8007_p0 = scmp.ge.s32.totalorder %s10744_s20, 1  ;;  %s334_s22 = int_to_ptr.vmem [resolvable:$true] %s333_s22 }
  0x11   : > { %p12152_p1 = scmp.eq.s32.totalorder %s10850_s23, 0  ;;  %p304_p2 = scmp.lt.s32.totalorder %s10744_s20, 6 }
  0x12   : > { %s10747_s25 = smov [#allocation9]   ;;  %s10748_s27 = smov [#allocation17]  }
  0x13   : > { %p10856_p4 = pnand %p8007_p0, %p304_p2  ;;  %s355_s26 = sshll.u32 %s10747_s25, 4  ;;  %s356_s26 = int_to_ptr.vmem [resolvable:$true] %s355_s26 }
  0x14   : > { %s376_s28 = sshll.u32 %s10748_s27, 4  ;;  %s10403_s12 = scalar_lea.vmem %s334_s22, 144  ;;  %s10868_s28 = int_to_ptr.vmem [resolvable:$true] %s376_s28 }
  0x15   : > { %s12168_s24 = scalar_select %p10856_p4, 1, 0 }
  0x16   : > { %p9143_p5 = pneg %p10856_p4  ;;  %p10404_p8 = scmp.ne.s32.totalorder %s334_s22, %s10403_s12 }
  0x17   : > { %s10410_s13 = scalar_lea.vmem %s334_s22, 160  ;;  %p10411_p11 = scmp.lt.s32.totalorder %s334_s22, %s334_s22 }
  0x18   : > { %p10864_p6 = pnand %p9143_p5, %p12152_p1  ;;  %p10412_p12 = scmp.lt.s32.totalorder %s10410_s13, %s10403_s12 }
  0x1a   : > { %s12169_s29 = scalar_select %p10864_p6, 1, 0 }
  0x1b   : > { %p10872_p7 = pneg %p10864_p6  ;;  %p10413_p13 = por %p10412_p12, %p10411_p11 }
  0x1d   : > { %s12170_s30 = scalar_select %p10872_p7, 1, 0 }
  0x1e   : > { %p10406_p9 = pnand %p10404_p8, %p10872_p7 }
  0x20   : > { %p10407_p10 = pneg %p10406_p9 }
  0x22   : > { %p10414_p0 = pnand %p10413_p13, %p10407_p10 }
  0x24   : > { %10417 = shalt.err (!%p10414_p0)
}
  0x25   : > { %s12171_s2 = sld [smem:[#allocation32_spill]]  ;;  %s10429_s16 = scalar_lea.vmem %s356_s26, 144 }
  0x26   : > { %p10430_p2 = scmp.ne.s32.totalorder %s356_s26, %s10429_s16  ;;  %s10436_s21 = scalar_lea.vmem %s356_s26, 160 }
  0x27   : > { %p10437_p8 = scmp.lt.s32.totalorder %s356_s26, %s356_s26  ;;  %p10438_p9 = scmp.lt.s32.totalorder %s10436_s21, %s10429_s16 }
  0x28   : > { %p10432_p5 = pnand %p10430_p2, %p10872_p7 }
  0x29   : > { %p10439_p1 = por %p10438_p9, %p10437_p8 }
  0x2a   : > { %p10433_p3 = pneg %p10432_p5 }
  0x2b   : > { %9149 = dma.hbm_to_vmem [thread:$0]  (!%p10864_p6), %s12171_s2, 144, %s334_s22, [#allocation7]  }
  0x2c   : > { %p10440_p4 = pnand %p10439_p1, %p10433_p3 }
  0x2e   : > { %10443 = shalt.err (!%p10440_p4)
}
  0x2f   : > { %s12172_s4 = sld [smem:[#allocation33_spill]]  ;;  %s10455_s22 = scalar_lea.vmem %s10868_s28, 9216 }
  0x30   : > { %p10456_p10 = scmp.ne.s32.totalorder %s10868_s28, %s10455_s22  ;;  %p10463_p13 = scmp.lt.s32.totalorder %s10868_s28, %s10868_s28 }
  0x31   : > { %p10464_p0 = scmp.lt.s32.totalorder %s10455_s22, %s10455_s22 }
  0x32   : > { %p10458_p11 = pnand %p10456_p10, %p10872_p7 }
  0x33   : > { %p10465_p1 = por %p10464_p0, %p10463_p13 }
  0x34   : > { %p10459_p12 = pneg %p10458_p11 }
  0x35   : > { %9155 = dma.hbm_to_vmem [thread:$0]  (!%p10864_p6), %s12172_s4, 144, %s356_s26, [#allocation10]  }
  0x36   : > { %p10466_p3 = pnand %p10465_p1, %p10459_p12 }
  0x38   : > { %10469 = shalt.err (!%p10466_p3)
}
  0x39   : > { %s10749_s12 = smov 64   ;;  %s10750_s26 = smov 4  }
  0x3a   : > { %s12173_s9 = sld [smem:[#allocation34_spill]]  ;;  %s10903_s15 = sadd.s32 1, %s10744_s20  }
  0x3b   : > { %12174 = sst [smem:[#allocation29_spill]] %s10903_s15  ;;  %s162_s16 = ssub.s32 %s10744_s20, %s10903_s15 }
  0x3c   : > { %s165_s21 = sadd.s32 1, %s10740_s19  ;;  %p163_p4 = scmp.eq.s32.totalorder %s162_s16, 0 }
  0x3d   : > { %p172_p2 = scmp.ne.s32.totalorder %s10740_s19, %s10736_s18  ;;  %p173_p5 = scmp.eq.s32.totalorder %s10744_s20, 0 }
  0x3e   : > { %p178_p8 = scmp.ne.s32.totalorder %s10736_s18, %s10732_s17  ;;  %p12176_p10 = scmp.eq.s32.totalorder %s10850_s23, 0 }
  0x3f   : > { %s10914_s25 = scalar_select %p163_p4, %s10740_s19, %s165_s21  }
  0x40   : > { %9161 = dma.hbm_to_vmem [thread:$0]  (!%p10864_p6), %s12173_s9, 9216, %s10868_s28, [#allocation16], %s10749_s12, %s10749_s12, %s10750_s26  }
  0x41   : > { %12175 = sst [smem:[#allocation30_spill]] %s10914_s25  ;;  %p174_p9 = por %p173_p5, %p172_p2 }
  0x42   : > { %p10918_p11 = por %p12176_p10, %p178_p8  ;;  %p9182_p12 = scmp.lt.s32.totalorder %s10744_s20, 5 }
  0x43   : > { %s12154_s22 = sand.u32 1, %s10740_s19   ;;  %s9098_s17 = smul.u32 82944, %s10744_s20 }
  0x44   : > { %s12177_s27 = scalar_select %p10918_p11, 1, 0 }
  0x45   : > { %s9097_s12 = smul.u32 5184, %s12154_s22  ;;  %p10927_p13 = pnand %p9182_p12, %p174_p9 }
  0x46   : > { %s10935_s16 = scalar_lea.hbm %s12146_s6, %s9098_s17  ;;  %s10751_s28 = smov [#allocation3]  }
  0x47   : > { %s12178_s26 = scalar_select %p10927_p13, 1, 0 }
  0x48   : > { %s405_s21 = scalar_lea.vmem [#allocation12], %s9097_s12  ;;  %s10939_s22 = sshll.u32 %s10751_s28, 4  ;;  %s320_s22 = int_to_ptr.vmem [resolvable:$true] %s10939_s22 }
  0x49   : > { %s412_s2 = sshll.u32 %s405_s21, 4  ;;  %s12179_s4 = sand.u32 1, %s10744_s20   ;;  %s10937_s2 = int_to_ptr.vmem [resolvable:$true] %s412_s2 }
  0x4a   : > { %s10943_s9 = scalar_lea.sflag [#allocation13], %s12179_s4  ;;  %s10470_s25 = scalar_lea.hbm %s10935_s16, 82944 }
  0x4b   : > { %p10471_p0 = scmp.ne.s32.totalorder %s10935_s16, %s10470_s25  ;;  %p10949_p1 = pneg %p10927_p13 }
  0x4c   : > { %s10475_s14 = scalar_lea.hbm %s12146_s6, 414720  ;;  %p10476_p2 = scmp.lt.s32.totalorder %s10935_s16, %s12146_s6 }
  0x4d   : > { %p10473_p3 = pnand %p10949_p1, %p10471_p0  ;;  %p10477_p5 = scmp.lt.s32.totalorder %s10475_s14, %s10470_s25 }
  0x4f   : > { %p10474_p4 = pneg %p10473_p3  ;;  %p10478_p8 = por %p10477_p5, %p10476_p2 }
  0x51   : > { %p10479_p9 = pnand %p10478_p8, %p10474_p4 }
  0x53   : > { %10482 = shalt.err (!%p10479_p9)
}
  0x54   : > { %s10483_s4 = scalar_lea.vmem %s10937_s2, 82944  ;;  %s10752_s15 = smov [#allocation12]  }
  0x55   : > { %p10484_p10 = scmp.ne.s32.totalorder %s10937_s2, %s10483_s4  ;;  %s10488_s12 = sshll.u32 %s10752_s15, 4  ;;  %s10489_s12 = int_to_ptr.vmem [resolvable:$false] %s10488_s12 }
  0x56   : > { %s10490_s17 = scalar_lea.vmem %s10489_s12, 165888  ;;  %p10491_p3 = scmp.lt.s32.totalorder %s10937_s2, %s10489_s12 }
  0x57   : > { %p10486_p12 = pnand %p10484_p10, %p10949_p1  ;;  %p10492_p11 = scmp.lt.s32.totalorder %s10490_s17, %s10483_s4 }
  0x59   : > { %p10487_p0 = pneg %p10486_p12  ;;  %p10493_p6 = por %p10492_p11, %p10491_p3 }
  0x5b   : > { %p10494_p7 = pnand %p10493_p6, %p10487_p0 }
  0x5d   : > { %10497 = shalt.err (!%p10494_p7)
}
  0x5e   : > { %s10753_s25 = smov 576   ;;  %s10754_s14 = smov 36  }
  0x5f   : > { %9168 = dma.hbm_to_vmem [thread:$0]  (!%p10927_p13), %s10935_s16, 82944, %s10937_s2, %s10943_s9, %s10753_s25, %s10753_s25, %s10754_s14  }
  0x60   : > { %s10509_s28 = scalar_lea.vmem %s320_s22, 9216  ;;  %p12181_p2 = scmp.ne.s32.totalorder %s12170_s30, 0 }
  0x61   : > { %p10510_p4 = scmp.ne.s32.totalorder %s320_s22, %s10509_s28  ;;  %p10517_p9 = scmp.lt.s32.totalorder %s320_s22, %s320_s22 }
  0x62   : > { %p10518_p11 = scmp.lt.s32.totalorder %s10509_s28, %s10509_s28 }
  0x63   : > { %p10512_p5 = pnand %p10510_p4, %p12181_p2 }
  0x64   : > { %p10519_p6 = por %p10518_p11, %p10517_p9 }
  0x65   : > { %p10513_p8 = pneg %p10512_p5 }
  0x67   : > { %p10520_p7 = pnand %p10519_p6, %p10513_p8 }
  0x69   : > { %10523 = shalt.err (!%p10520_p7)
}
  0x6a   : > { %p12182_p10 = scmp.ne.s32.totalorder %s12169_s29, 0  ;;  %s12183_s1 = sld [smem:[#allocation31_spill]] }
  0x6b   : > { %s10755_s4 = smov [#allocation8]   ;;  %s10756_s16 = smov [#allocation11]  }
  0x6c   : > { %s344_s2 = sshll.u32 %s10755_s4, 4  ;;  %s366_s12 = sshll.u32 %s10756_s16, 4  ;;  %s345_s2 = int_to_ptr.vmem [resolvable:$true] %s344_s2  ;;  %s367_s12 = int_to_ptr.vmem [resolvable:$true] %s366_s12 }
  0x6d   : > { %s10535_s17 = scalar_lea.vmem %s345_s2, 144  ;;  %s10542_s28 = scalar_lea.vmem %s345_s2, 160 }
  0x6e   : > { %p10536_p12 = scmp.ne.s32.totalorder %s345_s2, %s10535_s17  ;;  %p10543_p4 = scmp.lt.s32.totalorder %s345_s2, %s345_s2 }
  0x6f   : > { %p10544_p5 = scmp.lt.s32.totalorder %s10542_s28, %s10535_s17 }
  0x70   : > { %9146 = dma.hbm_to_vmem [thread:$0]  (!%p12182_p10), %s12183_s1, 9216, %s320_s22, [#allocation4], %s10753_s25, %s10753_s25, %s10754_s14  }
  0x71   : > { %p10538_p0 = pnand %p10536_p12, %p12181_p2  ;;  %p10545_p8 = por %p10544_p5, %p10543_p4 }
  0x73   : > { %p10539_p3 = pneg %p10538_p0 }
  0x75   : > { %p10546_p9 = pnand %p10545_p8, %p10539_p3 }
  0x77   : > { %10549 = shalt.err (!%p10546_p9)
}
  0x78   : > { %9152 = dma.hbm_to_vmem [thread:$0]  (!%p12182_p10), %s12143_s3, 144, %s345_s2, [#allocation7]  }
  0x79   : > { %s10561_s25 = scalar_lea.vmem %s367_s12, 144  ;;  %s10568_s14 = scalar_lea.vmem %s367_s12, 160 }
  0x7a   : > { %p10562_p11 = scmp.ne.s32.totalorder %s367_s12, %s10561_s25  ;;  %p10569_p12 = scmp.lt.s32.totalorder %s367_s12, %s367_s12 }
  0x7b   : > { %p10570_p0 = scmp.lt.s32.totalorder %s10568_s14, %s10561_s25 }
  0x7c   : > { %p10564_p6 = pnand %p10562_p11, %p12181_p2 }
  0x7d   : > { %p10571_p13 = por %p10570_p0, %p10569_p12 }
  0x7e   : > { %p10565_p7 = pneg %p10564_p6 }
  0x80   : > { %p10572_p4 = pnand %p10571_p13, %p10565_p7 }
  0x82   : > { %10575 = shalt.err (!%p10572_p4)
}
  0x83   : > { %9158 = dma.hbm_to_vmem [thread:$0]  (!%p12182_p10), %s12145_s5, 144, %s367_s12, [#allocation10]  }
  0x84   : > { %s10757_s2 = smov [#allocation18]   ;;  %s12184_s17 = sand.u32 1, %s10740_s19  }
  0x85   : > { %s390_s16 = sshll.u32 %s10757_s2, 4  ;;  %s10996_s28 = smul.u32 9, %s12184_s17  ;;  %s391_s16 = int_to_ptr.vmem [resolvable:$true] %s390_s16 }
  0x86   : > { %s9100_s15 = smul.u32 144, %s10744_s20  ;;  %s10587_s22 = scalar_lea.vmem %s391_s16, 16 }
  0x87   : > { %p10588_p3 = scmp.ne.s32.totalorder %s391_s16, %s10587_s22  ;;  %s10594_s25 = scalar_lea.vmem %s391_s16, 32 }
  0x88   : > { %p10595_p8 = scmp.lt.s32.totalorder %s391_s16, %s391_s16  ;;  %p10596_p9 = scmp.lt.s32.totalorder %s10594_s25, %s10587_s22 }
  0x89   : > { %p10590_p13 = pnand %p10588_p3, %p12181_p2 }
  0x8a   : > { %p10597_p11 = por %p10596_p9, %p10595_p8 }
  0x8b   : > { %p10591_p5 = pneg %p10590_p13 }
  0x8d   : > { %p10598_p6 = pnand %p10597_p11, %p10591_p5 }
  0x8f   : > { %10601 = shalt.err (!%p10598_p6)
}
  0x90   : > { %9164 = dma.hbm_to_vmem [thread:$0]  (!%p12182_p10), %s12150_s10, 16, %s391_s16, [#allocation19]  }
  0x91   : > { %s432_s4 = scalar_lea.hbm %s12147_s7, %s9100_s15  ;;  %s426_s2 = scalar_lea.vmem [#allocation14], %s10996_s28 }
  0x92   : > { %s434_s17 = sshll.u32 %s426_s2, 4  ;;  %s10602_s22 = scalar_lea.hbm %s432_s4, 144  ;;  %s435_s17 = int_to_ptr.vmem [resolvable:$true] %s434_s17 }
  0x93   : > { %p10603_p2 = scmp.ne.s32.totalorder %s432_s4, %s10602_s22  ;;  %s10607_s12 = scalar_lea.hbm %s12147_s7, 720 }
  0x94   : > { %p10608_p10 = scmp.lt.s32.totalorder %s432_s4, %s12147_s7  ;;  %p10609_p0 = scmp.lt.s32.totalorder %s10607_s12, %s10602_s22 }
  0x95   : > { %p10605_p7 = pnand %p10603_p2, %p10949_p1 }
  0x96   : > { %p10610_p4 = por %p10609_p0, %p10608_p10 }
  0x97   : > { %p10606_p12 = pneg %p10605_p7 }
  0x99   : > { %p10611_p3 = pnand %p10610_p4, %p10606_p12 }
  0x9b   : > { %10614 = shalt.err (!%p10611_p3)
}
  0x9c   : > { %s10615_s16 = scalar_lea.vmem %s435_s17, 144  ;;  %s10758_s21 = smov [#allocation14]  }
  0x9d   : > { %p10616_p13 = scmp.ne.s32.totalorder %s435_s17, %s10615_s16  ;;  %s10620_s30 = sshll.u32 %s10758_s21, 4  ;;  %s10621_s30 = int_to_ptr.vmem [resolvable:$false] %s10620_s30 }
  0x9e   : > { %s10622_s2 = scalar_lea.vmem %s10621_s30, 288  ;;  %p10623_p9 = scmp.lt.s32.totalorder %s435_s17, %s10621_s30 }
  0x9f   : > { %p10618_p5 = pnand %p10616_p13, %p10949_p1  ;;  %p10624_p11 = scmp.lt.s32.totalorder %s10622_s2, %s10615_s16 }
  0xa1   : > { %p10619_p8 = pneg %p10618_p5  ;;  %p10625_p6 = por %p10624_p11, %p10623_p9 }
  0xa3   : > { %p10626_p2 = pnand %p10625_p6, %p10619_p8 }
  0xa5   : > { %10629 = shalt.err (!%p10626_p2)
}
  0xa6   : > { %p12185_p7 = scmp.ne.s32.totalorder %s12178_s26, 0  ;;  %s11030_s29 = scalar_lea.hbm %s12148_s8, %s9100_s15 }
  0xa7   : > { %s445_s25 = scalar_lea.vmem [#allocation15], %s10996_s28  ;;  %s12186_s14 = sand.u32 1, %s10744_s20  }
  0xa8   : > { %9171 = dma.hbm_to_vmem [thread:$0]  (!%p12185_p7), %s432_s4, 144, %s435_s17, %s10943_s9  }
  0xa9   : > { %s453_s12 = sshll.u32 %s445_s25, 4  ;;  %s442_s16 = scalar_lea.sflag [#allocation16], %s12186_s14  ;;  %s454_s12 = int_to_ptr.vmem [resolvable:$true] %s453_s12 }
  0xaa   : > { %s10630_s21 = scalar_lea.hbm %s11030_s29, 144  ;;  %s10635_s17 = scalar_lea.hbm %s12148_s8, 720 }
  0xab   : > { %p10631_p12 = scmp.ne.s32.totalorder %s11030_s29, %s10630_s21  ;;  %p10636_p4 = scmp.lt.s32.totalorder %s11030_s29, %s12148_s8 }
  0xac   : > { %p10637_p3 = scmp.lt.s32.totalorder %s10635_s17, %s10630_s21 }
  0xad   : > { %p10633_p10 = pnand %p10631_p12, %p10949_p1 }
  0xae   : > { %p10638_p13 = por %p10637_p3, %p10636_p4 }
  0xaf   : > { %p10634_p0 = pneg %p10633_p10 }
  0xb1   : > { %p10639_p5 = pnand %p10638_p13, %p10634_p0 }
  0xb3   : > { %10642 = shalt.err (!%p10639_p5)
}
  0xb4   : > { %s10643_s28 = scalar_lea.vmem %s454_s12, 144  ;;  %s10759_s20 = smov [#allocation15]  }
  0xb5   : > { %p10644_p8 = scmp.ne.s32.totalorder %s454_s12, %s10643_s28  ;;  %s10648_s2 = sshll.u32 %s10759_s20, 4  ;;  %s10649_s2 = int_to_ptr.vmem [resolvable:$false] %s10648_s2 }
  0xb6   : > { %s10650_s1 = scalar_lea.vmem %s10649_s2, 288  ;;  %p10651_p6 = scmp.lt.s32.totalorder %s454_s12, %s10649_s2 }
  0xb7   : > { %p10646_p9 = pnand %p10644_p8, %p10949_p1  ;;  %p10652_p2 = scmp.lt.s32.totalorder %s10650_s1, %s10643_s28 }
  0xb9   : > { %p10647_p11 = pneg %p10646_p9  ;;  %p10653_p12 = por %p10652_p2, %p10651_p6 }
  0xbb   : > { %p10654_p10 = pnand %p10653_p12, %p10647_p11 }
  0xbd   : > { %10657 = shalt.err (!%p10654_p10)
}
  0xbe   : > { %9174 = dma.hbm_to_vmem [thread:$0]  (!%p12185_p7), %s11030_s29, 144, %s454_s12, %s442_s16  }
  0xbf   : > { %p12187_p0 = scmp.ne.s32.totalorder %s12168_s24, 0 }
  0xc0   : > { %p12188_p4 = scmp.eq.s32.totalorder (!%p12187_p0), %s10850_s23, 0 }
  0xc1   : > { %462 = sbr.rel (%p12187_p0) target bundleno = 1885 (0x75d), region = 64 }
  0xc6   : > { %10699 = dma.done.wait (%p12188_p4), [#allocation4], 9216   ;;  %p12189_p1 = pmov %p12188_p4 }
  0xc8   : > { %10701 = vsyncadd (%p12189_p1), [#allocation4], 4294958080  ;;  %p12190_p3 = pmov %p12189_p1 }
  0xc9   : > { %p12191_p13 = pmov %p12189_p1 }
  0xca   : > { %10703 = dma.done.wait (%p12190_p3), [#allocation7], 288  }
  0xcb   : > { %10705 = vsyncadd (%p12191_p13), [#allocation7], 4294967008  ;;  %p12192_p5 = pmov %p12189_p1 }
  0xcc   : > { %p12193_p7 = pmov %p12189_p1 }
  0xcd   : > { %10707 = dma.done.wait (%p12192_p5), [#allocation10], 288  }
  0xce   : > { %10709 = vsyncadd (%p12193_p7), [#allocation10], 4294967008  ;;  %s484_s24 = sand.u32 1, %s10850_s23   ;;  %s486_s26 = sand.u32 1, %s10736_s18  }
  0xcf   : > { %s9103_s13 = smul.u32 5184, %s486_s26  ;;  %s485_s22 = scalar_lea.sflag [#allocation13], %s484_s24 }
  0xd0   : > { %p12194_p8 = scmp.ne.s32.totalorder %s12177_s27, 0 }
  0xd1   : > { %s11067_s29 = scalar_lea.vmem [#allocation12], %s9103_s13 }
  0xd2   : > { %10711 = dma.done.wait (%p12194_p8), %s485_s22, 83088  }
  0xd3   : > { %10713 = vsyncadd (%p12194_p8), %s485_s22, 4294884208  ;;  %s11073_s25 = smul.u32 9, %s486_s26  ;;  %s503_s14 = scalar_lea.sflag [#allocation16], %s484_s24 }
  0xd5   : > { %s497_s12 = scalar_lea.vmem [#allocation14], %s11073_s25  ;;  %s506_s16 = scalar_lea.vmem [#allocation15], %s11073_s25 }
  0xd6   : > { %10715 = dma.done.wait (%p12194_p8), %s503_s14, 144  }
  0xd7   : > { %10717 = vsyncadd (%p12194_p8), %s503_s14, 4294967152  ;;  %p12195_p9 = pmov %p12189_p1 }
  0xd8   : > { %p12196_p11 = pmov %p12189_p1 }
  0xd9   : > { %10719 = dma.done.wait (%p12195_p9), [#allocation16], 9216  }
  0xda   : > { %10721 = vsyncadd (%p12196_p11), [#allocation16], 4294958080  ;;  %p12197_p6 = pmov %p12189_p1 }
  0xdb   : > { %p12198_p2 = pmov %p12189_p1 }
  0xdc   : > { %10723 = dma.done.wait (%p12197_p6), [#allocation19], 16  }
  0xdd   : > { %10725 = vsyncadd (%p12198_p2), [#allocation19], 4294967280  ;;  %p12199_p12 = scmp.ne.s32.totalorder %s10850_s23, 0 }
  0xdf   : > { %562 = sbr.rel (%p12199_p12) target bundleno = 578 (0x242), region = 108 }
  0xe4   : > { %v9244_v0 = vld [vmem:[#allocation3 + $0x1fc] ss:$36 sps:$4 sm:$0xff]   ;;  %v9246_v1 = vld [vmem:[#allocation3 + $0x204] ss:$36 sps:$4 sm:$0xff]   ;;  %v10760_v2 = vmov 0   ;;  %vm10762_vm0 = vmmov 0  }
  0xe5   : > { %1094 = vmatprep.mubr.bf16.mxu0 %v10760_v2  ;;  %1135 = vmatprep.mubr.bf16.mxu1 %v10760_v2  ;;  %v9248_v3 = vld [vmem:[#allocation3 + $0x1f8] ss:$36 sps:$4 sm:$0xff]   ;;  %v9249_v4 = vld [vmem:[#allocation3 + $0x200] ss:$36 sps:$4 sm:$0xff]   ;;  %v9254_v7 = vld [vmem:[#allocation3 + $0x1b0] ss:$36 sps:$4 sm:$0xff]  }
  0xe6   : > { %1062 = vmatprep.subr.bf16.mxu0 %v9244_v0  ;;  %1103 = vmatprep.subr.bf16.mxu1 %v9246_v1  ;;  %v9250_v5 = vld [vmem:[#allocation3 + $0x1b4] ss:$36 sps:$4 sm:$0xff]   ;;  %v9252_v6 = vld [vmem:[#allocation3 + $0x1bc] ss:$36 sps:$4 sm:$0xff]   ;;  %v9256_v9 = vld [vmem:[#allocation3 + $0x16c] ss:$36 sps:$4 sm:$0xff]  }
  0xe7   : > { %1063 = vmatpush1.bf16.msra.mxu0 %v9248_v3  ;;  %1104 = vmatpush1.bf16.msra.mxu1 %v9249_v4  ;;  %v9255_v8 = vld [vmem:[#allocation3 + $0x1b8] ss:$36 sps:$4 sm:$0xff]   ;;  %v9260_v11 = vld [vmem:[#allocation3 + $0x168] ss:$36 sps:$4 sm:$0xff]   ;;  %v9261_v12 = vld [vmem:[#allocation3 + $0x170] ss:$36 sps:$4 sm:$0xff]  }
  0xe8   : > { %1064 = vmatprep.subr.bf16.mxu0 %v9250_v5  ;;  %1105 = vmatprep.subr.bf16.mxu1 %v9252_v6  ;;  %v9258_v10 = vld [vmem:[#allocation3 + $0x174] ss:$36 sps:$4 sm:$0xff]   ;;  %v9262_v13 = vld [vmem:[#allocation3 + $0x124] ss:$36 sps:$4 sm:$0xff]   ;;  %v9264_v14 = vld [vmem:[#allocation3 + $0x12c] ss:$36 sps:$4 sm:$0xff]  }
  0xe9   : > { %v9266_v15 = vld [vmem:[#allocation3 + $0x120] ss:$36 sps:$4 sm:$0xff]   ;;  %v9267_v16 = vld [vmem:[#allocation3 + $0x128] ss:$36 sps:$4 sm:$0xff]   ;;  %v9272_v19 = vld [vmem:[#allocation3 + $0xd8] ss:$36 sps:$4 sm:$0xff]  }
  0xea   : > { %v9268_v17 = vld [vmem:[#allocation3 + $0xdc] ss:$36 sps:$4 sm:$0xff]   ;;  %v9270_v18 = vld [vmem:[#allocation3 + $0xe4] ss:$36 sps:$4 sm:$0xff]   ;;  %v9274_v21 = vld [vmem:[#allocation3 + $0x94] ss:$36 sps:$4 sm:$0xff]  }
  0xeb   : > { %1065 = vmatpush1.bf16.msra.mxu0 %v9254_v7  ;;  %1106 = vmatpush1.bf16.msra.mxu1 %v9255_v8  ;;  %v9273_v20 = vld [vmem:[#allocation3 + $0xe0] ss:$36 sps:$4 sm:$0xff]   ;;  %v9278_v23 = vld [vmem:[#allocation3 + $0x90] ss:$36 sps:$4 sm:$0xff]   ;;  %v9279_v24 = vld [vmem:[#allocation3 + $0x98] ss:$36 sps:$4 sm:$0xff]  }
  0xec   : > { %1066 = vmatprep.subr.bf16.mxu0 %v9256_v9  ;;  %1107 = vmatprep.subr.bf16.mxu1 %v9258_v10  ;;  %v9276_v22 = vld [vmem:[#allocation3 + $0x9c] ss:$36 sps:$4 sm:$0xff]   ;;  %v9280_v25 = vld [vmem:[#allocation3 + $0x4c] ss:$36 sps:$4 sm:$0xff]   ;;  %v9282_v26 = vld [vmem:[#allocation3 + $0x54] ss:$36 sps:$4 sm:$0xff]  }
  0xed   : > { %v9284_v27 = vld [vmem:[#allocation3 + $0x48] ss:$36 sps:$4 sm:$0xff]   ;;  %v9285_v28 = vld [vmem:[#allocation3 + $0x50] ss:$36 sps:$4 sm:$0xff]   ;;  %v9290_v31 = vld [vmem:[#allocation3] ss:$36 sps:$4 sm:$0xff]  }
  0xee   : > { %v9286_v29 = vld [vmem:[#allocation3 + $0x4] ss:$36 sps:$4 sm:$0xff]   ;;  %v9288_v30 = vld [vmem:[#allocation3 + $0xc] ss:$36 sps:$4 sm:$0xff]   ;;  %v563_v33 = vld [vmem:[%s12140_s0] sm:$0xff]  ;;  %v10761_v4 = vmov 0.0  }
  0xef   : > { %1067 = vmatpush1.bf16.msra.mxu0 %v9260_v11  ;;  %1108 = vmatpush1.bf16.msra.mxu1 %v9261_v12  ;;  %v9291_v32 = vld [vmem:[#allocation3 + $0x8] ss:$36 sps:$4 sm:$0xff]   ;;  %v9297_v35 = vld [vmem:[#allocation3 + $0x214] ss:$36 sps:$4 sm:$0xff]   ;;  %v11096_v36 = vpack.c.bf16 %v563_v33, %v563_v33  ;;  %v9298_v41 = vld [vmem:[#allocation3 + $0x1c0] ss:$36 sps:$4 sm:$0xff]   ;;  %v649_v12 = vlaneseq }
  0xf0   : > { %1068 = vmatprep.subr.bf16.mxu0 %v9262_v13  ;;  %1109 = vmatprep.subr.bf16.mxu1 %v9264_v14  ;;  %v9294_v34 = vld [vmem:[#allocation3 + $0x20c] ss:$36 sps:$4 sm:$0xff]   ;;  %v9300_v39 = vld [vmem:[#allocation3 + $0x1c4] ss:$36 sps:$4 sm:$0xff]   ;;  %v9306_v43 = vld [vmem:[#allocation3 + $0x17c] ss:$36 sps:$4 sm:$0xff]  }
  0xf1   : > { %v9292_v37 = vld [vmem:[#allocation3 + $0x208] ss:$36 sps:$4 sm:$0xff]   ;;  %v9295_v38 = vld [vmem:[#allocation3 + $0x210] ss:$36 sps:$4 sm:$0xff]   ;;  %v9304_v45 = vld [vmem:[#allocation3 + $0x178] ss:$36 sps:$4 sm:$0xff]  }
  0xf2   : > { %v9303_v40 = vld [vmem:[#allocation3 + $0x1cc] ss:$36 sps:$4 sm:$0xff]   ;;  %v9309_v44 = vld [vmem:[#allocation3 + $0x184] ss:$36 sps:$4 sm:$0xff]   ;;  %v9312_v47 = vld [vmem:[#allocation3 + $0x134] ss:$36 sps:$4 sm:$0xff]  }
  0xf3   : > { %1069 = vmatpush1.bf16.msra.mxu0 %v9266_v15  ;;  %1110 = vmatpush1.bf16.msra.mxu1 %v9267_v16  ;;  %v9301_v42 = vld [vmem:[#allocation3 + $0x1c8] ss:$36 sps:$4 sm:$0xff]   ;;  %v9307_v46 = vld [vmem:[#allocation3 + $0x180] ss:$36 sps:$4 sm:$0xff]   ;;  %v9310_v49 = vld [vmem:[#allocation3 + $0x130] ss:$36 sps:$4 sm:$0xff]  }
  0xf4   : > { %1070 = vmatprep.subr.bf16.mxu0 %v9268_v17  ;;  %1111 = vmatprep.subr.bf16.mxu1 %v9270_v18  ;;  %v9315_v48 = vld [vmem:[#allocation3 + $0x13c] ss:$36 sps:$4 sm:$0xff]   ;;  %v9318_v51 = vld [vmem:[#allocation3 + $0xec] ss:$36 sps:$4 sm:$0xff]   ;;  %v9321_v52 = vld [vmem:[#allocation3 + $0xf4] ss:$36 sps:$4 sm:$0xff]  }
  0xf5   : > { %v9313_v50 = vld [vmem:[#allocation3 + $0x138] ss:$36 sps:$4 sm:$0xff]   ;;  %v9316_v53 = vld [vmem:[#allocation3 + $0xe8] ss:$36 sps:$4 sm:$0xff]   ;;  %v9319_v54 = vld [vmem:[#allocation3 + $0xf0] ss:$36 sps:$4 sm:$0xff]  }
  0xf6   : > { %v9324_v55 = vld [vmem:[#allocation3 + $0xa4] ss:$36 sps:$4 sm:$0xff]   ;;  %v9327_v56 = vld [vmem:[#allocation3 + $0xac] ss:$36 sps:$4 sm:$0xff]   ;;  %v9330_v59 = vld [vmem:[#allocation3 + $0x5c] ss:$36 sps:$4 sm:$0xff]  }
  0xf7   : > { %1071 = vmatpush1.bf16.msra.mxu0 %v9272_v19  ;;  %1112 = vmatpush1.bf16.msra.mxu1 %v9273_v20  ;;  %v9322_v57 = vld [vmem:[#allocation3 + $0xa0] ss:$36 sps:$4 sm:$0xff]   ;;  %v9325_v58 = vld [vmem:[#allocation3 + $0xa8] ss:$36 sps:$4 sm:$0xff]   ;;  %v9328_v61 = vld [vmem:[#allocation3 + $0x58] ss:$36 sps:$4 sm:$0xff]  }
  0xf8   : > { %1072 = vmatprep.subr.bf16.mxu0 %v9274_v21  ;;  %1113 = vmatprep.subr.bf16.mxu1 %v9276_v22  ;;  %v9333_v60 = vld [vmem:[#allocation3 + $0x64] ss:$36 sps:$4 sm:$0xff]   ;;  %v9336_v63 = vld [vmem:[#allocation3 + $0x14] ss:$36 sps:$4 sm:$0xff]   ;;  %v9339_v0 = vld [vmem:[#allocation3 + $0x1c] ss:$36 sps:$4 sm:$0xff]  }
  0xf9   : > { %v9331_v62 = vld [vmem:[#allocation3 + $0x60] ss:$36 sps:$4 sm:$0xff]   ;;  %v9334_v1 = vld [vmem:[#allocation3 + $0x10] ss:$36 sps:$4 sm:$0xff]   ;;  %v9340_v3 = vld [vmem:[#allocation3 + $0x218] ss:$36 sps:$4 sm:$0xff]  }
  0xfa   : > { %v9341_v5 = vld [vmem:[#allocation3 + $0x1d0] ss:$36 sps:$4 sm:$0xff]   ;;  %v9342_v6 = vld [vmem:[#allocation3 + $0x188] ss:$36 sps:$4 sm:$0xff]   ;;  %v9343_v7 = vld [vmem:[#allocation3 + $0x140] ss:$36 sps:$4 sm:$0xff]  }
  0xfb   : > { %1073 = vmatpush1.bf16.msra.mxu0 %v9278_v23  ;;  %1114 = vmatpush1.bf16.msra.mxu1 %v9279_v24  ;;  %v9344_v8 = vld [vmem:[#allocation3 + $0xf8] ss:$36 sps:$4 sm:$0xff]   ;;  %v9345_v9 = vld [vmem:[#allocation3 + $0xb0] ss:$36 sps:$4 sm:$0xff]   ;;  %v9346_v10 = vld [vmem:[#allocation3 + $0x68] ss:$36 sps:$4 sm:$0xff]  }
  0xfc   : > { %1074 = vmatprep.subr.bf16.mxu0 %v9280_v25  ;;  %1115 = vmatprep.subr.bf16.mxu1 %v9282_v26  ;;  %v9347_v11 = vld [vmem:[#allocation3 + $0x20] ss:$36 sps:$4 sm:$0xff]   ;;  %v11105_v13 = vshrl.u32 %v649_v12, 7 }
  0xfd   : > { %v11113_v16 = vld [vmem:[#allocation6] sm:$0xff] }
  0xfe   : > { %v11108_v14 = vsub.s32 0, %v11105_v13  ;;  %v11111_v15 = vsub.s32 2, %v11105_v13  ;;  %v11116_v17 = vsub.s32 1, %v11105_v13  ;;  %v11119_v18 = vsub.s32 3, %v11105_v13 }
  0xff   : > { %1075 = vmatpush1.bf16.msra.mxu0 %v9284_v27  ;;  %1116 = vmatpush1.bf16.msra.mxu1 %v9285_v28 }
 0x100   : > { %1076 = vmatprep.subr.bf16.mxu0 %v9286_v29  ;;  %1117 = vmatprep.subr.bf16.mxu1 %v9288_v30  ;;  %v652_v19 = vrot.slane %v11113_v16, %v11108_v14  ;;  %v660_v20 = vrot.slane %v11113_v16, %v11111_v15  ;;  %v656_v21 = vrot.slane %v11113_v16, %v11116_v17 }
 0x101   : > { %v664_v22 = vrot.slane %v11113_v16, %v11119_v18 }
 0x103   : > { %1077 = vmatpush1.bf16.msra.mxu0 %v9290_v31  ;;  %1118 = vmatpush1.bf16.msra.mxu1 %v9291_v32 }
 0x104   : > { %1144 = vmatprep.subr.bf16.mxu0 %v9294_v34  ;;  %1185 = vmatprep.subr.bf16.mxu1 %v9297_v35 }
 0x106   : > { %1095 = vmatmul.mubr.bf16.vlgmr.msra.gmra.mxu0 %v11096_v36  ;;  %1136 = vmatmul.mubr.bf16.vlgmr.msra.gmra.mxu1 %v11096_v36 }
 0x107   : > { %1145 = vmatpush1.bf16.msra.mxu0 %v9292_v37  ;;  %1186 = vmatpush1.bf16.msra.mxu1 %v9295_v38 }
 0x108   : > { %1146 = vmatprep.subr.bf16.mxu0 %v9300_v39  ;;  %1187 = vmatprep.subr.bf16.mxu1 %v9303_v40 }
 0x109   : > { %1176 = vmatprep.mubr.bf16.mxu0 %v10760_v2  ;;  %1217 = vmatprep.mubr.bf16.mxu1 %v10760_v2  ;;  %v9337_v2 = vld [vmem:[#allocation3 + $0x18] ss:$36 sps:$4 sm:$0xff]  }
 0x10b   : > { %1147 = vmatpush1.bf16.msra.mxu0 %v9298_v41  ;;  %1188 = vmatpush1.bf16.msra.mxu1 %v9301_v42 }
 0x10c   : > { %1148 = vmatprep.subr.bf16.mxu0 %v9306_v43  ;;  %1189 = vmatprep.subr.bf16.mxu1 %v9309_v44 }
 0x10f   : > { %1149 = vmatpush1.bf16.msra.mxu0 %v9304_v45  ;;  %1190 = vmatpush1.bf16.msra.mxu1 %v9307_v46 }
 0x110   : > { %1150 = vmatprep.subr.bf16.mxu0 %v9312_v47  ;;  %1191 = vmatprep.subr.bf16.mxu1 %v9315_v48 }
 0x113   : > { %1151 = vmatpush1.bf16.msra.mxu0 %v9310_v49  ;;  %1192 = vmatpush1.bf16.msra.mxu1 %v9313_v50 }
 0x114   : > { %1152 = vmatprep.subr.bf16.mxu0 %v9318_v51  ;;  %1193 = vmatprep.subr.bf16.mxu1 %v9321_v52 }
 0x117   : > { %1153 = vmatpush1.bf16.msra.mxu0 %v9316_v53  ;;  %1194 = vmatpush1.bf16.msra.mxu1 %v9319_v54 }
 0x118   : > { %1154 = vmatprep.subr.bf16.mxu0 %v9324_v55  ;;  %1195 = vmatprep.subr.bf16.mxu1 %v9327_v56 }
 0x11b   : > { %1155 = vmatpush1.bf16.msra.mxu0 %v9322_v57  ;;  %1196 = vmatpush1.bf16.msra.mxu1 %v9325_v58 }
 0x11c   : > { %1156 = vmatprep.subr.bf16.mxu0 %v9330_v59  ;;  %1197 = vmatprep.subr.bf16.mxu1 %v9333_v60 }
 0x11f   : > { %1157 = vmatpush1.bf16.msra.mxu0 %v9328_v61  ;;  %1198 = vmatpush1.bf16.msra.mxu1 %v9331_v62 }
 0x120   : > { %1158 = vmatprep.subr.bf16.mxu0 %v9336_v63  ;;  %1199 = vmatprep.subr.bf16.mxu1 %v9339_v0 }
 0x123   : > { %1159 = vmatpush1.bf16.msra.mxu0 %v9334_v1  ;;  %1200 = vmatpush1.bf16.msra.mxu1 %v9337_v2 }
 0x124   : > { %9037 = vmatprep.subr.bf16.mxu0 %v10761_v4 }
 0x126   : > { %1177 = vmatmul.mubr.bf16.vlgmr.msra.gmra.mxu0 %v11096_v36  ;;  %1218 = vmatmul.mubr.bf16.vlgmr.msra.gmra.mxu1 %v11096_v36 }
 0x127   : > { %9038 = vmatpush3.bf16.msra.mxu0 %v9340_v3  ;;  %9053 = vmatprep.mubr.msk.bf16.mxu0 %vm10762_vm0, %v10761_v4 }
 0x128   : > { %9039 = vmatprep.subr.bf16.mxu0 %v10761_v4 }
 0x12b   : > { %9040 = vmatpush3.bf16.msra.mxu0 %v9341_v5 }
 0x12c   : > { %9041 = vmatprep.subr.bf16.mxu0 %v10761_v4 }
 0x12f   : > { %9042 = vmatpush3.bf16.msra.mxu0 %v9342_v6 }
 0x130   : > { %9043 = vmatprep.subr.bf16.mxu0 %v10761_v4 }
 0x133   : > { %9044 = vmatpush3.bf16.msra.mxu0 %v9343_v7 }
 0x134   : > { %9045 = vmatprep.subr.bf16.mxu0 %v10761_v4 }
 0x137   : > { %9046 = vmatpush3.bf16.msra.mxu0 %v9344_v8 }
 0x138   : > { %9047 = vmatprep.subr.bf16.mxu0 %v10761_v4 }
 0x13b   : > { %9048 = vmatpush3.bf16.msra.mxu0 %v9345_v9 }
 0x13c   : > { %9049 = vmatprep.subr.bf16.mxu0 %v10761_v4 }
 0x13f   : > { %9050 = vmatpush3.bf16.msra.mxu0 %v9346_v10 }
 0x140   : > { %9051 = vmatprep.subr.bf16.mxu0 %v10761_v4 }
 0x143   : > { %9052 = vmatpush3.bf16.msra.mxu0 %v9347_v11 }
 0x146   : > { %9054 = vmatmul.mubr.bf16.vlgmr.msra.gmra.mxu0 %v11096_v36 }
 0x1c6   : > { %v1096_v23 = vpop.f32.mrf.mxu0  ;;  %v1137_v24 = vpop.f32.mrf.mxu1 }
 0x1c7   : > { %v1097_v25 = vadd.f32 %v1096_v23, %v652_v19  ;;  %v1138_v26 = vadd.f32 %v1137_v24, %v660_v20  ;;  %v11146_v23 = vsub.s32 4, %v11105_v13  ;;  %v11149_v24 = vsub.s32 6, %v11105_v13 }
 0x1c8   : > { %v1098_v27 = vpop.f32.mrf.mxu0  ;;  %v1139_v28 = vpop.f32.mrf.mxu1 }
 0x1c9   : > { %v1266_v29 = vmax.f32 %v1097_v25, 0.0  ;;  %v1268_v30 = vmax.f32 %v1138_v26, 0.0  ;;  %v1099_v31 = vadd.f32 %v1098_v27, %v656_v21  ;;  %v1140_v32 = vadd.f32 %v1139_v28, %v664_v22 }
 0x1ca   : > { %v1100_v33 = vpop.f32.mrf.mxu0  ;;  %v1141_v34 = vpop.f32.mrf.mxu1 }
 0x1cb   : > { %v1279_v35 = vrot.slane %v1266_v29, 4  ;;  %v1291_v36 = vrot.slane %v1268_v30, 4  ;;  %v1267_v37 = vmax.f32 %v1099_v31, 0.0  ;;  %v1269_v38 = vmax.f32 %v1140_v32, 0.0 }
 0x1cc   : > { %v1101_v39 = vpop.f32.mrf.mxu0  ;;  %v1142_v40 = vpop.f32.mrf.mxu1 }
 0x1cd   : > { %v1280_v41 = vadd.f32 %v1279_v35, %v1266_v29  ;;  %v1292_v42 = vadd.f32 %v1291_v36, %v1268_v30  ;;  %v1285_v43 = vrot.slane %v1267_v37, 4  ;;  %v1297_v44 = vrot.slane %v1269_v38, 4 }
 0x1ce   : > { %v668_v35 = vrot.slane %v11113_v16, %v11146_v23  ;;  %v676_v36 = vrot.slane %v11113_v16, %v11149_v24 }
 0x1cf   : > { %v1281_v45 = vrot.slane %v1280_v41, 2  ;;  %v1293_v46 = vrot.slane %v1292_v42, 2  ;;  %v1286_v47 = vadd.f32 %v1285_v43, %v1267_v37  ;;  %v1298_v48 = vadd.f32 %v1297_v44, %v1269_v38 }
 0x1d1   : > { %v1282_v49 = vadd.f32 %v1281_v45, %v1280_v41  ;;  %v1294_v50 = vadd.f32 %v1293_v46, %v1292_v42  ;;  %v1287_v51 = vrot.slane %v1286_v47, 2  ;;  %v1299_v52 = vrot.slane %v1298_v48, 2 }
 0x1d3   : > { %v1283_v53 = vrot.slane %v1282_v49, 1  ;;  %v1295_v54 = vrot.slane %v1294_v50, 1  ;;  %v1288_v55 = vadd.f32 %v1287_v51, %v1286_v47  ;;  %v1300_v56 = vadd.f32 %v1299_v52, %v1298_v48 }
 0x1d5   : > { %v1284_v57 = vadd.f32 %v1283_v53, %v1282_v49  ;;  %v1296_v58 = vadd.f32 %v1295_v54, %v1294_v50  ;;  %v1289_v59 = vrot.slane %v1288_v55, 1  ;;  %v1301_v60 = vrot.slane %v1300_v56, 1 }
 0x1d7   : > { %v1334_v61 = vmul.f32 0.125, %v1284_v57  ;;  %v1336_v62 = vmul.f32 0.125, %v1296_v58  ;;  %v1290_v63 = vadd.f32 %v1289_v59, %v1288_v55  ;;  %v1302_v0 = vadd.f32 %v1301_v60, %v1300_v56 }
 0x1d9   : > { %v11129_v1 = vsub.f32 %v1266_v29, %v1334_v61  ;;  %v11131_v2 = vsub.f32 %v1268_v30, %v1336_v62  ;;  %v1335_v3 = vmul.f32 0.125, %v1290_v63  ;;  %v1337_v4 = vmul.f32 0.125, %v1302_v0 }
 0x1da   : > { %v11152_v29 = vsub.s32 5, %v11105_v13  ;;  %v11155_v30 = vsub.s32 7, %v11105_v13 }
 0x1db   : > { %v1352_v5 = vmul.f32 %v11129_v1, %v11129_v1  ;;  %v1354_v6 = vmul.f32 %v11131_v2, %v11131_v2  ;;  %v11137_v7 = vsub.f32 %v1267_v37, %v1335_v3  ;;  %v11139_v8 = vsub.f32 %v1269_v38, %v1337_v4 }
 0x1dc   : > { %v672_v13 = vrot.slane %v11113_v16, %v11152_v29  ;;  %v680_v43 = vrot.slane %v11113_v16, %v11155_v30 }
 0x1dd   : > { %v1361_v9 = vrot.slane %v1352_v5, 4  ;;  %v1373_v10 = vrot.slane %v1354_v6, 4  ;;  %v1353_v11 = vmul.f32 %v11137_v7, %v11137_v7  ;;  %v1355_v12 = vmul.f32 %v11139_v8, %v11139_v8 }
 0x1df   : > { %v1362_v19 = vadd.f32 %v1361_v9, %v1352_v5  ;;  %v1374_v20 = vadd.f32 %v1373_v10, %v1354_v6  ;;  %v1367_v21 = vrot.slane %v1353_v11, 4  ;;  %v1379_v22 = vrot.slane %v1355_v12, 4 }
 0x1e1   : > { %v1363_v25 = vrot.slane %v1362_v19, 2  ;;  %v1375_v26 = vrot.slane %v1374_v20, 2  ;;  %v1368_v27 = vadd.f32 %v1367_v21, %v1353_v11  ;;  %v1380_v28 = vadd.f32 %v1379_v22, %v1355_v12 }
 0x1e3   : > { %v1364_v31 = vadd.f32 %v1363_v25, %v1362_v19  ;;  %v1376_v32 = vadd.f32 %v1375_v26, %v1374_v20  ;;  %v1369_v33 = vrot.slane %v1368_v27, 2  ;;  %v1381_v34 = vrot.slane %v1380_v28, 2 }
 0x1e5   : > { %v1365_v37 = vrot.slane %v1364_v31, 1  ;;  %v1377_v38 = vrot.slane %v1376_v32, 1  ;;  %v1370_v39 = vadd.f32 %v1369_v33, %v1368_v27  ;;  %v1382_v40 = vadd.f32 %v1381_v34, %v1380_v28 }
 0x1e6   : > { %v1178_v41 = vpop.f32.mrf.mxu0  ;;  %v1219_v42 = vpop.f32.mrf.mxu1 }
 0x1e7   : > { %v1366_v44 = vadd.f32 %v1365_v37, %v1364_v31  ;;  %v1378_v45 = vadd.f32 %v1377_v38, %v1376_v32  ;;  %v1371_v46 = vrot.slane %v1370_v39, 1  ;;  %v1383_v47 = vrot.slane %v1382_v40, 1  ;;  %v11165_v38 = vld [vmem:[#allocation8] sm:$0xff] }
 0x1e8   : > { %v1179_v48 = vadd.f32 %v1178_v41, %v668_v35  ;;  %v1220_v49 = vadd.f32 %v1219_v42, %v676_v36  ;;  %v1180_v50 = vpop.f32.mrf.mxu0  ;;  %v1221_v51 = vpop.f32.mrf.mxu1 }
 0x1e9   : > { %v1415_v52 = vmul.f32 0.125, %v1366_v44  ;;  %v1417_v53 = vmul.f32 0.125, %v1378_v45  ;;  %v1372_v54 = vadd.f32 %v1371_v46, %v1370_v39  ;;  %v1384_v55 = vadd.f32 %v1383_v47, %v1382_v40  ;;  %v11167_v40 = vld [vmem:[#allocation9] sm:$0xff] }
 0x1ea   : > { %v1270_v56 = vmax.f32 %v1179_v48, 0.0  ;;  %v1272_v57 = vmax.f32 %v1220_v49, 0.0  ;;  %v1181_v58 = vadd.f32 %v1180_v50, %v672_v13  ;;  %v1222_v59 = vadd.f32 %v1221_v51, %v680_v43  ;;  %v1182_v60 = vpop.f32.mrf.mxu0  ;;  %v1223_v61 = vpop.f32.mrf.mxu1 }
 0x1eb   : > { %v1424_v62 = vadd.f32 1e-05, %v1415_v52  ;;  %v1426_v16 = vadd.f32 1e-05, %v1417_v53  ;;  %v1416_v63 = vmul.f32 0.125, %v1372_v54  ;;  %v1418_v0 = vmul.f32 0.125, %v1384_v55 }
 0x1ec   : > { %v1303_v3 = vrot.slane %v1270_v56, 4  ;;  %v1315_v4 = vrot.slane %v1272_v57, 4  ;;  %v1271_v5 = vmax.f32 %v1181_v58, 0.0  ;;  %v1273_v6 = vmax.f32 %v1222_v59, 0.0  ;;  %v1183_v9 = vpop.f32.mrf.mxu0  ;;  %v1224_v10 = vpop.f32.mrf.mxu1 }
 0x1ed   : > { %9348 = vrsqrt.f32 %v1424_v62  ;;  %v1425_v11 = vadd.f32 1e-05, %v1416_v63  ;;  %v1427_v12 = vadd.f32 1e-05, %v1418_v0  ;;  %v1456_v44 = vrot.slane %v11165_v38, %v11108_v14 }
 0x1ee   : > { %9350 = vrsqrt.f32 %v1426_v16  ;;  %v1304_v19 = vadd.f32 %v1303_v3, %v1270_v56  ;;  %v1316_v20 = vadd.f32 %v1315_v4, %v1272_v57  ;;  %v1309_v21 = vrot.slane %v1271_v5, 4 }
 0x1ef   : > { %9352 = vrsqrt.f32 %v1425_v11  ;;  %v1321_v22 = vrot.slane %v1273_v6, 4  ;;  %v1512_v48 = vrot.slane %v11167_v40, %v11108_v14  ;;  %v1464_v49 = vrot.slane %v11165_v38, %v11111_v15 }
 0x1f0   : > { %9354 = vrsqrt.f32 %v1427_v12  ;;  %v1305_v25 = vrot.slane %v1304_v19, 2  ;;  %v1317_v26 = vrot.slane %v1316_v20, 2  ;;  %v1310_v27 = vadd.f32 %v1309_v21, %v1271_v5 }
 0x1f1   : > { %v1322_v28 = vadd.f32 %v1321_v22, %v1273_v6  ;;  %v1520_v50 = vrot.slane %v11167_v40, %v11111_v15  ;;  %v1460_v53 = vrot.slane %v11165_v38, %v11116_v17  ;;  %v1516_v14 = vrot.slane %v11167_v40, %v11116_v17 }
 0x1f2   : > { %v1306_v31 = vadd.f32 %v1305_v25, %v1304_v19  ;;  %v1318_v32 = vadd.f32 %v1317_v26, %v1316_v20  ;;  %v1311_v33 = vrot.slane %v1310_v27, 2  ;;  %v1468_v61 = vrot.slane %v11165_v38, %v11119_v18 }
 0x1f3   : > { %v1323_v34 = vrot.slane %v1322_v28, 2  ;;  %v1524_v17 = vrot.slane %v11167_v40, %v11119_v18 }
 0x1f4   : > { %v1307_v35 = vrot.slane %v1306_v31, 1  ;;  %v1319_v36 = vrot.slane %v1318_v32, 1  ;;  %v1312_v37 = vadd.f32 %v1311_v33, %v1310_v27 }
 0x1f5   : > { %v1324_v39 = vadd.f32 %v1323_v34, %v1322_v28 }
 0x1f6   : > { %v1308_v41 = vadd.f32 %v1307_v35, %v1306_v31  ;;  %v1320_v42 = vadd.f32 %v1319_v36, %v1318_v32  ;;  %v1313_v13 = vrot.slane %v1312_v37, 1  ;;  %v8028_v35 = vld [vmem:[#allocation6 + $0x8] ss:$0 sm:$0xff] }
 0x1f7   : > { %v1325_v43 = vrot.slane %v1324_v39, 1 }
 0x1f8   : > { %v1338_v45 = vmul.f32 0.125, %v1308_v41  ;;  %v1340_v46 = vmul.f32 0.125, %v1320_v42  ;;  %v1314_v47 = vadd.f32 %v1313_v13, %v1312_v37 }
 0x1f9   : > { %v1326_v51 = vadd.f32 %v1325_v43, %v1324_v39 }
 0x1fa   : > { %v9349_v52 = vpop.eup %9348  ;;  %v11179_v54 = vsub.f32 %v1270_v56, %v1338_v45  ;;  %v11181_v55 = vsub.f32 %v1272_v57, %v1340_v46  ;;  %v1339_v58 = vmul.f32 0.125, %v1314_v47 }
 0x1fb   : > { %v9351_v59 = vpop.eup %9350  ;;  %v1442_v60 = vmul.f32 %v9349_v52, %v11129_v1  ;;  %v1341_v15 = vmul.f32 0.125, %v1326_v51 }
 0x1fc   : > { %v9353_v62 = vpop.eup %9352  ;;  %v1444_v16 = vmul.f32 %v9351_v59, %v11131_v2  ;;  %v1356_v56 = vmul.f32 %v11179_v54, %v11179_v54  ;;  %v1358_v57 = vmul.f32 %v11181_v55, %v11181_v55  ;;  %v11193_v63 = vsub.f32 %v1271_v5, %v1339_v58 }
 0x1fd   : > { %v9355_v0 = vpop.eup %9354  ;;  %v1498_v1 = vmul.f32 %v1456_v44, %v1442_v60  ;;  %v1443_v3 = vmul.f32 %v9353_v62, %v11137_v7  ;;  %v11198_v4 = vsub.f32 %v1273_v6, %v1341_v15 }
 0x1fe   : > { %v1500_v9 = vmul.f32 %v1464_v49, %v1444_v16  ;;  %v1445_v2 = vmul.f32 %v9355_v0, %v11139_v8  ;;  %v1385_v10 = vrot.slane %v1356_v56, 4  ;;  %v1397_v11 = vrot.slane %v1358_v57, 4 }
 0x1ff   : > { %v1554_v12 = vadd.f32 %v1512_v48, %v1498_v1  ;;  %v1499_v19 = vmul.f32 %v1460_v53, %v1443_v3  ;;  %v1357_v5 = vmul.f32 %v11193_v63, %v11193_v63  ;;  %v1359_v20 = vmul.f32 %v11198_v4, %v11198_v4 }
 0x200   : > { %v1556_v21 = vadd.f32 %v1520_v50, %v1500_v9  ;;  %v1501_v7 = vmul.f32 %v1468_v61, %v1445_v2  ;;  %v1386_v22 = vadd.f32 %v1385_v10, %v1356_v56  ;;  %v1398_v25 = vadd.f32 %v1397_v11, %v1358_v57 }
 0x201   : > { %1563 = vst [vmem:[#allocation2 + $0x30] sm:$0xff] %v1554_v12  ;;  %v1555_v18 = vadd.f32 %v1516_v14, %v1499_v19  ;;  %v1391_v6 = vrot.slane %v1357_v5, 4  ;;  %v1403_v26 = vrot.slane %v1359_v20, 4  ;;  %v1472_v11 = vrot.slane %v11165_v38, %v11146_v23 }
 0x202   : > { %1565 = vst [vmem:[#allocation2 + $0x18] sm:$0xff] %v1556_v21  ;;  %v1557_v8 = vadd.f32 %v1524_v17, %v1501_v7  ;;  %v1387_v27 = vrot.slane %v1386_v22, 2  ;;  %v1399_v28 = vrot.slane %v1398_v25, 2  ;;  %v1480_v19 = vrot.slane %v11165_v38, %v11149_v24 }
 0x203   : > { %1564 = vst [vmem:[#allocation2] sm:$0xff] %v1555_v18  ;;  %v1392_v31 = vadd.f32 %v1391_v6, %v1357_v5  ;;  %v1404_v32 = vadd.f32 %v1403_v26, %v1359_v20  ;;  %v1528_v7 = vrot.slane %v11167_v40, %v11146_v23  ;;  %v1476_v18 = vrot.slane %v11165_v38, %v11152_v29 }
 0x204   : > { %1566 = vst [vmem:[#allocation2 + $0x10] sm:$0xff] %v1557_v8  ;;  %v1388_v33 = vadd.f32 %v1387_v27, %v1386_v22  ;;  %v1400_v34 = vadd.f32 %v1399_v28, %v1398_v25  ;;  %v1536_v25 = vrot.slane %v11167_v40, %v11149_v24  ;;  %v1484_v27 = vrot.slane %v11165_v38, %v11155_v30 }
 0x205   : > { %v1393_v36 = vrot.slane %v1392_v31, 2  ;;  %v1405_v37 = vrot.slane %v1404_v32, 2  ;;  %v1532_v23 = vrot.slane %v11167_v40, %v11152_v29 }
 0x206   : > { %v1389_v39 = vrot.slane %v1388_v33, 1  ;;  %v1401_v41 = vrot.slane %v1400_v34, 1  ;;  %v1260_v42 = vpop.f32.mrf.mxu0 }
 0x207   : > { %v1394_v13 = vadd.f32 %v1393_v36, %v1392_v31  ;;  %v1406_v43 = vadd.f32 %v1405_v37, %v1404_v32  ;;  %v1261_v44 = vadd.f32 %v8028_v35, %v1260_v42 }
 0x208   : > { %v1390_v45 = vadd.f32 %v1389_v39, %v1388_v33  ;;  %v1402_v46 = vadd.f32 %v1401_v41, %v1400_v34  ;;  %v9055_v47 = vpop.f32.mrf.mxu0  ;;  %v1540_v33 = vrot.slane %v11167_v40, %v11155_v30  ;;  %v8102_v30 = vld [vmem:[#allocation9 + $0x8] ss:$0 sm:$0xff] }
 0x209   : > { %v1395_v48 = vrot.slane %v1394_v13, 1  ;;  %v1407_v49 = vrot.slane %v1406_v43, 1  ;;  %v1274_v50 = vmax.f32 %v1261_v44, 0.0 }
 0x20a   : > { %v1419_v51 = vmul.f32 0.125, %v1390_v45  ;;  %v1421_v52 = vmul.f32 0.125, %v1402_v46  ;;  %v1263_v53 = vpop.f32.mrf.mxu0 }
 0x20b   : > { %v1396_v58 = vadd.f32 %v1395_v48, %v1394_v13  ;;  %v1408_v59 = vadd.f32 %v1407_v49, %v1406_v43  ;;  %v1327_v60 = vrot.slane %v1274_v50, 4  ;;  %v8101_v43 = vld [vmem:[#allocation8 + $0x8] ss:$0 sm:$0xff] }
 0x20c   : > { %v1428_v14 = vadd.f32 1e-05, %v1419_v51  ;;  %v1430_v61 = vadd.f32 1e-05, %v1421_v52  ;;  %v9056_v15 = vpop.f32.mrf.mxu0 }
 0x20d   : > { %v1420_v62 = vmul.f32 0.125, %v1396_v58  ;;  %v1422_v16 = vmul.f32 0.125, %v1408_v59  ;;  %v1328_v56 = vadd.f32 %v1327_v60, %v1274_v50 }
 0x20e   : > { %9356 = vrsqrt.f32 %v1428_v14 }
 0x20f   : > { %9358 = vrsqrt.f32 %v1430_v61  ;;  %v1429_v57 = vadd.f32 1e-05, %v1420_v62  ;;  %v1431_v0 = vadd.f32 1e-05, %v1422_v16  ;;  %v1329_v1 = vrot.slane %v1328_v56, 2 }
 0x211   : > { %9360 = vrsqrt.f32 %v1429_v57  ;;  %v1330_v3 = vadd.f32 %v1329_v1, %v1328_v56 }
 0x212   : > { %9362 = vrsqrt.f32 %v1431_v0 }
 0x213   : > { %v1331_v17 = vrot.slane %v1330_v3, 1 }
 0x215   : > { %v1332_v9 = vadd.f32 %v1331_v17, %v1330_v3 }
 0x217   : > { %v1342_v2 = vmul.f32 0.125, %v1332_v9 }
 0x219   : > { %v1351_v10 = vsub.f32 %v1274_v50, %v1342_v2 }
 0x21b   : > { %v9357_v12 = vpop.eup %9356  ;;  %v1360_v5 = vmul.f32 %v1351_v10, %v1351_v10 }
 0x21c   : > { %v9359_v20 = vpop.eup %9358  ;;  %v1446_v21 = vmul.f32 %v9357_v12, %v11179_v54 }
 0x21d   : > { %v1448_v22 = vmul.f32 %v9359_v20, %v11181_v55  ;;  %v1409_v6 = vrot.slane %v1360_v5, 4 }
 0x21e   : > { %v9361_v26 = vpop.eup %9360  ;;  %v1502_v8 = vmul.f32 %v1472_v11, %v1446_v21 }
 0x21f   : > { %v9363_v28 = vpop.eup %9362  ;;  %v1504_v31 = vmul.f32 %v1480_v19, %v1448_v22  ;;  %v1447_v54 = vmul.f32 %v9361_v26, %v11193_v63  ;;  %v1410_v55 = vadd.f32 %v1409_v6, %v1360_v5 }
 0x220   : > { %v1558_v32 = vadd.f32 %v1528_v7, %v1502_v8  ;;  %v1449_v24 = vmul.f32 %v9363_v28, %v11198_v4 }
 0x221   : > { %v1560_v34 = vadd.f32 %v1536_v25, %v1504_v31  ;;  %v1503_v35 = vmul.f32 %v1476_v18, %v1447_v54  ;;  %v1411_v36 = vrot.slane %v1410_v55, 2 }
 0x222   : > { %1567 = vst [vmem:[#allocation2 + $0x20] sm:$0xff] %v1558_v32  ;;  %v1505_v37 = vmul.f32 %v1484_v27, %v1449_v24 }
 0x223   : > { %1569 = vst [vmem:[#allocation2 + $0x40] sm:$0xff] %v1560_v34  ;;  %v1559_v38 = vadd.f32 %v1532_v23, %v1503_v35  ;;  %v1412_v39 = vadd.f32 %v1411_v36, %v1410_v55 }
 0x224   : > { %v1561_v41 = vadd.f32 %v1540_v33, %v1505_v37 }
 0x225   : > { %1568 = vst [vmem:[#allocation2 + $0x28] sm:$0xff] %v1559_v38  ;;  %v1413_v63 = vrot.slane %v1412_v39, 1 }
 0x226   : > { %1570 = vst [vmem:[#allocation2 + $0x38] sm:$0xff] %v1561_v41 }
 0x227   : > { %v1414_v29 = vadd.f32 %v1413_v63, %v1412_v39 }
 0x229   : > { %v1423_v42 = vmul.f32 0.125, %v1414_v29 }
 0x22b   : > { %v1432_v13 = vadd.f32 1e-05, %v1423_v42 }
 0x22d   : > { %9364 = vrsqrt.f32 %v1432_v13 }
 0x23a   : > { %v9365_v4 = vpop.eup %9364 }
 0x23b   : > { %v1450_v44 = vmul.f32 %v9365_v4, %v1351_v10 }
 0x23d   : > { %v1506_v40 = vmul.f32 %v8101_v43, %v1450_v44 }
 0x23f   : > { %v1562_v45 = vadd.f32 %v8102_v30, %v1506_v40 }
 0x241   : > { %1571 = vst [vmem:[#allocation2 + $0x8] sm:$0xff] %v1562_v45 }
 0x242 PF: > { %v9366_v46 = vld [vmem:[%s11067_s29 + $0x1fc] ss:$36 sps:$4 sm:$0xff]   ;;  %v9372_v50 = vld [vmem:[%s11067_s29 + $0x1b4] ss:$36 sps:$4 sm:$0xff]   ;;  %v9378_v58 = vld [vmem:[%s11067_s29 + $0x16c] ss:$36 sps:$4 sm:$0xff]  }
 0x243   : > { %v9368_v47 = vld [vmem:[%s11067_s29 + $0x67c] ss:$36 sps:$4 sm:$0xff]   ;;  %5622 = vmatprep.subr.bf16.mxu0 %v9366_v46  ;;  %v9374_v51 = vld [vmem:[%s11067_s29 + $0x634] ss:$36 sps:$4 sm:$0xff]   ;;  %v9380_v59 = vld [vmem:[%s11067_s29 + $0x5ec] ss:$36 sps:$4 sm:$0xff]  }
 0x244   : > { %v9370_v48 = vld [vmem:[%s11067_s29 + $0x1f8] ss:$36 sps:$4 sm:$0xff]   ;;  %5663 = vmatprep.subr.bf16.mxu1 %v9368_v47  ;;  %v9376_v52 = vld [vmem:[%s11067_s29 + $0x1b0] ss:$36 sps:$4 sm:$0xff]   ;;  %v9382_v60 = vld [vmem:[%s11067_s29 + $0x168] ss:$36 sps:$4 sm:$0xff]  }
 0x245   : > { %v9371_v49 = vld [vmem:[%s11067_s29 + $0x678] ss:$36 sps:$4 sm:$0xff]   ;;  %5623 = vmatpush1.bf16.msra.mxu0 %v9370_v48  ;;  %v9377_v53 = vld [vmem:[%s11067_s29 + $0x630] ss:$36 sps:$4 sm:$0xff]   ;;  %v9383_v14 = vld [vmem:[%s11067_s29 + $0x5e8] ss:$36 sps:$4 sm:$0xff]  }
 0x246   : > { %5664 = vmatpush1.bf16.msra.mxu1 %v9371_v49  ;;  %5624 = vmatprep.subr.bf16.mxu0 %v9372_v50  ;;  %v9384_v61 = vld [vmem:[%s11067_s29 + $0x124] ss:$36 sps:$4 sm:$0xff]   ;;  %v9390_v56 = vld [vmem:[%s11067_s29 + $0xdc] ss:$36 sps:$4 sm:$0xff]   ;;  %v9396_v3 = vld [vmem:[%s11067_s29 + $0x94] ss:$36 sps:$4 sm:$0xff]  }
 0x247   : > { %5665 = vmatprep.subr.bf16.mxu1 %v9374_v51  ;;  %v9386_v15 = vld [vmem:[%s11067_s29 + $0x5a4] ss:$36 sps:$4 sm:$0xff]   ;;  %v9392_v57 = vld [vmem:[%s11067_s29 + $0x55c] ss:$36 sps:$4 sm:$0xff]   ;;  %v9398_v17 = vld [vmem:[%s11067_s29 + $0x514] ss:$36 sps:$4 sm:$0xff]  }
 0x248   : > { %v9388_v62 = vld [vmem:[%s11067_s29 + $0x120] ss:$36 sps:$4 sm:$0xff]   ;;  %v9394_v0 = vld [vmem:[%s11067_s29 + $0xd8] ss:$36 sps:$4 sm:$0xff]   ;;  %v9400_v9 = vld [vmem:[%s11067_s29 + $0x90] ss:$36 sps:$4 sm:$0xff]  }
 0x249   : > { %5625 = vmatpush1.bf16.msra.mxu0 %v9376_v52  ;;  %v9389_v16 = vld [vmem:[%s11067_s29 + $0x5a0] ss:$36 sps:$4 sm:$0xff]   ;;  %v9395_v1 = vld [vmem:[%s11067_s29 + $0x558] ss:$36 sps:$4 sm:$0xff]   ;;  %v9401_v2 = vld [vmem:[%s11067_s29 + $0x510] ss:$36 sps:$4 sm:$0xff]  }
 0x24a   : > { %5666 = vmatpush1.bf16.msra.mxu1 %v9377_v53  ;;  %5626 = vmatprep.subr.bf16.mxu0 %v9378_v58  ;;  %v9402_v10 = vld [vmem:[%s11067_s29 + $0x4c] ss:$36 sps:$4 sm:$0xff]   ;;  %v9408_v5 = vld [vmem:[%s11067_s29 + $0x4] ss:$36 sps:$4 sm:$0xff]   ;;  %v9414_v22 = vld [vmem:[%s11067_s29 + $0x43c] ss:$36 sps:$4 sm:$0xff]  }
 0x24b   : > { %5667 = vmatprep.subr.bf16.mxu1 %v9380_v59  ;;  %v9404_v11 = vld [vmem:[%s11067_s29 + $0x4cc] ss:$36 sps:$4 sm:$0xff]   ;;  %v9410_v20 = vld [vmem:[%s11067_s29 + $0x484] ss:$36 sps:$4 sm:$0xff]   ;;  %v9416_v25 = vld [vmem:[%s11067_s29 + $0x8bc] ss:$36 sps:$4 sm:$0xff]  }
 0x24c   : > { %v9406_v12 = vld [vmem:[%s11067_s29 + $0x48] ss:$36 sps:$4 sm:$0xff]   ;;  %v9412_v21 = vld [vmem:[%s11067_s29] ss:$36 sps:$4 sm:$0xff]   ;;  %v9418_v18 = vld [vmem:[%s11067_s29 + $0x438] ss:$36 sps:$4 sm:$0xff]  }
 0x24d   : > { %5627 = vmatpush1.bf16.msra.mxu0 %v9382_v60  ;;  %v9407_v19 = vld [vmem:[%s11067_s29 + $0x4c8] ss:$36 sps:$4 sm:$0xff]   ;;  %v9413_v7 = vld [vmem:[%s11067_s29 + $0x480] ss:$36 sps:$4 sm:$0xff]   ;;  %v9419_v6 = vld [vmem:[%s11067_s29 + $0x8b8] ss:$36 sps:$4 sm:$0xff]  }
 0x24e   : > { %5668 = vmatpush1.bf16.msra.mxu1 %v9383_v14  ;;  %5628 = vmatprep.subr.bf16.mxu0 %v9384_v61  ;;  %v9420_v26 = vld [vmem:[%s11067_s29 + $0x3f4] ss:$36 sps:$4 sm:$0xff]   ;;  %v9426_v31 = vld [vmem:[%s11067_s29 + $0x3ac] ss:$36 sps:$4 sm:$0xff]   ;;  %v9432_v32 = vld [vmem:[%s11067_s29 + $0x364] ss:$36 sps:$4 sm:$0xff]  }
 0x24f   : > { %5669 = vmatprep.subr.bf16.mxu1 %v9386_v15  ;;  %v9422_v8 = vld [vmem:[%s11067_s29 + $0x874] ss:$36 sps:$4 sm:$0xff]   ;;  %v9428_v54 = vld [vmem:[%s11067_s29 + $0x82c] ss:$36 sps:$4 sm:$0xff]   ;;  %v9434_v24 = vld [vmem:[%s11067_s29 + $0x7e4] ss:$36 sps:$4 sm:$0xff]  }
 0x250   : > { %v9424_v27 = vld [vmem:[%s11067_s29 + $0x3f0] ss:$36 sps:$4 sm:$0xff]   ;;  %v9430_v23 = vld [vmem:[%s11067_s29 + $0x3a8] ss:$36 sps:$4 sm:$0xff]   ;;  %v9436_v34 = vld [vmem:[%s11067_s29 + $0x360] ss:$36 sps:$4 sm:$0xff]  }
 0x251   : > { %5629 = vmatpush1.bf16.msra.mxu0 %v9388_v62  ;;  %v9425_v28 = vld [vmem:[%s11067_s29 + $0x870] ss:$36 sps:$4 sm:$0xff]   ;;  %v9431_v55 = vld [vmem:[%s11067_s29 + $0x828] ss:$36 sps:$4 sm:$0xff]   ;;  %v9437_v35 = vld [vmem:[%s11067_s29 + $0x7e0] ss:$36 sps:$4 sm:$0xff]  }
 0x252   : > { %5670 = vmatpush1.bf16.msra.mxu1 %v9389_v16  ;;  %5630 = vmatprep.subr.bf16.mxu0 %v9390_v56  ;;  %v1573_v33 = vld [vmem:[#allocation2] sm:$0xff]  ;;  %v1575_v37 = vld [vmem:[#allocation2 + $0x10] sm:$0xff]  ;;  %v9442_v63 = vld [vmem:[%s11067_s29 + $0x318] ss:$36 sps:$4 sm:$0xff]   ;;  %vm10765_vm1 = vmmov 0   ;;  %p12200_p10 = scmp.ne.s32.totalorder %s10850_s23, 0 }
 0x253   : > { %5671 = vmatprep.subr.bf16.mxu1 %v9392_v57  ;;  %v11273_v36 = vpack.c.bf16 %v1573_v33, %v1573_v33  ;;  %v9438_v38 = vld [vmem:[%s11067_s29 + $0x31c] ss:$36 sps:$4 sm:$0xff]   ;;  %v11276_v39 = vpack.c.bf16 %v1575_v37, %v1575_v37  ;;  %v9444_v42 = vld [vmem:[%s11067_s29 + $0x2d4] ss:$36 sps:$4 sm:$0xff]   ;;  %v9450_v44 = vld [vmem:[%s11067_s29 + $0x28c] ss:$36 sps:$4 sm:$0xff]  }
 0x254   : > { %v9440_v41 = vld [vmem:[%s11067_s29 + $0x79c] ss:$36 sps:$4 sm:$0xff]   ;;  %v9446_v13 = vld [vmem:[%s11067_s29 + $0x754] ss:$36 sps:$4 sm:$0xff]   ;;  %v9452_v30 = vld [vmem:[%s11067_s29 + $0x70c] ss:$36 sps:$4 sm:$0xff]  }
 0x255   : > { %5631 = vmatpush1.bf16.msra.mxu0 %v9394_v0  ;;  %5654 = vmatprep.mubr.bf16.mxu0 %v11273_v36  ;;  %v9443_v29 = vld [vmem:[%s11067_s29 + $0x798] ss:$36 sps:$4 sm:$0xff]   ;;  %v9448_v4 = vld [vmem:[%s11067_s29 + $0x2d0] ss:$36 sps:$4 sm:$0xff]   ;;  %v9454_v40 = vld [vmem:[%s11067_s29 + $0x288] ss:$36 sps:$4 sm:$0xff]  }
 0x256   : > { %5672 = vmatpush1.bf16.msra.mxu1 %v9395_v1  ;;  %5632 = vmatprep.subr.bf16.mxu0 %v9396_v3  ;;  %v9449_v43 = vld [vmem:[%s11067_s29 + $0x750] ss:$36 sps:$4 sm:$0xff]   ;;  %v9455_v45 = vld [vmem:[%s11067_s29 + $0x708] ss:$36 sps:$4 sm:$0xff]   ;;  %v9460_v48 = vld [vmem:[%s11067_s29 + $0x240] ss:$36 sps:$4 sm:$0xff]  }
 0x257   : > { %5673 = vmatprep.subr.bf16.mxu1 %v9398_v17  ;;  %5695 = vmatprep.mubr.bf16.mxu1 %v11276_v39  ;;  %v9456_v46 = vld [vmem:[%s11067_s29 + $0x244] ss:$36 sps:$4 sm:$0xff]   ;;  %v9464_v52 = vld [vmem:[%s11067_s29 + $0xafc] ss:$36 sps:$4 sm:$0xff]   ;;  %v9470_v61 = vld [vmem:[%s11067_s29 + $0xab4] ss:$36 sps:$4 sm:$0xff]  }
 0x258   : > { %v9458_v47 = vld [vmem:[%s11067_s29 + $0x6c4] ss:$36 sps:$4 sm:$0xff]   ;;  %v9467_v53 = vld [vmem:[%s11067_s29 + $0xf7c] ss:$36 sps:$4 sm:$0xff]   ;;  %v9473_v15 = vld [vmem:[%s11067_s29 + $0xf34] ss:$36 sps:$4 sm:$0xff]  }
 0x259   : > { %5633 = vmatpush1.bf16.msra.mxu0 %v9400_v9  ;;  %v9461_v49 = vld [vmem:[%s11067_s29 + $0x6c0] ss:$36 sps:$4 sm:$0xff]   ;;  %v1574_v51 = vld [vmem:[#allocation2 + $0x18] sm:$0xff]  ;;  %v9462_v60 = vld [vmem:[%s11067_s29 + $0xaf8] ss:$36 sps:$4 sm:$0xff]  }
 0x25a   : > { %5674 = vmatpush1.bf16.msra.mxu1 %v9401_v2  ;;  %5634 = vmatprep.subr.bf16.mxu0 %v9402_v10  ;;  %v1572_v50 = vld [vmem:[#allocation2 + $0x30] sm:$0xff]  ;;  %v11299_v59 = vpack.c.bf16 %v1574_v51, %v1574_v51  ;;  %v9465_v14 = vld [vmem:[%s11067_s29 + $0xf78] ss:$36 sps:$4 sm:$0xff]   ;;  %v9468_v62 = vld [vmem:[%s11067_s29 + $0xab0] ss:$36 sps:$4 sm:$0xff]  }
 0x25b   : > { %5675 = vmatprep.subr.bf16.mxu1 %v9404_v11  ;;  %v11297_v58 = vpack.c.bf16 %v1572_v50, %v1572_v50  ;;  %v9471_v16 = vld [vmem:[%s11067_s29 + $0xf30] ss:$36 sps:$4 sm:$0xff]   ;;  %v9474_v0 = vld [vmem:[%s11067_s29 + $0xa68] ss:$36 sps:$4 sm:$0xff]   ;;  %v9480_v9 = vld [vmem:[%s11067_s29 + $0xa20] ss:$36 sps:$4 sm:$0xff]  }
 0x25c   : > { %v9476_v56 = vld [vmem:[%s11067_s29 + $0xa6c] ss:$36 sps:$4 sm:$0xff]   ;;  %v9482_v3 = vld [vmem:[%s11067_s29 + $0xa24] ss:$36 sps:$4 sm:$0xff]   ;;  %v9488_v10 = vld [vmem:[%s11067_s29 + $0x9dc] ss:$36 sps:$4 sm:$0xff]  }
 0x25d   : > { %5635 = vmatpush1.bf16.msra.mxu0 %v9406_v12  ;;  %v9479_v57 = vld [vmem:[%s11067_s29 + $0xeec] ss:$36 sps:$4 sm:$0xff]   ;;  %v9485_v17 = vld [vmem:[%s11067_s29 + $0xea4] ss:$36 sps:$4 sm:$0xff]   ;;  %v9491_v11 = vld [vmem:[%s11067_s29 + $0xe5c] ss:$36 sps:$4 sm:$0xff]  }
 0x25e   : > { %5676 = vmatpush1.bf16.msra.mxu1 %v9407_v19  ;;  %5636 = vmatprep.subr.bf16.mxu0 %v9408_v5  ;;  %v9477_v1 = vld [vmem:[%s11067_s29 + $0xee8] ss:$36 sps:$4 sm:$0xff]   ;;  %v9483_v2 = vld [vmem:[%s11067_s29 + $0xea0] ss:$36 sps:$4 sm:$0xff]   ;;  %v9486_v12 = vld [vmem:[%s11067_s29 + $0x9d8] ss:$36 sps:$4 sm:$0xff]  }
 0x25f   : > { %5677 = vmatprep.subr.bf16.mxu1 %v9410_v20  ;;  %v9489_v19 = vld [vmem:[%s11067_s29 + $0xe58] ss:$36 sps:$4 sm:$0xff]   ;;  %v9540_v50 = vld [vmem:[%s11067_s29 + $0xbd0] ss:$36 sps:$4 sm:$0xff]  }
 0x260   : > { %v9494_v5 = vld [vmem:[%s11067_s29 + $0x994] ss:$36 sps:$4 sm:$0xff]  }
 0x261   : > { %5637 = vmatpush1.bf16.msra.mxu0 %v9412_v21  ;;  %v9497_v20 = vld [vmem:[%s11067_s29 + $0xe14] ss:$36 sps:$4 sm:$0xff]  }
 0x262   : > { %5678 = vmatpush1.bf16.msra.mxu1 %v9413_v7  ;;  %5638 = vmatprep.subr.bf16.mxu0 %v9414_v22  ;;  %v9492_v21 = vld [vmem:[%s11067_s29 + $0x990] ss:$36 sps:$4 sm:$0xff]   ;;  %v9510_v33 = vld [vmem:[%s11067_s29 + $0xd38] ss:$36 sps:$4 sm:$0xff]  }
 0x263   : > { %5679 = vmatprep.subr.bf16.mxu1 %v9416_v25  ;;  %v9495_v7 = vld [vmem:[%s11067_s29 + $0xe10] ss:$36 sps:$4 sm:$0xff]  }
 0x264   : > { %v9500_v22 = vld [vmem:[%s11067_s29 + $0x94c] ss:$36 sps:$4 sm:$0xff]   ;;  %v9521_v37 = vld [vmem:[%s11067_s29 + $0x1174] ss:$36 sps:$4 sm:$0xff]  }
 0x265   : > { %5639 = vmatpush2.bf16.msra.mxu0 %v9418_v18  ;;  %v9503_v25 = vld [vmem:[%s11067_s29 + $0xdcc] ss:$36 sps:$4 sm:$0xff]   ;;  %v1577_v18 = vld [vmem:[#allocation2 + $0x28] sm:$0xff] }
 0x266   : > { %5680 = vmatpush2.bf16.msra.mxu1 %v9419_v6  ;;  %5640 = vmatprep.subr.bf16.mxu0 %v9420_v26  ;;  %v9498_v6 = vld [vmem:[%s11067_s29 + $0x948] ss:$36 sps:$4 sm:$0xff]   ;;  %v11328_v26 = vpack.c.bf16 %v1577_v18, %v1577_v18  ;;  %v9543_v51 = vld [vmem:[%s11067_s29 + $0x1050] ss:$36 sps:$4 sm:$0xff]  }
 0x267   : > { %5681 = vmatprep.subr.bf16.mxu1 %v9422_v8  ;;  %v1579_v8 = vld [vmem:[#allocation2 + $0x38] sm:$0xff] }
 0x268   : > { %v9581_v18 = vld [vmem:[%s11067_s29 + $0x12c] ss:$36 sps:$4 sm:$0xff]  }
 0x269   : > { %5641 = vmatpush2.bf16.msra.mxu0 %v9424_v27  ;;  %v9501_v27 = vld [vmem:[%s11067_s29 + $0xdc8] ss:$36 sps:$4 sm:$0xff]  }
 0x26a   : > { %5682 = vmatpush2.bf16.msra.mxu1 %v9425_v28  ;;  %5642 = vmatprep.subr.bf16.mxu0 %v9426_v31  ;;  %v9506_v28 = vld [vmem:[%s11067_s29 + $0x904] ss:$36 sps:$4 sm:$0xff]   ;;  %v11332_v31 = vpack.c.bf16 %v1579_v8, %v1579_v8 }
 0x26b   : > { %5683 = vmatprep.subr.bf16.mxu1 %v9428_v54  ;;  %v9509_v54 = vld [vmem:[%s11067_s29 + $0xd84] ss:$36 sps:$4 sm:$0xff]  }
 0x26c   : > { %v9579_v8 = vld [vmem:[%s11067_s29 + $0x128] ss:$36 sps:$4 sm:$0xff]  }
 0x26d   : > { %5643 = vmatpush2.bf16.msra.mxu0 %v9430_v23  ;;  %v9504_v23 = vld [vmem:[%s11067_s29 + $0x900] ss:$36 sps:$4 sm:$0xff]  }
 0x26e   : > { %5684 = vmatpush2.bf16.msra.mxu1 %v9431_v55  ;;  %5644 = vmatprep.subr.bf16.mxu0 %v9432_v32  ;;  %v9507_v55 = vld [vmem:[%s11067_s29 + $0xd80] ss:$36 sps:$4 sm:$0xff]  }
 0x26f   : > { %5685 = vmatprep.subr.bf16.mxu1 %v9434_v24  ;;  %v9512_v32 = vld [vmem:[%s11067_s29 + $0xd3c] ss:$36 sps:$4 sm:$0xff]  }
 0x270   : > { %v9515_v24 = vld [vmem:[%s11067_s29 + $0x11bc] ss:$36 sps:$4 sm:$0xff]  }
 0x271   : > { %5645 = vmatpush2.bf16.msra.mxu0 %v9436_v34  ;;  %v9513_v34 = vld [vmem:[%s11067_s29 + $0x11b8] ss:$36 sps:$4 sm:$0xff]  }
 0x272   : > { %5686 = vmatpush2.bf16.msra.mxu1 %v9437_v35  ;;  %5646 = vmatprep.subr.bf16.mxu0 %v9438_v38  ;;  %v9518_v35 = vld [vmem:[%s11067_s29 + $0xcf4] ss:$36 sps:$4 sm:$0xff]  }
 0x273   : > { %5687 = vmatprep.subr.bf16.mxu1 %v9440_v41  ;;  %v9516_v38 = vld [vmem:[%s11067_s29 + $0xcf0] ss:$36 sps:$4 sm:$0xff]  }
 0x274   : > { %v9519_v41 = vld [vmem:[%s11067_s29 + $0x1170] ss:$36 sps:$4 sm:$0xff]  }
 0x275   : > { %5647 = vmatpush2.bf16.msra.mxu0 %v9442_v63  ;;  %v9524_v63 = vld [vmem:[%s11067_s29 + $0xcac] ss:$36 sps:$4 sm:$0xff]  }
 0x276   : > { %5688 = vmatpush2.bf16.msra.mxu1 %v9443_v29  ;;  %5648 = vmatprep.subr.bf16.mxu0 %v9444_v42  ;;  %v9527_v29 = vld [vmem:[%s11067_s29 + $0x112c] ss:$36 sps:$4 sm:$0xff]  }
 0x277   : > { %5689 = vmatprep.subr.bf16.mxu1 %v9446_v13  ;;  %v9522_v42 = vld [vmem:[%s11067_s29 + $0xca8] ss:$36 sps:$4 sm:$0xff]  }
 0x278   : > { %v9525_v13 = vld [vmem:[%s11067_s29 + $0x1128] ss:$36 sps:$4 sm:$0xff]  }
 0x279   : > { %5649 = vmatpush2.bf16.msra.mxu0 %v9448_v4  ;;  %v9530_v4 = vld [vmem:[%s11067_s29 + $0xc64] ss:$36 sps:$4 sm:$0xff]  }
 0x27a   : > { %5690 = vmatpush2.bf16.msra.mxu1 %v9449_v43  ;;  %5650 = vmatprep.subr.bf16.mxu0 %v9450_v44  ;;  %v9533_v43 = vld [vmem:[%s11067_s29 + $0x10e4] ss:$36 sps:$4 sm:$0xff]  }
 0x27b   : > { %5691 = vmatprep.subr.bf16.mxu1 %v9452_v30  ;;  %v9528_v44 = vld [vmem:[%s11067_s29 + $0xc60] ss:$36 sps:$4 sm:$0xff]  }
 0x27c   : > { %v9531_v30 = vld [vmem:[%s11067_s29 + $0x10e0] ss:$36 sps:$4 sm:$0xff]  }
 0x27d   : > { %5651 = vmatpush2.bf16.msra.mxu0 %v9454_v40  ;;  %v9536_v40 = vld [vmem:[%s11067_s29 + $0xc1c] ss:$36 sps:$4 sm:$0xff]  }
 0x27e   : > { %5692 = vmatpush2.bf16.msra.mxu1 %v9455_v45  ;;  %5652 = vmatprep.subr.bf16.mxu0 %v9456_v46  ;;  %v9539_v45 = vld [vmem:[%s11067_s29 + $0x109c] ss:$36 sps:$4 sm:$0xff]  }
 0x27f   : > { %5693 = vmatprep.subr.bf16.mxu1 %v9458_v47  ;;  %v9534_v46 = vld [vmem:[%s11067_s29 + $0xc18] ss:$36 sps:$4 sm:$0xff]  }
 0x280   : > { %v9537_v47 = vld [vmem:[%s11067_s29 + $0x1098] ss:$36 sps:$4 sm:$0xff]  }
 0x281   : > { %5653 = vmatpush2.bf16.msra.mxu0 %v9460_v48  ;;  %v9542_v48 = vld [vmem:[%s11067_s29 + $0xbd4] ss:$36 sps:$4 sm:$0xff]  }
 0x282   : > { %5694 = vmatpush2.bf16.msra.mxu1 %v9461_v49  ;;  %5704 = vmatprep.subr.bf16.mxu0 %v9464_v52  ;;  %v9545_v49 = vld [vmem:[%s11067_s29 + $0x1054] ss:$36 sps:$4 sm:$0xff]   ;;  %v9548_v52 = vld [vmem:[%s11067_s29 + $0xb8c] ss:$36 sps:$4 sm:$0xff]  }
 0x283   : > { %5745 = vmatprep.subr.bf16.mxu1 %v9467_v53  ;;  %v9551_v53 = vld [vmem:[%s11067_s29 + $0x100c] ss:$36 sps:$4 sm:$0xff]  }
 0x284   : > { %5655 = vmatmul.mubr.bf16.vlgmr.msra.gmra.mxu0 %v11297_v58 }
 0x285   : > { %5696 = vmatmul.mubr.bf16.vlgmr.msra.gmra.mxu1 %v11299_v59  ;;  %5705 = vmatpush1.bf16.msra.mxu0 %v9462_v60  ;;  %v9546_v60 = vld [vmem:[%s11067_s29 + $0xb88] ss:$36 sps:$4 sm:$0xff]  }
 0x286   : > { %5746 = vmatpush1.bf16.msra.mxu1 %v9465_v14  ;;  %5706 = vmatprep.subr.bf16.mxu0 %v9470_v61  ;;  %v9549_v14 = vld [vmem:[%s11067_s29 + $0x1008] ss:$36 sps:$4 sm:$0xff]  }
 0x287   : > { %5747 = vmatprep.subr.bf16.mxu1 %v9473_v15  ;;  %5736 = vmatprep.mubr.bf16.mxu0 %v11328_v26  ;;  %v9554_v61 = vld [vmem:[%s11067_s29 + $0xb44] ss:$36 sps:$4 sm:$0xff]  }
 0x288   : > { %5777 = vmatprep.mubr.bf16.mxu1 %v11332_v31  ;;  %v9557_v15 = vld [vmem:[%s11067_s29 + $0xfc4] ss:$36 sps:$4 sm:$0xff]  }
 0x289   : > { %5707 = vmatpush1.bf16.msra.mxu0 %v9468_v62  ;;  %v9552_v62 = vld [vmem:[%s11067_s29 + $0xb40] ss:$36 sps:$4 sm:$0xff]  }
 0x28a   : > { %5748 = vmatpush1.bf16.msra.mxu1 %v9471_v16  ;;  %5708 = vmatprep.subr.bf16.mxu0 %v9476_v56  ;;  %v9555_v16 = vld [vmem:[%s11067_s29 + $0xfc0] ss:$36 sps:$4 sm:$0xff]   ;;  %v1576_v56 = vld [vmem:[#allocation2 + $0x20] sm:$0xff] }
 0x28b   : > { %5749 = vmatprep.subr.bf16.mxu1 %v9479_v57  ;;  %v1578_v57 = vld [vmem:[#allocation2 + $0x40] sm:$0xff] }
 0x28d   : > { %5709 = vmatpush1.bf16.msra.mxu0 %v9474_v0  ;;  %v9560_v0 = vld [vmem:[%s11067_s29 + $0x13fc] ss:$36 sps:$4 sm:$0xff]  }
 0x28e   : > { %5750 = vmatpush1.bf16.msra.mxu1 %v9477_v1  ;;  %5710 = vmatprep.subr.bf16.mxu0 %v9482_v3  ;;  %v9563_v1 = vld [vmem:[%s11067_s29 + $0x204] ss:$36 sps:$4 sm:$0xff]   ;;  %v11373_v3 = vpack.c.bf16 %v1576_v56, %v1576_v56 }
 0x28f   : > { %5751 = vmatprep.subr.bf16.mxu1 %v9485_v17  ;;  %v9558_v17 = vld [vmem:[%s11067_s29 + $0x13f8] ss:$36 sps:$4 sm:$0xff]   ;;  %v9633_v56 = vld [vmem:[%s11067_s29 + $0x560] ss:$36 sps:$4 sm:$0xff]  }
 0x291   : > { %5711 = vmatpush1.bf16.msra.mxu0 %v9480_v9  ;;  %v11376_v9 = vpack.c.bf16 %v1578_v57, %v1578_v57  ;;  %v9638_v57 = vld [vmem:[%s11067_s29 + $0x2dc] ss:$36 sps:$4 sm:$0xff]  }
 0x292   : > { %5752 = vmatpush1.bf16.msra.mxu1 %v9483_v2  ;;  %5712 = vmatprep.subr.bf16.mxu0 %v9488_v10  ;;  %v9561_v2 = vld [vmem:[%s11067_s29 + $0x200] ss:$36 sps:$4 sm:$0xff]   ;;  %v9566_v10 = vld [vmem:[%s11067_s29 + $0x13b4] ss:$36 sps:$4 sm:$0xff]  }
 0x293   : > { %5753 = vmatprep.subr.bf16.mxu1 %v9491_v11  ;;  %v9569_v11 = vld [vmem:[%s11067_s29 + $0x1bc] ss:$36 sps:$4 sm:$0xff]  }
 0x295   : > { %5713 = vmatpush1.bf16.msra.mxu0 %v9486_v12  ;;  %v9564_v12 = vld [vmem:[%s11067_s29 + $0x13b0] ss:$36 sps:$4 sm:$0xff]  }
 0x296   : > { %5754 = vmatpush1.bf16.msra.mxu1 %v9489_v19  ;;  %5714 = vmatprep.subr.bf16.mxu0 %v9494_v5  ;;  %v9567_v19 = vld [vmem:[%s11067_s29 + $0x1b8] ss:$36 sps:$4 sm:$0xff]   ;;  %v9572_v5 = vld [vmem:[%s11067_s29 + $0x136c] ss:$36 sps:$4 sm:$0xff]  }
 0x297   : > { %5755 = vmatprep.subr.bf16.mxu1 %v9497_v20  ;;  %v9575_v20 = vld [vmem:[%s11067_s29 + $0x174] ss:$36 sps:$4 sm:$0xff]  }
 0x299   : > { %5715 = vmatpush1.bf16.msra.mxu0 %v9492_v21  ;;  %v10763_v21 = vmov 0  }
 0x29a   : > { %5756 = vmatpush1.bf16.msra.mxu1 %v9495_v7  ;;  %5716 = vmatprep.subr.bf16.mxu0 %v9500_v22  ;;  %v9570_v7 = vld [vmem:[%s11067_s29 + $0x1368] ss:$36 sps:$4 sm:$0xff]   ;;  %v9573_v22 = vld [vmem:[%s11067_s29 + $0x170] ss:$36 sps:$4 sm:$0xff]  }
 0x29b   : > { %5757 = vmatprep.subr.bf16.mxu1 %v9503_v25  ;;  %v9578_v25 = vld [vmem:[%s11067_s29 + $0x1324] ss:$36 sps:$4 sm:$0xff]  }
 0x29d   : > { %5717 = vmatpush1.bf16.msra.mxu0 %v9498_v6  ;;  %v9576_v6 = vld [vmem:[%s11067_s29 + $0x1320] ss:$36 sps:$4 sm:$0xff]  }
 0x29e   : > { %5758 = vmatpush1.bf16.msra.mxu1 %v9501_v27  ;;  %5718 = vmatprep.subr.bf16.mxu0 %v9506_v28  ;;  %v9584_v27 = vld [vmem:[%s11067_s29 + $0x12dc] ss:$36 sps:$4 sm:$0xff]   ;;  %v9587_v28 = vld [vmem:[%s11067_s29 + $0xe4] ss:$36 sps:$4 sm:$0xff]  }
 0x29f   : > { %5759 = vmatprep.subr.bf16.mxu1 %v9509_v54  ;;  %v9582_v54 = vld [vmem:[%s11067_s29 + $0x12d8] ss:$36 sps:$4 sm:$0xff]  }
 0x2a1   : > { %5719 = vmatpush1.bf16.msra.mxu0 %v9504_v23  ;;  %v9585_v23 = vld [vmem:[%s11067_s29 + $0xe0] ss:$36 sps:$4 sm:$0xff]  }
 0x2a2   : > { %5760 = vmatpush1.bf16.msra.mxu1 %v9507_v55  ;;  %5720 = vmatprep.subr.bf16.mxu0 %v9512_v32  ;;  %v9590_v55 = vld [vmem:[%s11067_s29 + $0x1294] ss:$36 sps:$4 sm:$0xff]   ;;  %v9593_v32 = vld [vmem:[%s11067_s29 + $0x9c] ss:$36 sps:$4 sm:$0xff]  }
 0x2a3   : > { %5761 = vmatprep.subr.bf16.mxu1 %v9515_v24  ;;  %v9588_v24 = vld [vmem:[%s11067_s29 + $0x1290] ss:$36 sps:$4 sm:$0xff]  }
 0x2a5   : > { %5721 = vmatpush2.bf16.msra.mxu0 %v9510_v33  ;;  %v9591_v33 = vld [vmem:[%s11067_s29 + $0x98] ss:$36 sps:$4 sm:$0xff]  }
 0x2a6   : > { %5762 = vmatpush2.bf16.msra.mxu1 %v9513_v34  ;;  %5722 = vmatprep.subr.bf16.mxu0 %v9518_v35  ;;  %v9596_v34 = vld [vmem:[%s11067_s29 + $0x124c] ss:$36 sps:$4 sm:$0xff]   ;;  %v9599_v35 = vld [vmem:[%s11067_s29 + $0x54] ss:$36 sps:$4 sm:$0xff]  }
 0x2a7   : > { %5763 = vmatprep.subr.bf16.mxu1 %v9521_v37  ;;  %v9594_v37 = vld [vmem:[%s11067_s29 + $0x1248] ss:$36 sps:$4 sm:$0xff]  }
 0x2a9   : > { %5723 = vmatpush2.bf16.msra.mxu0 %v9516_v38  ;;  %v9597_v38 = vld [vmem:[%s11067_s29 + $0x50] ss:$36 sps:$4 sm:$0xff]  }
 0x2aa   : > { %5764 = vmatpush2.bf16.msra.mxu1 %v9519_v41  ;;  %5724 = vmatprep.subr.bf16.mxu0 %v9524_v63  ;;  %v9602_v41 = vld [vmem:[%s11067_s29 + $0x1204] ss:$36 sps:$4 sm:$0xff]   ;;  %v9605_v63 = vld [vmem:[%s11067_s29 + $0xc] ss:$36 sps:$4 sm:$0xff]  }
 0x2ab   : > { %5765 = vmatprep.subr.bf16.mxu1 %v9527_v29  ;;  %v9600_v29 = vld [vmem:[%s11067_s29 + $0x1200] ss:$36 sps:$4 sm:$0xff]  }
 0x2ad   : > { %5725 = vmatpush2.bf16.msra.mxu0 %v9522_v42  ;;  %v9603_v42 = vld [vmem:[%s11067_s29 + $0x8] ss:$36 sps:$4 sm:$0xff]  }
 0x2ae   : > { %5766 = vmatpush2.bf16.msra.mxu1 %v9525_v13  ;;  %5726 = vmatprep.subr.bf16.mxu0 %v9530_v4  ;;  %v1580_v13 = vld [vmem:[#allocation2 + $0x8] sm:$0xff]  ;;  %v9608_v4 = vld [vmem:[%s11067_s29 + $0x444] ss:$36 sps:$4 sm:$0xff]  }
 0x2af   : > { %5767 = vmatprep.subr.bf16.mxu1 %v9533_v43  ;;  %v9611_v43 = vld [vmem:[%s11067_s29 + $0x684] ss:$36 sps:$4 sm:$0xff]  }
 0x2b1   : > { %5727 = vmatpush2.bf16.msra.mxu0 %v9528_v44  ;;  %v11413_v44 = vpack.c.bf16 %v1580_v13, %v1580_v13  ;;  %v9689_v13 = vld [vmem:[%s11067_s29 + $0x99c] ss:$36 sps:$4 sm:$0xff]  }
 0x2b2   : > { %5768 = vmatpush2.bf16.msra.mxu1 %v9531_v30  ;;  %5728 = vmatprep.subr.bf16.mxu0 %v9536_v40  ;;  %v9606_v30 = vld [vmem:[%s11067_s29 + $0x440] ss:$36 sps:$4 sm:$0xff]  }
 0x2b3   : > { %5769 = vmatprep.subr.bf16.mxu1 %v9539_v45  ;;  %v9609_v40 = vld [vmem:[%s11067_s29 + $0x680] ss:$36 sps:$4 sm:$0xff]  }
 0x2b4   : > { %v9614_v45 = vld [vmem:[%s11067_s29 + $0x3fc] ss:$36 sps:$4 sm:$0xff]  }
 0x2b5   : > { %5729 = vmatpush2.bf16.msra.mxu0 %v9534_v46  ;;  %v9617_v46 = vld [vmem:[%s11067_s29 + $0x63c] ss:$36 sps:$4 sm:$0xff]  }
 0x2b6   : > { %5770 = vmatpush2.bf16.msra.mxu1 %v9537_v47  ;;  %5730 = vmatprep.subr.bf16.mxu0 %v9542_v48  ;;  %v9612_v47 = vld [vmem:[%s11067_s29 + $0x3f8] ss:$36 sps:$4 sm:$0xff]  }
 0x2b7   : > { %5771 = vmatprep.subr.bf16.mxu1 %v9545_v49  ;;  %v9615_v48 = vld [vmem:[%s11067_s29 + $0x638] ss:$36 sps:$4 sm:$0xff]  }
 0x2b8   : > { %v9620_v49 = vld [vmem:[%s11067_s29 + $0x3b4] ss:$36 sps:$4 sm:$0xff]  }
 0x2b9   : > { %5731 = vmatpush2.bf16.msra.mxu0 %v9540_v50  ;;  %v9623_v50 = vld [vmem:[%s11067_s29 + $0x5f4] ss:$36 sps:$4 sm:$0xff]  }
 0x2ba   : > { %5772 = vmatpush2.bf16.msra.mxu1 %v9543_v51  ;;  %5732 = vmatprep.subr.bf16.mxu0 %v9548_v52  ;;  %v9618_v51 = vld [vmem:[%s11067_s29 + $0x3b0] ss:$36 sps:$4 sm:$0xff]  }
 0x2bb   : > { %5773 = vmatprep.subr.bf16.mxu1 %v9551_v53  ;;  %v9621_v52 = vld [vmem:[%s11067_s29 + $0x5f0] ss:$36 sps:$4 sm:$0xff]  }
 0x2bc   : > { %v9626_v53 = vld [vmem:[%s11067_s29 + $0x36c] ss:$36 sps:$4 sm:$0xff]  }
 0x2bd   : > { %5733 = vmatpush2.bf16.msra.mxu0 %v9546_v60  ;;  %v9629_v60 = vld [vmem:[%s11067_s29 + $0x5ac] ss:$36 sps:$4 sm:$0xff]  }
 0x2be   : > { %5774 = vmatpush2.bf16.msra.mxu1 %v9549_v14  ;;  %5734 = vmatprep.subr.bf16.mxu0 %v9554_v61  ;;  %v9624_v14 = vld [vmem:[%s11067_s29 + $0x368] ss:$36 sps:$4 sm:$0xff]  }
 0x2bf   : > { %5775 = vmatprep.subr.bf16.mxu1 %v9557_v15  ;;  %v9627_v61 = vld [vmem:[%s11067_s29 + $0x5a8] ss:$36 sps:$4 sm:$0xff]  }
 0x2c0   : > { %v9632_v15 = vld [vmem:[%s11067_s29 + $0x324] ss:$36 sps:$4 sm:$0xff]  }
 0x2c1   : > { %5735 = vmatpush2.bf16.msra.mxu0 %v9552_v62  ;;  %v9635_v62 = vld [vmem:[%s11067_s29 + $0x564] ss:$36 sps:$4 sm:$0xff]  }
 0x2c2   : > { %5776 = vmatpush2.bf16.msra.mxu1 %v9555_v16  ;;  %5786 = vmatprep.subr.bf16.mxu0 %v9560_v0  ;;  %v9630_v16 = vld [vmem:[%s11067_s29 + $0x320] ss:$36 sps:$4 sm:$0xff]  }
 0x2c3   : > { %5827 = vmatprep.subr.bf16.mxu1 %v9563_v1  ;;  %v9641_v0 = vld [vmem:[%s11067_s29 + $0x51c] ss:$36 sps:$4 sm:$0xff]  }
 0x2c4   : > { %5737 = vmatmul.mubr.bf16.vlgmr.msra.gmra.mxu0 %v11373_v3  ;;  %v9636_v1 = vld [vmem:[%s11067_s29 + $0x2d8] ss:$36 sps:$4 sm:$0xff]  }
 0x2c5   : > { %5778 = vmatmul.mubr.bf16.vlgmr.msra.gmra.mxu1 %v11376_v9  ;;  %5787 = vmatpush1.bf16.msra.mxu0 %v9558_v17  ;;  %v9639_v17 = vld [vmem:[%s11067_s29 + $0x518] ss:$36 sps:$4 sm:$0xff]  }
 0x2c6   : > { %5828 = vmatpush1.bf16.msra.mxu1 %v9561_v2  ;;  %5788 = vmatprep.subr.bf16.mxu0 %v9566_v10  ;;  %v9644_v2 = vld [vmem:[%s11067_s29 + $0x294] ss:$36 sps:$4 sm:$0xff]  }
 0x2c7   : > { %5829 = vmatprep.subr.bf16.mxu1 %v9569_v11  ;;  %5818 = vmatprep.mubr.bf16.mxu0 %v10763_v21  ;;  %v9647_v10 = vld [vmem:[%s11067_s29 + $0x4d4] ss:$36 sps:$4 sm:$0xff]  }
 0x2c8   : > { %5859 = vmatprep.mubr.bf16.mxu1 %v11273_v36  ;;  %v9642_v11 = vld [vmem:[%s11067_s29 + $0x290] ss:$36 sps:$4 sm:$0xff]  }
 0x2c9   : > { %5789 = vmatpush1.bf16.msra.mxu0 %v9564_v12  ;;  %v9645_v12 = vld [vmem:[%s11067_s29 + $0x4d0] ss:$36 sps:$4 sm:$0xff]  }
 0x2ca   : > { %5830 = vmatpush1.bf16.msra.mxu1 %v9567_v19  ;;  %5790 = vmatprep.subr.bf16.mxu0 %v9572_v5  ;;  %v9650_v19 = vld [vmem:[%s11067_s29 + $0x24c] ss:$36 sps:$4 sm:$0xff]  }
 0x2cb   : > { %5831 = vmatprep.subr.bf16.mxu1 %v9575_v20  ;;  %v9653_v5 = vld [vmem:[%s11067_s29 + $0x48c] ss:$36 sps:$4 sm:$0xff]  }
 0x2cc   : > { %v9648_v20 = vld [vmem:[%s11067_s29 + $0x248] ss:$36 sps:$4 sm:$0xff]  }
 0x2cd   : > { %5791 = vmatpush1.bf16.msra.mxu0 %v9570_v7  ;;  %v9651_v7 = vld [vmem:[%s11067_s29 + $0x488] ss:$36 sps:$4 sm:$0xff]  }
 0x2ce   : > { %5832 = vmatpush1.bf16.msra.mxu1 %v9573_v22  ;;  %5792 = vmatprep.subr.bf16.mxu0 %v9578_v25  ;;  %v9656_v22 = vld [vmem:[%s11067_s29 + $0x8c4] ss:$36 sps:$4 sm:$0xff]  }
 0x2cf   : > { %5833 = vmatprep.subr.bf16.mxu1 %v9581_v18  ;;  %v9659_v25 = vld [vmem:[%s11067_s29 + $0xb04] ss:$36 sps:$4 sm:$0xff]  }
 0x2d0   : > { %v9654_v18 = vld [vmem:[%s11067_s29 + $0x8c0] ss:$36 sps:$4 sm:$0xff]  }
 0x2d1   : > { %5793 = vmatpush1.bf16.msra.mxu0 %v9576_v6  ;;  %v9657_v6 = vld [vmem:[%s11067_s29 + $0xb00] ss:$36 sps:$4 sm:$0xff]  }
 0x2d2   : > { %5834 = vmatpush1.bf16.msra.mxu1 %v9579_v8  ;;  %5794 = vmatprep.subr.bf16.mxu0 %v9584_v27  ;;  %v9662_v8 = vld [vmem:[%s11067_s29 + $0x87c] ss:$36 sps:$4 sm:$0xff]  }
 0x2d3   : > { %5835 = vmatprep.subr.bf16.mxu1 %v9587_v28  ;;  %v9665_v27 = vld [vmem:[%s11067_s29 + $0xabc] ss:$36 sps:$4 sm:$0xff]  }
 0x2d4   : > { %v9660_v28 = vld [vmem:[%s11067_s29 + $0x878] ss:$36 sps:$4 sm:$0xff]  }
 0x2d5   : > { %5795 = vmatpush1.bf16.msra.mxu0 %v9582_v54  ;;  %v9663_v54 = vld [vmem:[%s11067_s29 + $0xab8] ss:$36 sps:$4 sm:$0xff]  }
 0x2d6   : > { %5836 = vmatpush1.bf16.msra.mxu1 %v9585_v23  ;;  %5796 = vmatprep.subr.bf16.mxu0 %v9590_v55  ;;  %v9668_v23 = vld [vmem:[%s11067_s29 + $0x834] ss:$36 sps:$4 sm:$0xff]  }
 0x2d7   : > { %5837 = vmatprep.subr.bf16.mxu1 %v9593_v32  ;;  %v9671_v55 = vld [vmem:[%s11067_s29 + $0xa74] ss:$36 sps:$4 sm:$0xff]  }
 0x2d8   : > { %v9666_v32 = vld [vmem:[%s11067_s29 + $0x830] ss:$36 sps:$4 sm:$0xff]  }
 0x2d9   : > { %5797 = vmatpush1.bf16.msra.mxu0 %v9588_v24  ;;  %v9669_v24 = vld [vmem:[%s11067_s29 + $0xa70] ss:$36 sps:$4 sm:$0xff]  }
 0x2da   : > { %5838 = vmatpush1.bf16.msra.mxu1 %v9591_v33  ;;  %5798 = vmatprep.subr.bf16.mxu0 %v9596_v34  ;;  %v9674_v33 = vld [vmem:[%s11067_s29 + $0x7ec] ss:$36 sps:$4 sm:$0xff]  }
 0x2db   : > { %5839 = vmatprep.subr.bf16.mxu1 %v9599_v35  ;;  %v9677_v34 = vld [vmem:[%s11067_s29 + $0xa2c] ss:$36 sps:$4 sm:$0xff]  }
 0x2dc   : > { %v9672_v35 = vld [vmem:[%s11067_s29 + $0x7e8] ss:$36 sps:$4 sm:$0xff]  }
 0x2dd   : > { %5799 = vmatpush1.bf16.msra.mxu0 %v9594_v37  ;;  %v9675_v37 = vld [vmem:[%s11067_s29 + $0xa28] ss:$36 sps:$4 sm:$0xff]  }
 0x2de   : > { %5840 = vmatpush1.bf16.msra.mxu1 %v9597_v38  ;;  %5800 = vmatprep.subr.bf16.mxu0 %v9602_v41  ;;  %v9680_v38 = vld [vmem:[%s11067_s29 + $0x7a4] ss:$36 sps:$4 sm:$0xff]  }
 0x2df   : > { %5841 = vmatprep.subr.bf16.mxu1 %v9605_v63  ;;  %v9683_v41 = vld [vmem:[%s11067_s29 + $0x9e4] ss:$36 sps:$4 sm:$0xff]  }
 0x2e0   : > { %v9678_v63 = vld [vmem:[%s11067_s29 + $0x7a0] ss:$36 sps:$4 sm:$0xff]  }
 0x2e1   : > { %5801 = vmatpush1.bf16.msra.mxu0 %v9600_v29  ;;  %v9681_v29 = vld [vmem:[%s11067_s29 + $0x9e0] ss:$36 sps:$4 sm:$0xff]  }
 0x2e2   : > { %5842 = vmatpush1.bf16.msra.mxu1 %v9603_v42  ;;  %5868 = vmatprep.subr.bf16.mxu0 %v9611_v43  ;;  %v9686_v42 = vld [vmem:[%s11067_s29 + $0x75c] ss:$36 sps:$4 sm:$0xff]  }
 0x2e3   : > { %5843 = vmatprep.subr.bf16.mxu1 %v9608_v4  ;;  %v9684_v4 = vld [vmem:[%s11067_s29 + $0x758] ss:$36 sps:$4 sm:$0xff]  }
 0x2e4   : > { %5819 = vmatmul.mubr.bf16.vlgmr.msra.gmra.mxu0 %v11413_v44  ;;  %v9687_v43 = vld [vmem:[%s11067_s29 + $0x998] ss:$36 sps:$4 sm:$0xff]  }
 0x2e5   : > { %5869 = vmatpush1.bf16.msra.mxu0 %v9609_v40  ;;  %5900 = vmatprep.mubr.bf16.mxu0 %v11276_v39  ;;  %v9695_v40 = vld [vmem:[%s11067_s29 + $0x954] ss:$36 sps:$4 sm:$0xff]  }
 0x2e6   : > { %5844 = vmatpush2.bf16.msra.mxu1 %v9606_v30  ;;  %5870 = vmatprep.subr.bf16.mxu0 %v9617_v46  ;;  %v9692_v30 = vld [vmem:[%s11067_s29 + $0x714] ss:$36 sps:$4 sm:$0xff]  }
 0x2e7   : > { %5845 = vmatprep.subr.bf16.mxu1 %v9614_v45  ;;  %v9690_v45 = vld [vmem:[%s11067_s29 + $0x710] ss:$36 sps:$4 sm:$0xff]  }
 0x2e8   : > { %v9693_v46 = vld [vmem:[%s11067_s29 + $0x950] ss:$36 sps:$4 sm:$0xff]  }
 0x2e9   : > { %5871 = vmatpush1.bf16.msra.mxu0 %v9615_v48  ;;  %v9701_v48 = vld [vmem:[%s11067_s29 + $0x90c] ss:$36 sps:$4 sm:$0xff]  }
 0x2ea   : > { %5846 = vmatpush2.bf16.msra.mxu1 %v9612_v47  ;;  %5872 = vmatprep.subr.bf16.mxu0 %v9623_v50  ;;  %v9698_v47 = vld [vmem:[%s11067_s29 + $0x6cc] ss:$36 sps:$4 sm:$0xff]  }
 0x2eb   : > { %5847 = vmatprep.subr.bf16.mxu1 %v9620_v49  ;;  %v9696_v49 = vld [vmem:[%s11067_s29 + $0x6c8] ss:$36 sps:$4 sm:$0xff]  }
 0x2ec   : > { %v9699_v50 = vld [vmem:[%s11067_s29 + $0x908] ss:$36 sps:$4 sm:$0xff]  }
 0x2ed   : > { %5873 = vmatpush1.bf16.msra.mxu0 %v9621_v52  ;;  %v9707_v52 = vld [vmem:[%s11067_s29 + $0xf84] ss:$36 sps:$4 sm:$0xff]  }
 0x2ee   : > { %5848 = vmatpush2.bf16.msra.mxu1 %v9618_v51  ;;  %5874 = vmatprep.subr.bf16.mxu0 %v9629_v60  ;;  %v9704_v51 = vld [vmem:[%s11067_s29 + $0xd44] ss:$36 sps:$4 sm:$0xff]  }
 0x2ef   : > { %5849 = vmatprep.subr.bf16.mxu1 %v9626_v53  ;;  %v9702_v53 = vld [vmem:[%s11067_s29 + $0xd40] ss:$36 sps:$4 sm:$0xff]  }
 0x2f0   : > { %v9705_v60 = vld [vmem:[%s11067_s29 + $0xf80] ss:$36 sps:$4 sm:$0xff]  }
 0x2f1   : > { %5875 = vmatpush1.bf16.msra.mxu0 %v9627_v61  ;;  %v9713_v61 = vld [vmem:[%s11067_s29 + $0xf3c] ss:$36 sps:$4 sm:$0xff]  }
 0x2f2   : > { %5850 = vmatpush2.bf16.msra.mxu1 %v9624_v14  ;;  %5876 = vmatprep.subr.bf16.mxu0 %v9635_v62  ;;  %v9710_v14 = vld [vmem:[%s11067_s29 + $0xcfc] ss:$36 sps:$4 sm:$0xff]  }
 0x2f3   : > { %5851 = vmatprep.subr.bf16.mxu1 %v9632_v15  ;;  %v9708_v15 = vld [vmem:[%s11067_s29 + $0xcf8] ss:$36 sps:$4 sm:$0xff]  }
 0x2f4   : > { %v9711_v62 = vld [vmem:[%s11067_s29 + $0xf38] ss:$36 sps:$4 sm:$0xff]  }
 0x2f5   : > { %5877 = vmatpush1.bf16.msra.mxu0 %v9633_v56  ;;  %v9719_v56 = vld [vmem:[%s11067_s29 + $0xef4] ss:$36 sps:$4 sm:$0xff]  }
 0x2f6   : > { %5852 = vmatpush2.bf16.msra.mxu1 %v9630_v16  ;;  %5878 = vmatprep.subr.bf16.mxu0 %v9641_v0  ;;  %v9716_v16 = vld [vmem:[%s11067_s29 + $0xcb4] ss:$36 sps:$4 sm:$0xff]  }
 0x2f7   : > { %5853 = vmatprep.subr.bf16.mxu1 %v9638_v57  ;;  %v9714_v57 = vld [vmem:[%s11067_s29 + $0xcb0] ss:$36 sps:$4 sm:$0xff]  }
 0x2f8   : > { %v9717_v0 = vld [vmem:[%s11067_s29 + $0xef0] ss:$36 sps:$4 sm:$0xff]  }
 0x2f9   : > { %5879 = vmatpush1.bf16.msra.mxu0 %v9639_v17  ;;  %v9725_v17 = vld [vmem:[%s11067_s29 + $0xeac] ss:$36 sps:$4 sm:$0xff]  }
 0x2fa   : > { %5854 = vmatpush2.bf16.msra.mxu1 %v9636_v1  ;;  %5880 = vmatprep.subr.bf16.mxu0 %v9647_v10  ;;  %v9722_v1 = vld [vmem:[%s11067_s29 + $0xc6c] ss:$36 sps:$4 sm:$0xff]  }
 0x2fb   : > { %5855 = vmatprep.subr.bf16.mxu1 %v9644_v2  ;;  %v9720_v2 = vld [vmem:[%s11067_s29 + $0xc68] ss:$36 sps:$4 sm:$0xff]  }
 0x2fc   : > { %v9723_v10 = vld [vmem:[%s11067_s29 + $0xea8] ss:$36 sps:$4 sm:$0xff]  }
 0x2fd   : > { %5881 = vmatpush1.bf16.msra.mxu0 %v9645_v12  ;;  %v9731_v12 = vld [vmem:[%s11067_s29 + $0xe64] ss:$36 sps:$4 sm:$0xff]  }
 0x2fe   : > { %5856 = vmatpush2.bf16.msra.mxu1 %v9642_v11  ;;  %5882 = vmatprep.subr.bf16.mxu0 %v9653_v5  ;;  %v9728_v11 = vld [vmem:[%s11067_s29 + $0xc24] ss:$36 sps:$4 sm:$0xff]  }
 0x2ff   : > { %5857 = vmatprep.subr.bf16.mxu1 %v9650_v19  ;;  %v9726_v19 = vld [vmem:[%s11067_s29 + $0xc20] ss:$36 sps:$4 sm:$0xff]  }
 0x300   : > { %v9729_v5 = vld [vmem:[%s11067_s29 + $0xe60] ss:$36 sps:$4 sm:$0xff]  }
 0x301   : > { %5883 = vmatpush1.bf16.msra.mxu0 %v9651_v7  ;;  %v9737_v7 = vld [vmem:[%s11067_s29 + $0xe1c] ss:$36 sps:$4 sm:$0xff]  }
 0x302   : > { %5858 = vmatpush2.bf16.msra.mxu1 %v9648_v20  ;;  %5884 = vmatprep.subr.bf16.mxu0 %v9656_v22  ;;  %v9734_v20 = vld [vmem:[%s11067_s29 + $0xbdc] ss:$36 sps:$4 sm:$0xff]  }
 0x303   : > { %5909 = vmatprep.subr.bf16.mxu1 %v9659_v25  ;;  %v9732_v22 = vld [vmem:[%s11067_s29 + $0xbd8] ss:$36 sps:$4 sm:$0xff]  }
 0x304   : > { %v9735_v25 = vld [vmem:[%s11067_s29 + $0xe18] ss:$36 sps:$4 sm:$0xff]  }
 0x305   : > { %5860 = vmatmul.mubr.bf16.vlgmr.msra.gmra.mxu1 %v11297_v58  ;;  %5885 = vmatpush2.bf16.msra.mxu0 %v9654_v18  ;;  %v9740_v18 = vld [vmem:[%s11067_s29 + $0xb94] ss:$36 sps:$4 sm:$0xff]  }
 0x306   : > { %5910 = vmatpush1.bf16.msra.mxu1 %v9657_v6  ;;  %5886 = vmatprep.subr.bf16.mxu0 %v9662_v8  ;;  %v9743_v6 = vld [vmem:[%s11067_s29 + $0xdd4] ss:$36 sps:$4 sm:$0xff]  }
 0x307   : > { %5911 = vmatprep.subr.bf16.mxu1 %v9665_v27  ;;  %5941 = vmatprep.mubr.bf16.mxu1 %v11328_v26  ;;  %v9738_v8 = vld [vmem:[%s11067_s29 + $0xb90] ss:$36 sps:$4 sm:$0xff]  }
 0x308   : > { %v9741_v27 = vld [vmem:[%s11067_s29 + $0xdd0] ss:$36 sps:$4 sm:$0xff]  }
 0x309   : > { %5887 = vmatpush2.bf16.msra.mxu0 %v9660_v28  ;;  %v9746_v28 = vld [vmem:[%s11067_s29 + $0xb4c] ss:$36 sps:$4 sm:$0xff]  }
 0x30a   : > { %5912 = vmatpush1.bf16.msra.mxu1 %v9663_v54  ;;  %5888 = vmatprep.subr.bf16.mxu0 %v9668_v23  ;;  %v9749_v54 = vld [vmem:[%s11067_s29 + $0xd8c] ss:$36 sps:$4 sm:$0xff]  }
 0x30b   : > { %5913 = vmatprep.subr.bf16.mxu1 %v9671_v55  ;;  %v9744_v23 = vld [vmem:[%s11067_s29 + $0xb48] ss:$36 sps:$4 sm:$0xff]  }
 0x30c   : > { %v9747_v55 = vld [vmem:[%s11067_s29 + $0xd88] ss:$36 sps:$4 sm:$0xff]  }
 0x30d   : > { %5889 = vmatpush2.bf16.msra.mxu0 %v9666_v32  ;;  %v9752_v32 = vld [vmem:[%s11067_s29 + $0x11c4] ss:$36 sps:$4 sm:$0xff]  }
 0x30e   : > { %5914 = vmatpush1.bf16.msra.mxu1 %v9669_v24  ;;  %5890 = vmatprep.subr.bf16.mxu0 %v9674_v33  ;;  %v9755_v24 = vld [vmem:[%s11067_s29 + $0x1404] ss:$36 sps:$4 sm:$0xff]  }
 0x30f   : > { %5915 = vmatprep.subr.bf16.mxu1 %v9677_v34  ;;  %v9750_v33 = vld [vmem:[%s11067_s29 + $0x11c0] ss:$36 sps:$4 sm:$0xff]  }
 0x310   : > { %v9753_v34 = vld [vmem:[%s11067_s29 + $0x1400] ss:$36 sps:$4 sm:$0xff]  }
 0x311   : > { %5891 = vmatpush2.bf16.msra.mxu0 %v9672_v35  ;;  %v9758_v35 = vld [vmem:[%s11067_s29 + $0x117c] ss:$36 sps:$4 sm:$0xff]  }
 0x312   : > { %5916 = vmatpush1.bf16.msra.mxu1 %v9675_v37  ;;  %5892 = vmatprep.subr.bf16.mxu0 %v9680_v38  ;;  %v9761_v37 = vld [vmem:[%s11067_s29 + $0x13bc] ss:$36 sps:$4 sm:$0xff]  }
 0x313   : > { %5917 = vmatprep.subr.bf16.mxu1 %v9683_v41 }
 0x315   : > { %5893 = vmatpush2.bf16.msra.mxu0 %v9678_v63  ;;  %v9756_v63 = vld [vmem:[%s11067_s29 + $0x1178] ss:$36 sps:$4 sm:$0xff]  }
 0x316   : > { %5918 = vmatpush1.bf16.msra.mxu1 %v9681_v29  ;;  %5894 = vmatprep.subr.bf16.mxu0 %v9686_v42  ;;  %v9759_v42 = vld [vmem:[%s11067_s29 + $0x13b8] ss:$36 sps:$4 sm:$0xff]  }
 0x317   : > { %5919 = vmatprep.subr.bf16.mxu1 %v9689_v13 }
 0x319   : > { %5895 = vmatpush2.bf16.msra.mxu0 %v9684_v4 }
 0x31a   : > { %5920 = vmatpush1.bf16.msra.mxu1 %v9687_v43  ;;  %5896 = vmatprep.subr.bf16.mxu0 %v9692_v30  ;;  %v9764_v43 = vld [vmem:[%s11067_s29 + $0x1134] ss:$36 sps:$4 sm:$0xff]  }
 0x31b   : > { %5921 = vmatprep.subr.bf16.mxu1 %v9695_v40  ;;  %v9767_v30 = vld [vmem:[%s11067_s29 + $0x1374] ss:$36 sps:$4 sm:$0xff]  }
 0x31d   : > { %5897 = vmatpush2.bf16.msra.mxu0 %v9690_v45 }
 0x31e   : > { %5922 = vmatpush1.bf16.msra.mxu1 %v9693_v46  ;;  %5898 = vmatprep.subr.bf16.mxu0 %v9698_v47  ;;  %v9762_v46 = vld [vmem:[%s11067_s29 + $0x1130] ss:$36 sps:$4 sm:$0xff]  }
 0x31f   : > { %5923 = vmatprep.subr.bf16.mxu1 %v9701_v48  ;;  %v9765_v48 = vld [vmem:[%s11067_s29 + $0x1370] ss:$36 sps:$4 sm:$0xff]  }
 0x321   : > { %5899 = vmatpush2.bf16.msra.mxu0 %v9696_v49 }
 0x322   : > { %5924 = vmatpush1.bf16.msra.mxu1 %v9699_v50  ;;  %5950 = vmatprep.subr.bf16.mxu0 %v9707_v52  ;;  %v9770_v50 = vld [vmem:[%s11067_s29 + $0x10ec] ss:$36 sps:$4 sm:$0xff]  }
 0x323   : > { %5925 = vmatprep.subr.bf16.mxu1 %v9704_v51  ;;  %v9773_v51 = vld [vmem:[%s11067_s29 + $0x132c] ss:$36 sps:$4 sm:$0xff]  }
 0x324   : > { %5901 = vmatmul.mubr.bf16.vlgmr.msra.gmra.mxu0 %v11299_v59 }
 0x325   : > { %5951 = vmatpush1.bf16.msra.mxu0 %v9705_v60  ;;  %5982 = vmatprep.mubr.bf16.mxu0 %v11332_v31  ;;  %v9771_v60 = vld [vmem:[%s11067_s29 + $0x1328] ss:$36 sps:$4 sm:$0xff]  }
 0x326   : > { %5926 = vmatpush2.bf16.msra.mxu1 %v9702_v53  ;;  %5952 = vmatprep.subr.bf16.mxu0 %v9713_v61  ;;  %v9768_v53 = vld [vmem:[%s11067_s29 + $0x10e8] ss:$36 sps:$4 sm:$0xff]  }
 0x327   : > { %5927 = vmatprep.subr.bf16.mxu1 %v9710_v14  ;;  %v9776_v14 = vld [vmem:[%s11067_s29 + $0x10a4] ss:$36 sps:$4 sm:$0xff]  }
 0x328   : > { %v9779_v61 = vld [vmem:[%s11067_s29 + $0x12e4] ss:$36 sps:$4 sm:$0xff]  }
 0x329   : > { %5953 = vmatpush1.bf16.msra.mxu0 %v9711_v62  ;;  %v9777_v62 = vld [vmem:[%s11067_s29 + $0x12e0] ss:$36 sps:$4 sm:$0xff]  }
 0x32a   : > { %5928 = vmatpush2.bf16.msra.mxu1 %v9708_v15  ;;  %5954 = vmatprep.subr.bf16.mxu0 %v9719_v56  ;;  %v9774_v15 = vld [vmem:[%s11067_s29 + $0x10a0] ss:$36 sps:$4 sm:$0xff]  }
 0x32b   : > { %5929 = vmatprep.subr.bf16.mxu1 %v9716_v16  ;;  %v9782_v16 = vld [vmem:[%s11067_s29 + $0x105c] ss:$36 sps:$4 sm:$0xff]  }
 0x32c   : > { %v9785_v56 = vld [vmem:[%s11067_s29 + $0x129c] ss:$36 sps:$4 sm:$0xff]  }
 0x32d   : > { %5955 = vmatpush1.bf16.msra.mxu0 %v9717_v0  ;;  %v9783_v0 = vld [vmem:[%s11067_s29 + $0x1298] ss:$36 sps:$4 sm:$0xff]  }
 0x32e   : > { %5930 = vmatpush2.bf16.msra.mxu1 %v9714_v57  ;;  %5956 = vmatprep.subr.bf16.mxu0 %v9725_v17  ;;  %v9780_v57 = vld [vmem:[%s11067_s29 + $0x1058] ss:$36 sps:$4 sm:$0xff]  }
 0x32f   : > { %5931 = vmatprep.subr.bf16.mxu1 %v9722_v1  ;;  %v9788_v1 = vld [vmem:[%s11067_s29 + $0x1014] ss:$36 sps:$4 sm:$0xff]  }
 0x330   : > { %v9791_v17 = vld [vmem:[%s11067_s29 + $0x1254] ss:$36 sps:$4 sm:$0xff]  }
 0x331   : > { %5957 = vmatpush1.bf16.msra.mxu0 %v9723_v10  ;;  %v9789_v10 = vld [vmem:[%s11067_s29 + $0x1250] ss:$36 sps:$4 sm:$0xff]  }
 0x332   : > { %5932 = vmatpush2.bf16.msra.mxu1 %v9720_v2  ;;  %5958 = vmatprep.subr.bf16.mxu0 %v9731_v12  ;;  %v9786_v2 = vld [vmem:[%s11067_s29 + $0x1010] ss:$36 sps:$4 sm:$0xff]  }
 0x333   : > { %5933 = vmatprep.subr.bf16.mxu1 %v9728_v11  ;;  %v9794_v11 = vld [vmem:[%s11067_s29 + $0xfcc] ss:$36 sps:$4 sm:$0xff]  }
 0x334   : > { %v9797_v12 = vld [vmem:[%s11067_s29 + $0x120c] ss:$36 sps:$4 sm:$0xff]  }
 0x335   : > { %5959 = vmatpush1.bf16.msra.mxu0 %v9729_v5  ;;  %v9795_v5 = vld [vmem:[%s11067_s29 + $0x1208] ss:$36 sps:$4 sm:$0xff]  }
 0x336   : > { %5934 = vmatpush2.bf16.msra.mxu1 %v9726_v19  ;;  %5960 = vmatprep.subr.bf16.mxu0 %v9737_v7  ;;  %v9792_v19 = vld [vmem:[%s11067_s29 + $0xfc8] ss:$36 sps:$4 sm:$0xff]  }
 0x337   : > { %5935 = vmatprep.subr.bf16.mxu1 %v9734_v20  ;;  %v9800_v20 = vld [vmem:[%s11067_s29 + $0x20c] ss:$36 sps:$4 sm:$0xff]  }
 0x338   : > { %v9803_v7 = vld [vmem:[%s11067_s29 + $0x68c] ss:$36 sps:$4 sm:$0xff]  }
 0x339   : > { %5961 = vmatpush1.bf16.msra.mxu0 %v9735_v25  ;;  %v9801_v25 = vld [vmem:[%s11067_s29 + $0x688] ss:$36 sps:$4 sm:$0xff]  }
 0x33a   : > { %5936 = vmatpush2.bf16.msra.mxu1 %v9732_v22  ;;  %5962 = vmatprep.subr.bf16.mxu0 %v9743_v6  ;;  %v9798_v22 = vld [vmem:[%s11067_s29 + $0x208] ss:$36 sps:$4 sm:$0xff]  }
 0x33b   : > { %5937 = vmatprep.subr.bf16.mxu1 %v9740_v18  ;;  %v9806_v18 = vld [vmem:[%s11067_s29 + $0x1c4] ss:$36 sps:$4 sm:$0xff]  }
 0x33c   : > { %v9809_v6 = vld [vmem:[%s11067_s29 + $0x644] ss:$36 sps:$4 sm:$0xff]  }
 0x33d   : > { %5963 = vmatpush1.bf16.msra.mxu0 %v9741_v27  ;;  %v9807_v27 = vld [vmem:[%s11067_s29 + $0x640] ss:$36 sps:$4 sm:$0xff]  }
 0x33e   : > { %5938 = vmatpush2.bf16.msra.mxu1 %v9738_v8  ;;  %5964 = vmatprep.subr.bf16.mxu0 %v9749_v54  ;;  %v9804_v8 = vld [vmem:[%s11067_s29 + $0x1c0] ss:$36 sps:$4 sm:$0xff]  }
 0x33f   : > { %5939 = vmatprep.subr.bf16.mxu1 %v9746_v28  ;;  %v9812_v28 = vld [vmem:[%s11067_s29 + $0x17c] ss:$36 sps:$4 sm:$0xff]  }
 0x340   : > { %v9815_v54 = vld [vmem:[%s11067_s29 + $0x5fc] ss:$36 sps:$4 sm:$0xff]  }
 0x341   : > { %5965 = vmatpush1.bf16.msra.mxu0 %v9747_v55  ;;  %v9813_v55 = vld [vmem:[%s11067_s29 + $0x5f8] ss:$36 sps:$4 sm:$0xff]  }
 0x342   : > { %5940 = vmatpush2.bf16.msra.mxu1 %v9744_v23  ;;  %5966 = vmatprep.subr.bf16.mxu0 %v9752_v32  ;;  %v9810_v23 = vld [vmem:[%s11067_s29 + $0x178] ss:$36 sps:$4 sm:$0xff]  }
 0x343   : > { %5991 = vmatprep.subr.bf16.mxu1 %v9755_v24  ;;  %v9818_v32 = vld [vmem:[%s11067_s29 + $0x134] ss:$36 sps:$4 sm:$0xff]  }
 0x344   : > { %v5656_v38 = vpop.f32.mrf.mxu0  ;;  %v9821_v24 = vld [vmem:[%s11067_s29 + $0x5b4] ss:$36 sps:$4 sm:$0xff]  }
 0x345   : > { %v5697_v41 = vpop.f32.mrf.mxu1  ;;  %5942 = vmatmul.mubr.bf16.vlgmr.msra.gmra.mxu1 %v11373_v3  ;;  %5967 = vmatpush2.bf16.msra.mxu0 %v9750_v33  ;;  %v9816_v33 = vld [vmem:[%s11067_s29 + $0x130] ss:$36 sps:$4 sm:$0xff]  }
 0x346   : > { %v11523_v29 = vadd.f32 %v5697_v41, %v5656_v38  ;;  %5992 = vmatpush1.bf16.msra.mxu1 %v9753_v34  ;;  %v5658_v13 = vpop.f32.mrf.mxu0  ;;  %5968 = vmatprep.subr.bf16.mxu0 %v9758_v35  ;;  %v9819_v34 = vld [vmem:[%s11067_s29 + $0x5b0] ss:$36 sps:$4 sm:$0xff]   ;;  %v9822_v38 = vld [vmem:[%s11067_s29 + $0xe8] ss:$36 sps:$4 sm:$0xff]  }
 0x347   : > { %v5699_v4 = vpop.f32.mrf.mxu1  ;;  %5993 = vmatprep.subr.bf16.mxu1 %v9761_v37  ;;  %6023 = vmatprep.mubr.bf16.mxu1 %v10763_v21  ;;  %v9824_v35 = vld [vmem:[%s11067_s29 + $0xec] ss:$36 sps:$4 sm:$0xff]  }
 0x348   : > { %v11528_v40 = vadd.f32 %v5699_v4, %v5658_v13  ;;  %v5660_v45 = vpop.f32.mrf.mxu0  ;;  %v9827_v37 = vld [vmem:[%s11067_s29 + $0x56c] ss:$36 sps:$4 sm:$0xff]   ;;  %v9828_v13 = vld [vmem:[%s11067_s29 + $0xa0] ss:$36 sps:$4 sm:$0xff]  }
 0x349   : > { %v5701_v47 = vpop.f32.mrf.mxu1  ;;  %5969 = vmatpush2.bf16.msra.mxu0 %v9756_v63  ;;  %v9825_v41 = vld [vmem:[%s11067_s29 + $0x568] ss:$36 sps:$4 sm:$0xff]   ;;  %v9831_v4 = vld [vmem:[%s11067_s29 + $0x520] ss:$36 sps:$4 sm:$0xff]   ;;  %v9834_v45 = vld [vmem:[%s11067_s29 + $0x58] ss:$36 sps:$4 sm:$0xff]  }
 0x34a   : > { %5994 = vmatpush1.bf16.msra.mxu1 %v9759_v42  ;;  %v5661_v49 = vpop.f32.mrf.mxu0  ;;  %5970 = vmatprep.subr.bf16.mxu0 %v9764_v43  ;;  %v9830_v63 = vld [vmem:[%s11067_s29 + $0xa4] ss:$36 sps:$4 sm:$0xff]   ;;  %v9836_v43 = vld [vmem:[%s11067_s29 + $0x5c] ss:$36 sps:$4 sm:$0xff]   ;;  %v9842_v47 = vld [vmem:[%s11067_s29 + $0x14] ss:$36 sps:$4 sm:$0xff]  }
 0x34b   : > { %5995 = vmatprep.subr.bf16.mxu1 %v9767_v30  ;;  %v5702_v52 = vpop.f32.mrf.mxu1  ;;  %v9833_v42 = vld [vmem:[%s11067_s29 + $0x524] ss:$36 sps:$4 sm:$0xff]   ;;  %v9839_v30 = vld [vmem:[%s11067_s29 + $0x4dc] ss:$36 sps:$4 sm:$0xff]   ;;  %v9840_v49 = vld [vmem:[%s11067_s29 + $0x10] ss:$36 sps:$4 sm:$0xff]  }
 0x34c   : > { %v9851_v52 = vld [vmem:[%s11067_s29 + $0x8cc] ss:$36 sps:$4 sm:$0xff]  }
 0x34d   : > { %5971 = vmatpush2.bf16.msra.mxu0 %v9762_v46  ;;  %v9837_v46 = vld [vmem:[%s11067_s29 + $0x4d8] ss:$36 sps:$4 sm:$0xff]  }
 0x34e   : > { %5996 = vmatpush1.bf16.msra.mxu1 %v9765_v48  ;;  %5972 = vmatprep.subr.bf16.mxu0 %v9770_v50  ;;  %v9845_v48 = vld [vmem:[%s11067_s29 + $0x494] ss:$36 sps:$4 sm:$0xff]  }
 0x34f   : > { %5997 = vmatprep.subr.bf16.mxu1 %v9773_v51  ;;  %v9843_v50 = vld [vmem:[%s11067_s29 + $0x490] ss:$36 sps:$4 sm:$0xff]  }
 0x350   : > { %v9848_v51 = vld [vmem:[%s11067_s29 + $0x44c] ss:$36 sps:$4 sm:$0xff]  }
 0x351   : > { %5973 = vmatpush2.bf16.msra.mxu0 %v9768_v53  ;;  %v9846_v53 = vld [vmem:[%s11067_s29 + $0x448] ss:$36 sps:$4 sm:$0xff]  }
 0x352   : > { %5998 = vmatpush1.bf16.msra.mxu1 %v9771_v60  ;;  %5974 = vmatprep.subr.bf16.mxu0 %v9776_v14  ;;  %v9849_v60 = vld [vmem:[%s11067_s29 + $0x8c8] ss:$36 sps:$4 sm:$0xff]  }
 0x353   : > { %5999 = vmatprep.subr.bf16.mxu1 %v9779_v61  ;;  %v9854_v14 = vld [vmem:[%s11067_s29 + $0x404] ss:$36 sps:$4 sm:$0xff]  }
 0x354   : > { %v9857_v61 = vld [vmem:[%s11067_s29 + $0x884] ss:$36 sps:$4 sm:$0xff]  }
 0x355   : > { %5975 = vmatpush2.bf16.msra.mxu0 %v9774_v15  ;;  %v9852_v15 = vld [vmem:[%s11067_s29 + $0x400] ss:$36 sps:$4 sm:$0xff]  }
 0x356   : > { %6000 = vmatpush1.bf16.msra.mxu1 %v9777_v62  ;;  %5976 = vmatprep.subr.bf16.mxu0 %v9782_v16  ;;  %v9855_v62 = vld [vmem:[%s11067_s29 + $0x880] ss:$36 sps:$4 sm:$0xff]  }
 0x357   : > { %6001 = vmatprep.subr.bf16.mxu1 %v9785_v56 }
 0x359   : > { %5977 = vmatpush2.bf16.msra.mxu0 %v9780_v57 }
 0x35a   : > { %6002 = vmatpush1.bf16.msra.mxu1 %v9783_v0  ;;  %5978 = vmatprep.subr.bf16.mxu0 %v9788_v1 }
 0x35b   : > { %6003 = vmatprep.subr.bf16.mxu1 %v9791_v17  ;;  %v9860_v17 = vld [vmem:[%s11067_s29 + $0x3bc] ss:$36 sps:$4 sm:$0xff]  }
 0x35d   : > { %5979 = vmatpush2.bf16.msra.mxu0 %v9786_v2  ;;  %v9863_v2 = vld [vmem:[%s11067_s29 + $0x83c] ss:$36 sps:$4 sm:$0xff]  }
 0x35e   : > { %6004 = vmatpush1.bf16.msra.mxu1 %v9789_v10  ;;  %5980 = vmatprep.subr.bf16.mxu0 %v9794_v11 }
 0x35f   : > { %6005 = vmatprep.subr.bf16.mxu1 %v9797_v12 }
 0x361   : > { %5981 = vmatpush2.bf16.msra.mxu0 %v9792_v19 }
 0x362   : > { %6006 = vmatpush1.bf16.msra.mxu1 %v9795_v5  ;;  %6032 = vmatprep.subr.bf16.mxu0 %v9800_v20  ;;  %v9858_v5 = vld [vmem:[%s11067_s29 + $0x3b8] ss:$36 sps:$4 sm:$0xff]  }
 0x363   : > { %6073 = vmatprep.subr.bf16.mxu1 %v9803_v7  ;;  %v9861_v20 = vld [vmem:[%s11067_s29 + $0x838] ss:$36 sps:$4 sm:$0xff]  }
 0x364   : > { %5983 = vmatmul.mubr.bf16.vlgmr.msra.gmra.mxu0 %v11376_v9 }
 0x365   : > { %6024 = vmatmul.mubr.bf16.vlgmr.msra.gmra.mxu1 %v11413_v44  ;;  %6033 = vmatpush1.bf16.msra.mxu0 %v9798_v22  ;;  %v9869_v22 = vld [vmem:[%s11067_s29 + $0x7f4] ss:$36 sps:$4 sm:$0xff]  }
 0x366   : > { %6074 = vmatpush1.bf16.msra.mxu1 %v9801_v25  ;;  %6034 = vmatprep.subr.bf16.mxu0 %v9806_v18  ;;  %v9864_v18 = vld [vmem:[%s11067_s29 + $0x370] ss:$36 sps:$4 sm:$0xff]  }
 0x367   : > { %6075 = vmatprep.subr.bf16.mxu1 %v9809_v6  ;;  %6064 = vmatprep.mubr.bf16.mxu0 %v11273_v36  ;;  %v9867_v6 = vld [vmem:[%s11067_s29 + $0x7f0] ss:$36 sps:$4 sm:$0xff]  }
 0x368   : > { %6105 = vmatprep.mubr.bf16.mxu1 %v11276_v39 }
 0x369   : > { %6035 = vmatpush1.bf16.msra.mxu0 %v9804_v8  ;;  %v9872_v8 = vld [vmem:[%s11067_s29 + $0x32c] ss:$36 sps:$4 sm:$0xff]  }
 0x36a   : > { %6076 = vmatpush1.bf16.msra.mxu1 %v9807_v27  ;;  %6036 = vmatprep.subr.bf16.mxu0 %v9812_v28  ;;  %v9875_v27 = vld [vmem:[%s11067_s29 + $0x7ac] ss:$36 sps:$4 sm:$0xff]  }
 0x36b   : > { %6077 = vmatprep.subr.bf16.mxu1 %v9815_v54  ;;  %v9870_v28 = vld [vmem:[%s11067_s29 + $0x328] ss:$36 sps:$4 sm:$0xff]  }
 0x36c   : > { %v9873_v54 = vld [vmem:[%s11067_s29 + $0x7a8] ss:$36 sps:$4 sm:$0xff]  }
 0x36d   : > { %6037 = vmatpush1.bf16.msra.mxu0 %v9810_v23  ;;  %v9878_v23 = vld [vmem:[%s11067_s29 + $0x2e4] ss:$36 sps:$4 sm:$0xff]  }
 0x36e   : > { %6078 = vmatpush1.bf16.msra.mxu1 %v9813_v55  ;;  %6038 = vmatprep.subr.bf16.mxu0 %v9818_v32  ;;  %v9881_v55 = vld [vmem:[%s11067_s29 + $0x764] ss:$36 sps:$4 sm:$0xff]  }
 0x36f   : > { %6079 = vmatprep.subr.bf16.mxu1 %v9821_v24  ;;  %v9876_v32 = vld [vmem:[%s11067_s29 + $0x2e0] ss:$36 sps:$4 sm:$0xff]  }
 0x370   : > { %v9879_v24 = vld [vmem:[%s11067_s29 + $0x760] ss:$36 sps:$4 sm:$0xff]  }
 0x371   : > { %6039 = vmatpush1.bf16.msra.mxu0 %v9816_v33  ;;  %v9884_v33 = vld [vmem:[%s11067_s29 + $0x29c] ss:$36 sps:$4 sm:$0xff]  }
 0x372   : > { %6080 = vmatpush1.bf16.msra.mxu1 %v9819_v34  ;;  %6040 = vmatprep.subr.bf16.mxu0 %v9824_v35  ;;  %v9887_v34 = vld [vmem:[%s11067_s29 + $0x71c] ss:$36 sps:$4 sm:$0xff]  }
 0x373   : > { %6081 = vmatprep.subr.bf16.mxu1 %v9827_v37  ;;  %v9882_v35 = vld [vmem:[%s11067_s29 + $0x298] ss:$36 sps:$4 sm:$0xff]  }
 0x374   : > { %v9885_v37 = vld [vmem:[%s11067_s29 + $0x718] ss:$36 sps:$4 sm:$0xff]  }
 0x375   : > { %6041 = vmatpush1.bf16.msra.mxu0 %v9822_v38  ;;  %v9890_v38 = vld [vmem:[%s11067_s29 + $0x254] ss:$36 sps:$4 sm:$0xff]  }
 0x376   : > { %6082 = vmatpush1.bf16.msra.mxu1 %v9825_v41  ;;  %6042 = vmatprep.subr.bf16.mxu0 %v9830_v63  ;;  %v9893_v41 = vld [vmem:[%s11067_s29 + $0x6d4] ss:$36 sps:$4 sm:$0xff]  }
 0x377   : > { %6083 = vmatprep.subr.bf16.mxu1 %v9833_v42  ;;  %v9888_v63 = vld [vmem:[%s11067_s29 + $0x250] ss:$36 sps:$4 sm:$0xff]  }
 0x378   : > { %v9891_v42 = vld [vmem:[%s11067_s29 + $0x6d0] ss:$36 sps:$4 sm:$0xff]  }
 0x379   : > { %6043 = vmatpush1.bf16.msra.mxu0 %v9828_v13  ;;  %v9896_v13 = vld [vmem:[%s11067_s29 + $0xb0c] ss:$36 sps:$4 sm:$0xff]  }
 0x37a   : > { %6084 = vmatpush1.bf16.msra.mxu1 %v9831_v4  ;;  %6044 = vmatprep.subr.bf16.mxu0 %v9836_v43  ;;  %v9899_v4 = vld [vmem:[%s11067_s29 + $0xf8c] ss:$36 sps:$4 sm:$0xff]  }
 0x37b   : > { %6085 = vmatprep.subr.bf16.mxu1 %v9839_v30  ;;  %v9894_v43 = vld [vmem:[%s11067_s29 + $0xb08] ss:$36 sps:$4 sm:$0xff]  }
 0x37c   : > { %v9897_v30 = vld [vmem:[%s11067_s29 + $0xf88] ss:$36 sps:$4 sm:$0xff]  }
 0x37d   : > { %6045 = vmatpush1.bf16.msra.mxu0 %v9834_v45  ;;  %v9902_v45 = vld [vmem:[%s11067_s29 + $0xac4] ss:$36 sps:$4 sm:$0xff]  }
 0x37e   : > { %6086 = vmatpush1.bf16.msra.mxu1 %v9837_v46  ;;  %6046 = vmatprep.subr.bf16.mxu0 %v9842_v47  ;;  %v9905_v46 = vld [vmem:[%s11067_s29 + $0xf44] ss:$36 sps:$4 sm:$0xff]  }
 0x37f   : > { %6087 = vmatprep.subr.bf16.mxu1 %v9845_v48  ;;  %v9900_v47 = vld [vmem:[%s11067_s29 + $0xac0] ss:$36 sps:$4 sm:$0xff]  }
 0x380   : > { %v9903_v48 = vld [vmem:[%s11067_s29 + $0xf40] ss:$36 sps:$4 sm:$0xff]  }
 0x381   : > { %6047 = vmatpush1.bf16.msra.mxu0 %v9840_v49 }
 0x382   : > { %6088 = vmatpush1.bf16.msra.mxu1 %v9843_v50  ;;  %6048 = vmatprep.subr.bf16.mxu0 %v9848_v51 }
 0x383   : > { %6089 = vmatprep.subr.bf16.mxu1 %v9851_v52  ;;  %v9908_v52 = vld [vmem:[%s11067_s29 + $0xa7c] ss:$36 sps:$4 sm:$0xff]  }
 0x384   : > { %v5738_v16 = vpop.f32.mrf.mxu0 }
 0x385   : > { %v5779_v56 = vpop.f32.mrf.mxu1  ;;  %v5739_v57 = vadd.f32 %v5738_v16, %v11523_v29  ;;  %6049 = vmatpush2.bf16.msra.mxu0 %v9846_v53  ;;  %v9911_v53 = vld [vmem:[%s11067_s29 + $0xefc] ss:$36 sps:$4 sm:$0xff]   ;;  %v9914_v16 = vld [vmem:[%s11067_s29 + $0xa34] ss:$36 sps:$4 sm:$0xff]  }
 0x386   : > { %6090 = vmatpush2.bf16.msra.mxu1 %v9849_v60  ;;  %v5740_v0 = vpop.f32.mrf.mxu0  ;;  %6050 = vmatprep.subr.bf16.mxu0 %v9854_v14  ;;  %v9906_v14 = vld [vmem:[%s11067_s29 + $0xa78] ss:$36 sps:$4 sm:$0xff]  }
 0x387   : > { %v5781_v1 = vpop.f32.mrf.mxu1  ;;  %6091 = vmatprep.subr.bf16.mxu1 %v9857_v61  ;;  %v5741_v10 = vadd.f32 %v5740_v0, %v11528_v40  ;;  %v11601_v11 = vadd.f32 %v5779_v56, %v5739_v57  ;;  %v9866_v40 = vld [vmem:[%s11067_s29 + $0x374] ss:$36 sps:$4 sm:$0xff]  }
 0x388   : > { %v5742_v12 = vpop.f32.mrf.mxu0  ;;  %v9909_v61 = vld [vmem:[%s11067_s29 + $0xef8] ss:$36 sps:$4 sm:$0xff]   ;;  %v9912_v57 = vld [vmem:[%s11067_s29 + $0xa30] ss:$36 sps:$4 sm:$0xff]  }
 0x389   : > { %v5783_v29 = vpop.f32.mrf.mxu1  ;;  %v11603_v19 = vadd.f32 %v5781_v1, %v5741_v10  ;;  %6051 = vmatpush2.bf16.msra.mxu0 %v9852_v15  ;;  %v9917_v56 = vld [vmem:[%s11067_s29 + $0xeb4] ss:$36 sps:$4 sm:$0xff]   ;;  %v9920_v1 = vld [vmem:[%s11067_s29 + $0x9ec] ss:$36 sps:$4 sm:$0xff]   ;;  %v9929_v12 = vld [vmem:[%s11067_s29 + $0xe24] ss:$36 sps:$4 sm:$0xff]  }
 0x38a   : > { %6092 = vmatpush2.bf16.msra.mxu1 %v9855_v62  ;;  %v5743_v7 = vpop.f32.mrf.mxu0  ;;  %6052 = vmatprep.subr.bf16.mxu0 %v9860_v17  ;;  %v9915_v0 = vld [vmem:[%s11067_s29 + $0xeb0] ss:$36 sps:$4 sm:$0xff]   ;;  %v9921_v10 = vld [vmem:[%s11067_s29 + $0xe68] ss:$36 sps:$4 sm:$0xff]   ;;  %v9924_v29 = vld [vmem:[%s11067_s29 + $0x9a0] ss:$36 sps:$4 sm:$0xff]  }
 0x38b   : > { %6093 = vmatprep.subr.bf16.mxu1 %v9863_v2  ;;  %v5784_v25 = vpop.f32.mrf.mxu1  ;;  %v9923_v17 = vld [vmem:[%s11067_s29 + $0xe6c] ss:$36 sps:$4 sm:$0xff]   ;;  %v9930_v7 = vld [vmem:[%s11067_s29 + $0x958] ss:$36 sps:$4 sm:$0xff]  }
 0x38c   : > { %v9918_v2 = vld [vmem:[%s11067_s29 + $0x9e8] ss:$36 sps:$4 sm:$0xff]   ;;  %v9941_v25 = vld [vmem:[%s11067_s29 + $0xd94] ss:$36 sps:$4 sm:$0xff]  }
 0x38d   : > { %6053 = vmatpush2.bf16.msra.mxu0 %v9858_v5  ;;  %v9932_v5 = vld [vmem:[%s11067_s29 + $0x95c] ss:$36 sps:$4 sm:$0xff]  }
 0x38e   : > { %6094 = vmatpush2.bf16.msra.mxu1 %v9861_v20  ;;  %6054 = vmatprep.subr.bf16.mxu0 %v9866_v40  ;;  %v9935_v20 = vld [vmem:[%s11067_s29 + $0xddc] ss:$36 sps:$4 sm:$0xff]  }
 0x38f   : > { %6095 = vmatprep.subr.bf16.mxu1 %v9869_v22  ;;  %v9933_v40 = vld [vmem:[%s11067_s29 + $0xdd8] ss:$36 sps:$4 sm:$0xff]  }
 0x390   : > { %v9938_v22 = vld [vmem:[%s11067_s29 + $0x914] ss:$36 sps:$4 sm:$0xff]  }
 0x391   : > { %6055 = vmatpush2.bf16.msra.mxu0 %v9864_v18  ;;  %v9936_v18 = vld [vmem:[%s11067_s29 + $0x910] ss:$36 sps:$4 sm:$0xff]  }
 0x392   : > { %6096 = vmatpush2.bf16.msra.mxu1 %v9867_v6  ;;  %6056 = vmatprep.subr.bf16.mxu0 %v9872_v8  ;;  %v9939_v6 = vld [vmem:[%s11067_s29 + $0xd90] ss:$36 sps:$4 sm:$0xff]  }
 0x393   : > { %6097 = vmatprep.subr.bf16.mxu1 %v9875_v27  ;;  %v9944_v8 = vld [vmem:[%s11067_s29 + $0xd4c] ss:$36 sps:$4 sm:$0xff]  }
 0x394   : > { %v9947_v27 = vld [vmem:[%s11067_s29 + $0x11cc] ss:$36 sps:$4 sm:$0xff]  }
 0x395   : > { %6057 = vmatpush2.bf16.msra.mxu0 %v9870_v28  ;;  %v9942_v28 = vld [vmem:[%s11067_s29 + $0xd48] ss:$36 sps:$4 sm:$0xff]  }
 0x396   : > { %6098 = vmatpush2.bf16.msra.mxu1 %v9873_v54  ;;  %6058 = vmatprep.subr.bf16.mxu0 %v9878_v23  ;;  %v9945_v54 = vld [vmem:[%s11067_s29 + $0x11c8] ss:$36 sps:$4 sm:$0xff]  }
 0x397   : > { %6099 = vmatprep.subr.bf16.mxu1 %v9881_v55  ;;  %v9950_v23 = vld [vmem:[%s11067_s29 + $0xd04] ss:$36 sps:$4 sm:$0xff]  }
 0x398   : > { %v9953_v55 = vld [vmem:[%s11067_s29 + $0x1184] ss:$36 sps:$4 sm:$0xff]  }
 0x399   : > { %6059 = vmatpush2.bf16.msra.mxu0 %v9876_v32 }
 0x39a   : > { %6100 = vmatpush2.bf16.msra.mxu1 %v9879_v24  ;;  %6060 = vmatprep.subr.bf16.mxu0 %v9884_v33  ;;  %v9948_v24 = vld [vmem:[%s11067_s29 + $0xd00] ss:$36 sps:$4 sm:$0xff]  }
 0x39b   : > { %6101 = vmatprep.subr.bf16.mxu1 %v9887_v34  ;;  %v9951_v33 = vld [vmem:[%s11067_s29 + $0x1180] ss:$36 sps:$4 sm:$0xff]  }
 0x39c   : > { %v9956_v34 = vld [vmem:[%s11067_s29 + $0xcbc] ss:$36 sps:$4 sm:$0xff]  }
 0x39d   : > { %6061 = vmatpush2.bf16.msra.mxu0 %v9882_v35  ;;  %v9959_v35 = vld [vmem:[%s11067_s29 + $0x113c] ss:$36 sps:$4 sm:$0xff]  }
 0x39e   : > { %6102 = vmatpush2.bf16.msra.mxu1 %v9885_v37  ;;  %6062 = vmatprep.subr.bf16.mxu0 %v9890_v38 }
 0x39f   : > { %6103 = vmatprep.subr.bf16.mxu1 %v9893_v41  ;;  %v9954_v41 = vld [vmem:[%s11067_s29 + $0xcb8] ss:$36 sps:$4 sm:$0xff]  }
 0x3a1   : > { %6063 = vmatpush2.bf16.msra.mxu0 %v9888_v63  ;;  %v9957_v63 = vld [vmem:[%s11067_s29 + $0x1138] ss:$36 sps:$4 sm:$0xff]  }
 0x3a2   : > { %6104 = vmatpush2.bf16.msra.mxu1 %v9891_v42  ;;  %6114 = vmatprep.subr.bf16.mxu0 %v9896_v13  ;;  %v9962_v42 = vld [vmem:[%s11067_s29 + $0xc74] ss:$36 sps:$4 sm:$0xff]  }
 0x3a3   : > { %6155 = vmatprep.subr.bf16.mxu1 %v9899_v4  ;;  %v9965_v13 = vld [vmem:[%s11067_s29 + $0x10f4] ss:$36 sps:$4 sm:$0xff]  }
 0x3a4   : > { %v5820_v49 = vpop.f32.mrf.mxu0  ;;  %6065 = vmatmul.mubr.bf16.vlgmr.msra.gmra.mxu0 %v11297_v58 }
 0x3a5   : > { %6106 = vmatmul.mubr.bf16.vlgmr.msra.gmra.mxu1 %v11299_v59  ;;  %v11638_v50 = vadd.f32 %v5820_v49, %v11601_v11  ;;  %6115 = vmatpush1.bf16.msra.mxu0 %v9894_v43  ;;  %v9926_v11 = vld [vmem:[%s11067_s29 + $0x9a4] ss:$36 sps:$4 sm:$0xff]   ;;  %v9960_v43 = vld [vmem:[%s11067_s29 + $0xc70] ss:$36 sps:$4 sm:$0xff]  }
 0x3a6   : > { %6156 = vmatpush1.bf16.msra.mxu1 %v9897_v30  ;;  %v5822_v51 = vpop.f32.mrf.mxu0  ;;  %6116 = vmatprep.subr.bf16.mxu0 %v9902_v45  ;;  %v9963_v30 = vld [vmem:[%s11067_s29 + $0x10f0] ss:$36 sps:$4 sm:$0xff]   ;;  %v9974_v49 = vld [vmem:[%s11067_s29 + $0xbe4] ss:$36 sps:$4 sm:$0xff]  }
 0x3a7   : > { %6157 = vmatprep.subr.bf16.mxu1 %v9905_v46  ;;  %v11643_v60 = vadd.f32 %v5822_v51, %v11603_v19  ;;  %6146 = vmatprep.mubr.bf16.mxu0 %v11328_v26  ;;  %v9927_v19 = vld [vmem:[%s11067_s29 + $0xe20] ss:$36 sps:$4 sm:$0xff]   ;;  %v9968_v45 = vld [vmem:[%s11067_s29 + $0xc2c] ss:$36 sps:$4 sm:$0xff]  }
 0x3a8   : > { %6187 = vmatprep.mubr.bf16.mxu1 %v11332_v31  ;;  %v5824_v15 = vpop.f32.mrf.mxu0  ;;  %v9971_v46 = vld [vmem:[%s11067_s29 + $0x10ac] ss:$36 sps:$4 sm:$0xff]   ;;  %v9977_v51 = vld [vmem:[%s11067_s29 + $0x1064] ss:$36 sps:$4 sm:$0xff]  }
 0x3a9   : > { %6117 = vmatpush1.bf16.msra.mxu0 %v9900_v47  ;;  %v9966_v47 = vld [vmem:[%s11067_s29 + $0xc28] ss:$36 sps:$4 sm:$0xff]   ;;  %v9978_v15 = vld [vmem:[%s11067_s29 + $0xb98] ss:$36 sps:$4 sm:$0xff]  }
 0x3aa   : > { %6158 = vmatpush1.bf16.msra.mxu1 %v9903_v48  ;;  %v5825_v62 = vpop.f32.mrf.mxu0  ;;  %6118 = vmatprep.subr.bf16.mxu0 %v9908_v52  ;;  %v9969_v48 = vld [vmem:[%s11067_s29 + $0x10a8] ss:$36 sps:$4 sm:$0xff]   ;;  %v9972_v52 = vld [vmem:[%s11067_s29 + $0xbe0] ss:$36 sps:$4 sm:$0xff]  }
 0x3ab   : > { %6159 = vmatprep.subr.bf16.mxu1 %v9911_v53  ;;  %v9975_v53 = vld [vmem:[%s11067_s29 + $0x1060] ss:$36 sps:$4 sm:$0xff]   ;;  %v9981_v62 = vld [vmem:[%s11067_s29 + $0x1018] ss:$36 sps:$4 sm:$0xff]  }
 0x3ad   : > { %6119 = vmatpush1.bf16.msra.mxu0 %v9906_v14  ;;  %v9980_v14 = vld [vmem:[%s11067_s29 + $0xb9c] ss:$36 sps:$4 sm:$0xff]  }
 0x3ae   : > { %6160 = vmatpush1.bf16.msra.mxu1 %v9909_v61  ;;  %6120 = vmatprep.subr.bf16.mxu0 %v9914_v16  ;;  %v9983_v61 = vld [vmem:[%s11067_s29 + $0x101c] ss:$36 sps:$4 sm:$0xff]   ;;  %v9986_v16 = vld [vmem:[%s11067_s29 + $0xb54] ss:$36 sps:$4 sm:$0xff]  }
 0x3af   : > { %6161 = vmatprep.subr.bf16.mxu1 %v9917_v56  ;;  %v9989_v56 = vld [vmem:[%s11067_s29 + $0xfd4] ss:$36 sps:$4 sm:$0xff]  }
 0x3b1   : > { %6121 = vmatpush1.bf16.msra.mxu0 %v9912_v57  ;;  %v9984_v57 = vld [vmem:[%s11067_s29 + $0xb50] ss:$36 sps:$4 sm:$0xff]  }
 0x3b2   : > { %6162 = vmatpush1.bf16.msra.mxu1 %v9915_v0  ;;  %6122 = vmatprep.subr.bf16.mxu0 %v9920_v1  ;;  %v9987_v0 = vld [vmem:[%s11067_s29 + $0xfd0] ss:$36 sps:$4 sm:$0xff]  }
 0x3b3   : > { %6163 = vmatprep.subr.bf16.mxu1 %v9923_v17  ;;  %v9992_v1 = vld [vmem:[%s11067_s29 + $0x140c] ss:$36 sps:$4 sm:$0xff]   ;;  %v9995_v17 = vld [vmem:[%s11067_s29 + $0x214] ss:$36 sps:$4 sm:$0xff]  }
 0x3b5   : > { %6123 = vmatpush1.bf16.msra.mxu0 %v9918_v2  ;;  %v9990_v2 = vld [vmem:[%s11067_s29 + $0x1408] ss:$36 sps:$4 sm:$0xff]  }
 0x3b6   : > { %6164 = vmatpush1.bf16.msra.mxu1 %v9921_v10  ;;  %6124 = vmatprep.subr.bf16.mxu0 %v9926_v11  ;;  %v9993_v10 = vld [vmem:[%s11067_s29 + $0x210] ss:$36 sps:$4 sm:$0xff]   ;;  %v9998_v11 = vld [vmem:[%s11067_s29 + $0x13c4] ss:$36 sps:$4 sm:$0xff]  }
 0x3b7   : > { %6165 = vmatprep.subr.bf16.mxu1 %v9929_v12  ;;  %v10001_v12 = vld [vmem:[%s11067_s29 + $0x1cc] ss:$36 sps:$4 sm:$0xff]  }
 0x3b9   : > { %6125 = vmatpush1.bf16.msra.mxu0 %v9924_v29  ;;  %v9996_v29 = vld [vmem:[%s11067_s29 + $0x13c0] ss:$36 sps:$4 sm:$0xff]  }
 0x3ba   : > { %6166 = vmatpush1.bf16.msra.mxu1 %v9927_v19  ;;  %6126 = vmatprep.subr.bf16.mxu0 %v9932_v5  ;;  %v9999_v19 = vld [vmem:[%s11067_s29 + $0x1c8] ss:$36 sps:$4 sm:$0xff]  }
 0x3bb   : > { %6167 = vmatprep.subr.bf16.mxu1 %v9935_v20 }
 0x3bd   : > { %6127 = vmatpush1.bf16.msra.mxu0 %v9930_v7 }
 0x3be   : > { %6168 = vmatpush1.bf16.msra.mxu1 %v9933_v40  ;;  %6128 = vmatprep.subr.bf16.mxu0 %v9938_v22  ;;  %v10004_v40 = vld [vmem:[%s11067_s29 + $0x137c] ss:$36 sps:$4 sm:$0xff]   ;;  %v10007_v22 = vld [vmem:[%s11067_s29 + $0x184] ss:$36 sps:$4 sm:$0xff]  }
 0x3bf   : > { %6169 = vmatprep.subr.bf16.mxu1 %v9941_v25 }
 0x3c1   : > { %6129 = vmatpush1.bf16.msra.mxu0 %v9936_v18  ;;  %v10002_v18 = vld [vmem:[%s11067_s29 + $0x1378] ss:$36 sps:$4 sm:$0xff]  }
 0x3c2   : > { %6170 = vmatpush1.bf16.msra.mxu1 %v9939_v6  ;;  %6130 = vmatprep.subr.bf16.mxu0 %v9944_v8  ;;  %v10005_v6 = vld [vmem:[%s11067_s29 + $0x180] ss:$36 sps:$4 sm:$0xff]  }
 0x3c3   : > { %6171 = vmatprep.subr.bf16.mxu1 %v9947_v27 }
 0x3c5   : > { %v11675_v32 = vpop.f32.mrf.mxu1  ;;  %6131 = vmatpush2.bf16.msra.mxu0 %v9942_v28  ;;  %v10010_v28 = vld [vmem:[%s11067_s29 + $0x1334] ss:$36 sps:$4 sm:$0xff]  }
 0x3c6   : > { %6172 = vmatpush2.bf16.msra.mxu1 %v9945_v54  ;;  %6132 = vmatprep.subr.bf16.mxu0 %v9950_v23  ;;  %v10013_v54 = vld [vmem:[%s11067_s29 + $0x13c] ss:$36 sps:$4 sm:$0xff]   ;;  %v10008_v23 = vld [vmem:[%s11067_s29 + $0x1330] ss:$36 sps:$4 sm:$0xff]  }
 0x3c7   : > { %6173 = vmatprep.subr.bf16.mxu1 %v9953_v55  ;;  %v11681_v37 = vpop.f32.mrf.mxu1  ;;  %v10011_v55 = vld [vmem:[%s11067_s29 + $0x138] ss:$36 sps:$4 sm:$0xff]  }
 0x3c9   : > { %v5865_v38 = vpop.f32.mrf.mxu1  ;;  %6133 = vmatpush2.bf16.msra.mxu0 %v9948_v24  ;;  %v10019_v24 = vld [vmem:[%s11067_s29 + $0xf4] ss:$36 sps:$4 sm:$0xff]  }
 0x3ca   : > { %6174 = vmatpush2.bf16.msra.mxu1 %v9951_v33  ;;  %6134 = vmatprep.subr.bf16.mxu0 %v9956_v34  ;;  %v10014_v33 = vld [vmem:[%s11067_s29 + $0x12e8] ss:$36 sps:$4 sm:$0xff]   ;;  %v10017_v34 = vld [vmem:[%s11067_s29 + $0xf0] ss:$36 sps:$4 sm:$0xff]   ;;  %v10020_v38 = vld [vmem:[%s11067_s29 + $0x12a0] ss:$36 sps:$4 sm:$0xff]  }
 0x3cb   : > { %6175 = vmatprep.subr.bf16.mxu1 %v9959_v35  ;;  %v5866_v4 = vpop.f32.mrf.mxu1  ;;  %v10022_v35 = vld [vmem:[%s11067_s29 + $0x12a4] ss:$36 sps:$4 sm:$0xff]  }
 0x3cc   : > { %v10029_v4 = vld [vmem:[%s11067_s29 + $0x60] ss:$36 sps:$4 sm:$0xff]  }
 0x3cd   : > { %6135 = vmatpush2.bf16.msra.mxu0 %v9954_v41  ;;  %v10023_v41 = vld [vmem:[%s11067_s29 + $0xa8] ss:$36 sps:$4 sm:$0xff]  }
 0x3ce   : > { %6176 = vmatpush2.bf16.msra.mxu1 %v9957_v63  ;;  %6136 = vmatprep.subr.bf16.mxu0 %v9962_v42  ;;  %v10028_v63 = vld [vmem:[%s11067_s29 + $0x125c] ss:$36 sps:$4 sm:$0xff]   ;;  %v10031_v42 = vld [vmem:[%s11067_s29 + $0x64] ss:$36 sps:$4 sm:$0xff]  }
 0x3cf   : > { %6177 = vmatprep.subr.bf16.mxu1 %v9965_v13  ;;  %v10026_v13 = vld [vmem:[%s11067_s29 + $0x1258] ss:$36 sps:$4 sm:$0xff]  }
 0x3d1   : > { %6137 = vmatpush2.bf16.msra.mxu0 %v9960_v43  ;;  %v10034_v43 = vld [vmem:[%s11067_s29 + $0x1214] ss:$36 sps:$4 sm:$0xff]  }
 0x3d2   : > { %6178 = vmatpush2.bf16.msra.mxu1 %v9963_v30  ;;  %6138 = vmatprep.subr.bf16.mxu0 %v9968_v45  ;;  %v10037_v30 = vld [vmem:[%s11067_s29 + $0x1c] ss:$36 sps:$4 sm:$0xff]   ;;  %v10032_v45 = vld [vmem:[%s11067_s29 + $0x1210] ss:$36 sps:$4 sm:$0xff]  }
 0x3d3   : > { %6179 = vmatprep.subr.bf16.mxu1 %v9971_v46  ;;  %v10035_v46 = vld [vmem:[%s11067_s29 + $0x18] ss:$36 sps:$4 sm:$0xff]  }
 0x3d5   : > { %6139 = vmatpush2.bf16.msra.mxu0 %v9966_v47  ;;  %v10040_v47 = vld [vmem:[%s11067_s29 + $0x454] ss:$36 sps:$4 sm:$0xff]  }
 0x3d6   : > { %6180 = vmatpush2.bf16.msra.mxu1 %v9969_v48  ;;  %6140 = vmatprep.subr.bf16.mxu0 %v9974_v49  ;;  %v10043_v48 = vld [vmem:[%s11067_s29 + $0x694] ss:$36 sps:$4 sm:$0xff]  }
 0x3d7   : > { %6181 = vmatprep.subr.bf16.mxu1 %v9977_v51  ;;  %v10038_v49 = vld [vmem:[%s11067_s29 + $0x450] ss:$36 sps:$4 sm:$0xff]  }
 0x3d8   : > { %v10041_v51 = vld [vmem:[%s11067_s29 + $0x690] ss:$36 sps:$4 sm:$0xff]  }
 0x3d9   : > { %6141 = vmatpush2.bf16.msra.mxu0 %v9972_v52  ;;  %v10046_v52 = vld [vmem:[%s11067_s29 + $0x40c] ss:$36 sps:$4 sm:$0xff]  }
 0x3da   : > { %6182 = vmatpush2.bf16.msra.mxu1 %v9975_v53  ;;  %6142 = vmatprep.subr.bf16.mxu0 %v9980_v14  ;;  %v10049_v53 = vld [vmem:[%s11067_s29 + $0x64c] ss:$36 sps:$4 sm:$0xff]  }
 0x3db   : > { %6183 = vmatprep.subr.bf16.mxu1 %v9983_v61 }
 0x3dd   : > { %6143 = vmatpush2.bf16.msra.mxu0 %v9978_v15  ;;  %v10044_v15 = vld [vmem:[%s11067_s29 + $0x408] ss:$36 sps:$4 sm:$0xff]  }
 0x3de   : > { %6184 = vmatpush2.bf16.msra.mxu1 %v9981_v62  ;;  %6144 = vmatprep.subr.bf16.mxu0 %v9986_v16  ;;  %v10047_v62 = vld [vmem:[%s11067_s29 + $0x648] ss:$36 sps:$4 sm:$0xff]  }
 0x3df   : > { %6185 = vmatprep.subr.bf16.mxu1 %v9989_v56  ;;  %v10052_v56 = vld [vmem:[%s11067_s29 + $0x3c4] ss:$36 sps:$4 sm:$0xff]  }
 0x3e1   : > { %6145 = vmatpush2.bf16.msra.mxu0 %v9984_v57  ;;  %v10055_v57 = vld [vmem:[%s11067_s29 + $0x604] ss:$36 sps:$4 sm:$0xff]  }
 0x3e2   : > { %6186 = vmatpush2.bf16.msra.mxu1 %v9987_v0  ;;  %6196 = vmatprep.subr.bf16.mxu0 %v9992_v1 }
 0x3e3   : > { %6237 = vmatprep.subr.bf16.mxu1 %v9995_v17  ;;  %v10050_v17 = vld [vmem:[%s11067_s29 + $0x3c0] ss:$36 sps:$4 sm:$0xff]  }
 0x3e4   : > { %v5902_v5 = vpop.f32.mrf.mxu0  ;;  %6147 = vmatmul.mubr.bf16.vlgmr.msra.gmra.mxu0 %v11373_v3 }
 0x3e5   : > { %6188 = vmatmul.mubr.bf16.vlgmr.msra.gmra.mxu1 %v11376_v9  ;;  %v11716_v20 = vadd.f32 %v5902_v5, %v11675_v32  ;;  %6197 = vmatpush1.bf16.msra.mxu0 %v9990_v2  ;;  %v10016_v32 = vld [vmem:[%s11067_s29 + $0x12ec] ss:$36 sps:$4 sm:$0xff]   ;;  %v10053_v2 = vld [vmem:[%s11067_s29 + $0x600] ss:$36 sps:$4 sm:$0xff]   ;;  %v10064_v5 = vld [vmem:[%s11067_s29 + $0x334] ss:$36 sps:$4 sm:$0xff]  }
 0x3e6   : > { %6238 = vmatpush1.bf16.msra.mxu1 %v9993_v10  ;;  %v5904_v7 = vpop.f32.mrf.mxu0  ;;  %6198 = vmatprep.subr.bf16.mxu0 %v9998_v11  ;;  %v10058_v10 = vld [vmem:[%s11067_s29 + $0x37c] ss:$36 sps:$4 sm:$0xff]  }
 0x3e7   : > { %6239 = vmatprep.subr.bf16.mxu1 %v10001_v12  ;;  %v11721_v25 = vadd.f32 %v5904_v7, %v11681_v37  ;;  %6228 = vmatprep.mubr.bf16.mxu0 %v10763_v21  ;;  %v10025_v37 = vld [vmem:[%s11067_s29 + $0xac] ss:$36 sps:$4 sm:$0xff]   ;;  %v10061_v11 = vld [vmem:[%s11067_s29 + $0x5bc] ss:$36 sps:$4 sm:$0xff]  }
 0x3e8   : > { %6269 = vmatprep.mubr.bf16.mxu1 %v11273_v36  ;;  %v5906_v8 = vpop.f32.mrf.mxu0  ;;  %v10062_v7 = vld [vmem:[%s11067_s29 + $0x330] ss:$36 sps:$4 sm:$0xff]  }
 0x3e9   : > { %6199 = vmatpush1.bf16.msra.mxu0 %v9996_v29  ;;  %v10056_v29 = vld [vmem:[%s11067_s29 + $0x378] ss:$36 sps:$4 sm:$0xff]   ;;  %v10076_v8 = vld [vmem:[%s11067_s29 + $0x2a4] ss:$36 sps:$4 sm:$0xff]  }
 0x3ea   : > { %6240 = vmatpush1.bf16.msra.mxu1 %v9999_v19  ;;  %v5907_v27 = vpop.f32.mrf.mxu0  ;;  %6200 = vmatprep.subr.bf16.mxu0 %v10004_v40  ;;  %v10059_v19 = vld [vmem:[%s11067_s29 + $0x5b8] ss:$36 sps:$4 sm:$0xff]   ;;  %v10065_v40 = vld [vmem:[%s11067_s29 + $0x570] ss:$36 sps:$4 sm:$0xff]  }
 0x3eb   : > { %6241 = vmatprep.subr.bf16.mxu1 %v10007_v22  ;;  %v10070_v22 = vld [vmem:[%s11067_s29 + $0x2ec] ss:$36 sps:$4 sm:$0xff]   ;;  %v10079_v27 = vld [vmem:[%s11067_s29 + $0x4e4] ss:$36 sps:$4 sm:$0xff]  }
 0x3ed   : > { %6201 = vmatpush1.bf16.msra.mxu0 %v10002_v18  ;;  %v10068_v18 = vld [vmem:[%s11067_s29 + $0x2e8] ss:$36 sps:$4 sm:$0xff]  }
 0x3ee   : > { %6242 = vmatpush1.bf16.msra.mxu1 %v10005_v6  ;;  %6202 = vmatprep.subr.bf16.mxu0 %v10010_v28  ;;  %v10071_v6 = vld [vmem:[%s11067_s29 + $0x528] ss:$36 sps:$4 sm:$0xff]   ;;  %v10074_v28 = vld [vmem:[%s11067_s29 + $0x2a0] ss:$36 sps:$4 sm:$0xff]  }
 0x3ef   : > { %6243 = vmatprep.subr.bf16.mxu1 %v10013_v54  ;;  %v10077_v54 = vld [vmem:[%s11067_s29 + $0x4e0] ss:$36 sps:$4 sm:$0xff]  }
 0x3f1   : > { %6203 = vmatpush1.bf16.msra.mxu0 %v10008_v23  ;;  %v10082_v23 = vld [vmem:[%s11067_s29 + $0x25c] ss:$36 sps:$4 sm:$0xff]  }
 0x3f2   : > { %6244 = vmatpush1.bf16.msra.mxu1 %v10011_v55  ;;  %6204 = vmatprep.subr.bf16.mxu0 %v10016_v32  ;;  %v10085_v55 = vld [vmem:[%s11067_s29 + $0x49c] ss:$36 sps:$4 sm:$0xff]  }
 0x3f3   : > { %6245 = vmatprep.subr.bf16.mxu1 %v10019_v24  ;;  %v10080_v32 = vld [vmem:[%s11067_s29 + $0x258] ss:$36 sps:$4 sm:$0xff]  }
 0x3f4   : > { %v10083_v24 = vld [vmem:[%s11067_s29 + $0x498] ss:$36 sps:$4 sm:$0xff]  }
 0x3f5   : > { %6205 = vmatpush1.bf16.msra.mxu0 %v10014_v33  ;;  %v10088_v33 = vld [vmem:[%s11067_s29 + $0x8d4] ss:$36 sps:$4 sm:$0xff]  }
 0x3f6   : > { %6246 = vmatpush1.bf16.msra.mxu1 %v10017_v34  ;;  %6206 = vmatprep.subr.bf16.mxu0 %v10022_v35  ;;  %v10091_v34 = vld [vmem:[%s11067_s29 + $0xb14] ss:$36 sps:$4 sm:$0xff]  }
 0x3f7   : > { %6247 = vmatprep.subr.bf16.mxu1 %v10025_v37  ;;  %v10086_v35 = vld [vmem:[%s11067_s29 + $0x8d0] ss:$36 sps:$4 sm:$0xff]  }
 0x3f8   : > { %v10089_v37 = vld [vmem:[%s11067_s29 + $0xb10] ss:$36 sps:$4 sm:$0xff]  }
 0x3f9   : > { %6207 = vmatpush1.bf16.msra.mxu0 %v10020_v38  ;;  %v10094_v38 = vld [vmem:[%s11067_s29 + $0x88c] ss:$36 sps:$4 sm:$0xff]  }
 0x3fa   : > { %6248 = vmatpush1.bf16.msra.mxu1 %v10023_v41  ;;  %6208 = vmatprep.subr.bf16.mxu0 %v10028_v63  ;;  %v10097_v41 = vld [vmem:[%s11067_s29 + $0xacc] ss:$36 sps:$4 sm:$0xff]  }
 0x3fb   : > { %6249 = vmatprep.subr.bf16.mxu1 %v10031_v42 }
 0x3fd   : > { %6209 = vmatpush1.bf16.msra.mxu0 %v10026_v13 }
 0x3fe   : > { %6250 = vmatpush1.bf16.msra.mxu1 %v10029_v4  ;;  %6210 = vmatprep.subr.bf16.mxu0 %v10034_v43  ;;  %v10092_v4 = vld [vmem:[%s11067_s29 + $0x888] ss:$36 sps:$4 sm:$0xff]  }
 0x3ff   : > { %6251 = vmatprep.subr.bf16.mxu1 %v10037_v30  ;;  %v10095_v43 = vld [vmem:[%s11067_s29 + $0xac8] ss:$36 sps:$4 sm:$0xff]  }
 0x401   : > { %6211 = vmatpush1.bf16.msra.mxu0 %v10032_v45 }
 0x402   : > { %6252 = vmatpush1.bf16.msra.mxu1 %v10035_v46  ;;  %6278 = vmatprep.subr.bf16.mxu0 %v10043_v48  ;;  %v10100_v46 = vld [vmem:[%s11067_s29 + $0x844] ss:$36 sps:$4 sm:$0xff]  }
 0x403   : > { %6253 = vmatprep.subr.bf16.mxu1 %v10040_v47  ;;  %v10103_v47 = vld [vmem:[%s11067_s29 + $0xa84] ss:$36 sps:$4 sm:$0xff]  }
 0x404   : > { %6229 = vmatmul.mubr.bf16.vlgmr.msra.gmra.mxu0 %v11413_v44 }
 0x405   : > { %v5943_v14 = vpop.f32.mrf.mxu1  ;;  %6279 = vmatpush1.bf16.msra.mxu0 %v10041_v51  ;;  %6310 = vmatprep.mubr.bf16.mxu0 %v11276_v39 }
 0x406   : > { %v11755_v61 = vadd.f32 %v5943_v14, %v11716_v20  ;;  %6254 = vmatpush2.bf16.msra.mxu1 %v10038_v49  ;;  %6280 = vmatprep.subr.bf16.mxu0 %v10049_v53  ;;  %v10067_v20 = vld [vmem:[%s11067_s29 + $0x574] ss:$36 sps:$4 sm:$0xff]   ;;  %v10098_v14 = vld [vmem:[%s11067_s29 + $0x840] ss:$36 sps:$4 sm:$0xff]  }
 0x407   : > { %v5945_v16 = vpop.f32.mrf.mxu1  ;;  %6255 = vmatprep.subr.bf16.mxu1 %v10046_v52 }
 0x408   : > { %v11762_v0 = vadd.f32 %v5945_v16, %v11721_v25  ;;  %v10073_v25 = vld [vmem:[%s11067_s29 + $0x52c] ss:$36 sps:$4 sm:$0xff]   ;;  %v10109_v16 = vld [vmem:[%s11067_s29 + $0xa3c] ss:$36 sps:$4 sm:$0xff]  }
 0x409   : > { %v5947_v1 = vpop.f32.mrf.mxu1  ;;  %6281 = vmatpush1.bf16.msra.mxu0 %v10047_v62  ;;  %v10106_v62 = vld [vmem:[%s11067_s29 + $0x7fc] ss:$36 sps:$4 sm:$0xff]  }
 0x40a   : > { %6256 = vmatpush2.bf16.msra.mxu1 %v10044_v15  ;;  %6282 = vmatprep.subr.bf16.mxu0 %v10055_v57  ;;  %v10104_v57 = vld [vmem:[%s11067_s29 + $0x7f8] ss:$36 sps:$4 sm:$0xff]  }
 0x40b   : > { %6257 = vmatprep.subr.bf16.mxu1 %v10052_v56  ;;  %v5948_v12 = vpop.f32.mrf.mxu1  ;;  %v10112_v1 = vld [vmem:[%s11067_s29 + $0x7b4] ss:$36 sps:$4 sm:$0xff]  }
 0x40c   : > { %v10121_v12 = vld [vmem:[%s11067_s29 + $0x9ac] ss:$36 sps:$4 sm:$0xff]  }
 0x40d   : > { %6283 = vmatpush1.bf16.msra.mxu0 %v10053_v2  ;;  %v10110_v2 = vld [vmem:[%s11067_s29 + $0x7b0] ss:$36 sps:$4 sm:$0xff]  }
 0x40e   : > { %6258 = vmatpush2.bf16.msra.mxu1 %v10050_v17  ;;  %6284 = vmatprep.subr.bf16.mxu0 %v10061_v11  ;;  %v10115_v17 = vld [vmem:[%s11067_s29 + $0x9f4] ss:$36 sps:$4 sm:$0xff]   ;;  %v10118_v11 = vld [vmem:[%s11067_s29 + $0x76c] ss:$36 sps:$4 sm:$0xff]  }
 0x40f   : > { %6259 = vmatprep.subr.bf16.mxu1 %v10058_v10  ;;  %v10113_v10 = vld [vmem:[%s11067_s29 + $0x9f0] ss:$36 sps:$4 sm:$0xff]  }
 0x411   : > { %6285 = vmatpush1.bf16.msra.mxu0 %v10059_v19  ;;  %v10119_v19 = vld [vmem:[%s11067_s29 + $0x9a8] ss:$36 sps:$4 sm:$0xff]  }
 0x412   : > { %6260 = vmatpush2.bf16.msra.mxu1 %v10056_v29  ;;  %6286 = vmatprep.subr.bf16.mxu0 %v10067_v20  ;;  %v10116_v29 = vld [vmem:[%s11067_s29 + $0x768] ss:$36 sps:$4 sm:$0xff]  }
 0x413   : > { %6261 = vmatprep.subr.bf16.mxu1 %v10064_v5  ;;  %v10124_v5 = vld [vmem:[%s11067_s29 + $0x724] ss:$36 sps:$4 sm:$0xff]  }
 0x414   : > { %v10127_v20 = vld [vmem:[%s11067_s29 + $0x964] ss:$36 sps:$4 sm:$0xff]  }
 0x415   : > { %6287 = vmatpush1.bf16.msra.mxu0 %v10065_v40  ;;  %v10125_v40 = vld [vmem:[%s11067_s29 + $0x960] ss:$36 sps:$4 sm:$0xff]  }
 0x416   : > { %6262 = vmatpush2.bf16.msra.mxu1 %v10062_v7  ;;  %6288 = vmatprep.subr.bf16.mxu0 %v10073_v25  ;;  %v10122_v7 = vld [vmem:[%s11067_s29 + $0x720] ss:$36 sps:$4 sm:$0xff]  }
 0x417   : > { %6263 = vmatprep.subr.bf16.mxu1 %v10070_v22  ;;  %v10130_v22 = vld [vmem:[%s11067_s29 + $0x6dc] ss:$36 sps:$4 sm:$0xff]  }
 0x418   : > { %v10133_v25 = vld [vmem:[%s11067_s29 + $0x91c] ss:$36 sps:$4 sm:$0xff]  }
 0x419   : > { %6289 = vmatpush1.bf16.msra.mxu0 %v10071_v6  ;;  %v10131_v6 = vld [vmem:[%s11067_s29 + $0x918] ss:$36 sps:$4 sm:$0xff]  }
 0x41a   : > { %6264 = vmatpush2.bf16.msra.mxu1 %v10068_v18  ;;  %6290 = vmatprep.subr.bf16.mxu0 %v10079_v27  ;;  %v10128_v18 = vld [vmem:[%s11067_s29 + $0x6d8] ss:$36 sps:$4 sm:$0xff]  }
 0x41b   : > { %6265 = vmatprep.subr.bf16.mxu1 %v10076_v8  ;;  %v10136_v8 = vld [vmem:[%s11067_s29 + $0xd54] ss:$36 sps:$4 sm:$0xff]  }
 0x41c   : > { %v10139_v27 = vld [vmem:[%s11067_s29 + $0xf94] ss:$36 sps:$4 sm:$0xff]  }
 0x41d   : > { %6291 = vmatpush1.bf16.msra.mxu0 %v10077_v54  ;;  %v10137_v54 = vld [vmem:[%s11067_s29 + $0xf90] ss:$36 sps:$4 sm:$0xff]  }
 0x41e   : > { %6266 = vmatpush2.bf16.msra.mxu1 %v10074_v28  ;;  %6292 = vmatprep.subr.bf16.mxu0 %v10085_v55  ;;  %v10134_v28 = vld [vmem:[%s11067_s29 + $0xd50] ss:$36 sps:$4 sm:$0xff]  }
 0x41f   : > { %6267 = vmatprep.subr.bf16.mxu1 %v10082_v23  ;;  %v10142_v23 = vld [vmem:[%s11067_s29 + $0xd0c] ss:$36 sps:$4 sm:$0xff]  }
 0x420   : > { %v10145_v55 = vld [vmem:[%s11067_s29 + $0xf4c] ss:$36 sps:$4 sm:$0xff]  }
 0x421   : > { %6293 = vmatpush1.bf16.msra.mxu0 %v10083_v24  ;;  %v10143_v24 = vld [vmem:[%s11067_s29 + $0xf48] ss:$36 sps:$4 sm:$0xff]  }
 0x422   : > { %6268 = vmatpush2.bf16.msra.mxu1 %v10080_v32  ;;  %6294 = vmatprep.subr.bf16.mxu0 %v10088_v33  ;;  %v10140_v32 = vld [vmem:[%s11067_s29 + $0xd08] ss:$36 sps:$4 sm:$0xff]  }
 0x423   : > { %6319 = vmatprep.subr.bf16.mxu1 %v10091_v34  ;;  %v10148_v33 = vld [vmem:[%s11067_s29 + $0xcc4] ss:$36 sps:$4 sm:$0xff]  }
 0x424   : > { %v5984_v63 = vpop.f32.mrf.mxu0  ;;  %v10151_v34 = vld [vmem:[%s11067_s29 + $0xf04] ss:$36 sps:$4 sm:$0xff]  }
 0x425   : > { %6270 = vmatmul.mubr.bf16.vlgmr.msra.gmra.mxu1 %v11297_v58  ;;  %v6025_v42 = vpop.f32.mrf.mxu1  ;;  %v5985_v13 = vadd.f32 %v5984_v63, %v11755_v61  ;;  %6295 = vmatpush2.bf16.msra.mxu0 %v10086_v35  ;;  %v10101_v61 = vld [vmem:[%s11067_s29 + $0xa80] ss:$36 sps:$4 sm:$0xff]   ;;  %v10152_v63 = vld [vmem:[%s11067_s29 + $0xc78] ss:$36 sps:$4 sm:$0xff]  }
 0x426   : > { %6320 = vmatpush1.bf16.msra.mxu1 %v10089_v37  ;;  %v5986_v30 = vpop.f32.mrf.mxu0  ;;  %6296 = vmatprep.subr.bf16.mxu0 %v10094_v38  ;;  %v10146_v35 = vld [vmem:[%s11067_s29 + $0xcc0] ss:$36 sps:$4 sm:$0xff]  }
 0x427   : > { %v6027_v45 = vpop.f32.mrf.mxu1  ;;  %6321 = vmatprep.subr.bf16.mxu1 %v10097_v41  ;;  %v5987_v48 = vadd.f32 %v5986_v30, %v11762_v0  ;;  %v11800_v49 = vadd.f32 %v6025_v42, %v5985_v13  ;;  %6351 = vmatprep.mubr.bf16.mxu1 %v11328_v26  ;;  %v10107_v0 = vld [vmem:[%s11067_s29 + $0xa38] ss:$36 sps:$4 sm:$0xff]   ;;  %v10149_v37 = vld [vmem:[%s11067_s29 + $0xf00] ss:$36 sps:$4 sm:$0xff]   ;;  %v10161_v30 = vld [vmem:[%s11067_s29 + $0xe70] ss:$36 sps:$4 sm:$0xff]  }
 0x428   : > { %v5988_v51 = vpop.f32.mrf.mxu0  ;;  %v10154_v38 = vld [vmem:[%s11067_s29 + $0xc7c] ss:$36 sps:$4 sm:$0xff]   ;;  %v10160_v13 = vld [vmem:[%s11067_s29 + $0xc34] ss:$36 sps:$4 sm:$0xff]  }
 0x429   : > { %v6029_v52 = vpop.f32.mrf.mxu1  ;;  %v11803_v53 = vadd.f32 %v6027_v45, %v5987_v48  ;;  %6297 = vmatpush2.bf16.msra.mxu0 %v10092_v4  ;;  %v10157_v41 = vld [vmem:[%s11067_s29 + $0xebc] ss:$36 sps:$4 sm:$0xff]   ;;  %v10163_v4 = vld [vmem:[%s11067_s29 + $0xe74] ss:$36 sps:$4 sm:$0xff]   ;;  %v10166_v45 = vld [vmem:[%s11067_s29 + $0xbec] ss:$36 sps:$4 sm:$0xff]  }
 0x42a   : > { %6322 = vmatpush1.bf16.msra.mxu1 %v10095_v43  ;;  %v5989_v15 = vpop.f32.mrf.mxu0  ;;  %6298 = vmatprep.subr.bf16.mxu0 %v10100_v46  ;;  %v10155_v42 = vld [vmem:[%s11067_s29 + $0xeb8] ss:$36 sps:$4 sm:$0xff]   ;;  %v10158_v43 = vld [vmem:[%s11067_s29 + $0xc30] ss:$36 sps:$4 sm:$0xff]   ;;  %v10167_v48 = vld [vmem:[%s11067_s29 + $0xe28] ss:$36 sps:$4 sm:$0xff]  }
 0x42b   : > { %6323 = vmatprep.subr.bf16.mxu1 %v10103_v47  ;;  %v6030_v56 = vpop.f32.mrf.mxu1  ;;  %v10169_v46 = vld [vmem:[%s11067_s29 + $0xe2c] ss:$36 sps:$4 sm:$0xff]   ;;  %v10172_v51 = vld [vmem:[%s11067_s29 + $0xba4] ss:$36 sps:$4 sm:$0xff]   ;;  %v10178_v15 = vld [vmem:[%s11067_s29 + $0xb5c] ss:$36 sps:$4 sm:$0xff]  }
 0x42c   : > { %v10164_v47 = vld [vmem:[%s11067_s29 + $0xbe8] ss:$36 sps:$4 sm:$0xff]   ;;  %v10179_v56 = vld [vmem:[%s11067_s29 + $0xd98] ss:$36 sps:$4 sm:$0xff]  }
 0x42d   : > { %6299 = vmatpush2.bf16.msra.mxu0 %v10098_v14  ;;  %v10175_v52 = vld [vmem:[%s11067_s29 + $0xde4] ss:$36 sps:$4 sm:$0xff]  }
 0x42e   : > { %6324 = vmatpush1.bf16.msra.mxu1 %v10101_v61  ;;  %6300 = vmatprep.subr.bf16.mxu0 %v10106_v62  ;;  %v10170_v14 = vld [vmem:[%s11067_s29 + $0xba0] ss:$36 sps:$4 sm:$0xff]  }
 0x42f   : > { %6325 = vmatprep.subr.bf16.mxu1 %v10109_v16  ;;  %v10173_v61 = vld [vmem:[%s11067_s29 + $0xde0] ss:$36 sps:$4 sm:$0xff]   ;;  %v10176_v16 = vld [vmem:[%s11067_s29 + $0xb58] ss:$36 sps:$4 sm:$0xff]  }
 0x430   : > { %v10181_v62 = vld [vmem:[%s11067_s29 + $0xd9c] ss:$36 sps:$4 sm:$0xff]  }
 0x431   : > { %6301 = vmatpush2.bf16.msra.mxu0 %v10104_v57  ;;  %v10184_v57 = vld [vmem:[%s11067_s29 + $0x11d4] ss:$36 sps:$4 sm:$0xff]  }
 0x432   : > { %6326 = vmatpush1.bf16.msra.mxu1 %v10107_v0  ;;  %6302 = vmatprep.subr.bf16.mxu0 %v10112_v1  ;;  %v10187_v0 = vld [vmem:[%s11067_s29 + $0x1414] ss:$36 sps:$4 sm:$0xff]  }
 0x433   : > { %6327 = vmatprep.subr.bf16.mxu1 %v10115_v17  ;;  %v10182_v1 = vld [vmem:[%s11067_s29 + $0x11d0] ss:$36 sps:$4 sm:$0xff]  }
 0x434   : > { %v10185_v17 = vld [vmem:[%s11067_s29 + $0x1410] ss:$36 sps:$4 sm:$0xff]  }
 0x435   : > { %6303 = vmatpush2.bf16.msra.mxu0 %v10110_v2  ;;  %v10190_v2 = vld [vmem:[%s11067_s29 + $0x118c] ss:$36 sps:$4 sm:$0xff]  }
 0x436   : > { %6328 = vmatpush1.bf16.msra.mxu1 %v10113_v10  ;;  %6304 = vmatprep.subr.bf16.mxu0 %v10118_v11  ;;  %v10193_v10 = vld [vmem:[%s11067_s29 + $0x13cc] ss:$36 sps:$4 sm:$0xff]  }
 0x437   : > { %6329 = vmatprep.subr.bf16.mxu1 %v10121_v12 }
 0x439   : > { %6305 = vmatpush2.bf16.msra.mxu0 %v10116_v29 }
 0x43a   : > { %6330 = vmatpush1.bf16.msra.mxu1 %v10119_v19  ;;  %6306 = vmatprep.subr.bf16.mxu0 %v10124_v5  ;;  %v10188_v19 = vld [vmem:[%s11067_s29 + $0x1188] ss:$36 sps:$4 sm:$0xff]  }
 0x43b   : > { %6331 = vmatprep.subr.bf16.mxu1 %v10127_v20  ;;  %v10191_v5 = vld [vmem:[%s11067_s29 + $0x13c8] ss:$36 sps:$4 sm:$0xff]  }
 0x43d   : > { %6307 = vmatpush2.bf16.msra.mxu0 %v10122_v7 }
 0x43e   : > { %6332 = vmatpush1.bf16.msra.mxu1 %v10125_v40  ;;  %6308 = vmatprep.subr.bf16.mxu0 %v10130_v22  ;;  %v10196_v40 = vld [vmem:[%s11067_s29 + $0x1144] ss:$36 sps:$4 sm:$0xff]  }
 0x43f   : > { %6333 = vmatprep.subr.bf16.mxu1 %v10133_v25  ;;  %v10199_v22 = vld [vmem:[%s11067_s29 + $0x1384] ss:$36 sps:$4 sm:$0xff]  }
 0x441   : > { %6309 = vmatpush2.bf16.msra.mxu0 %v10128_v18 }
 0x442   : > { %6334 = vmatpush1.bf16.msra.mxu1 %v10131_v6  ;;  %6360 = vmatprep.subr.bf16.mxu0 %v10139_v27  ;;  %v10197_v27 = vld [vmem:[%s11067_s29 + $0x1380] ss:$36 sps:$4 sm:$0xff]  }
 0x443   : > { %6335 = vmatprep.subr.bf16.mxu1 %v10136_v8  ;;  %v10194_v8 = vld [vmem:[%s11067_s29 + $0x1140] ss:$36 sps:$4 sm:$0xff]  }
 0x444   : > { %6311 = vmatmul.mubr.bf16.vlgmr.msra.gmra.mxu0 %v11299_v59 }
 0x445   : > { %6361 = vmatpush1.bf16.msra.mxu0 %v10137_v54  ;;  %6392 = vmatprep.mubr.bf16.mxu0 %v11332_v31  ;;  %v10202_v54 = vld [vmem:[%s11067_s29 + $0x10fc] ss:$36 sps:$4 sm:$0xff]  }
 0x446   : > { %6336 = vmatpush2.bf16.msra.mxu1 %v10134_v28  ;;  %6362 = vmatprep.subr.bf16.mxu0 %v10145_v55 }
 0x447   : > { %6337 = vmatprep.subr.bf16.mxu1 %v10142_v23  ;;  %v10205_v23 = vld [vmem:[%s11067_s29 + $0x133c] ss:$36 sps:$4 sm:$0xff]  }
 0x449   : > { %6363 = vmatpush1.bf16.msra.mxu0 %v10143_v24  ;;  %v10208_v24 = vld [vmem:[%s11067_s29 + $0x10b4] ss:$36 sps:$4 sm:$0xff]  }
 0x44a   : > { %6338 = vmatpush2.bf16.msra.mxu1 %v10140_v32  ;;  %6364 = vmatprep.subr.bf16.mxu0 %v10151_v34  ;;  %v10203_v32 = vld [vmem:[%s11067_s29 + $0x1338] ss:$36 sps:$4 sm:$0xff]   ;;  %v10206_v34 = vld [vmem:[%s11067_s29 + $0x10b0] ss:$36 sps:$4 sm:$0xff]  }
 0x44b   : > { %6339 = vmatprep.subr.bf16.mxu1 %v10148_v33  ;;  %v10211_v33 = vld [vmem:[%s11067_s29 + $0x12f4] ss:$36 sps:$4 sm:$0xff]  }
 0x44d   : > { %6365 = vmatpush1.bf16.msra.mxu0 %v10149_v37  ;;  %v10214_v37 = vld [vmem:[%s11067_s29 + $0x106c] ss:$36 sps:$4 sm:$0xff]  }
 0x44e   : > { %6340 = vmatpush2.bf16.msra.mxu1 %v10146_v35  ;;  %6366 = vmatprep.subr.bf16.mxu0 %v10157_v41  ;;  %v10209_v35 = vld [vmem:[%s11067_s29 + $0x12f0] ss:$36 sps:$4 sm:$0xff]   ;;  %v10212_v41 = vld [vmem:[%s11067_s29 + $0x1068] ss:$36 sps:$4 sm:$0xff]  }
 0x44f   : > { %6341 = vmatprep.subr.bf16.mxu1 %v10154_v38  ;;  %v10217_v38 = vld [vmem:[%s11067_s29 + $0x12ac] ss:$36 sps:$4 sm:$0xff]  }
 0x451   : > { %6367 = vmatpush1.bf16.msra.mxu0 %v10155_v42  ;;  %v10220_v42 = vld [vmem:[%s11067_s29 + $0x1024] ss:$36 sps:$4 sm:$0xff]  }
 0x452   : > { %6342 = vmatpush2.bf16.msra.mxu1 %v10152_v63  ;;  %6368 = vmatprep.subr.bf16.mxu0 %v10163_v4  ;;  %v10215_v63 = vld [vmem:[%s11067_s29 + $0x12a8] ss:$36 sps:$4 sm:$0xff]   ;;  %v10218_v4 = vld [vmem:[%s11067_s29 + $0x1020] ss:$36 sps:$4 sm:$0xff]  }
 0x453   : > { %6343 = vmatprep.subr.bf16.mxu1 %v10160_v13  ;;  %v10223_v13 = vld [vmem:[%s11067_s29 + $0x1264] ss:$36 sps:$4 sm:$0xff]  }
 0x455   : > { %6369 = vmatpush1.bf16.msra.mxu0 %v10161_v30  ;;  %v10226_v30 = vld [vmem:[%s11067_s29 + $0xfdc] ss:$36 sps:$4 sm:$0xff]  }
 0x456   : > { %6344 = vmatpush2.bf16.msra.mxu1 %v10158_v43  ;;  %6370 = vmatprep.subr.bf16.mxu0 %v10169_v46  ;;  %v10221_v43 = vld [vmem:[%s11067_s29 + $0x1260] ss:$36 sps:$4 sm:$0xff]   ;;  %v10224_v46 = vld [vmem:[%s11067_s29 + $0xfd8] ss:$36 sps:$4 sm:$0xff]  }
 0x457   : > { %6345 = vmatprep.subr.bf16.mxu1 %v10166_v45  ;;  %v10229_v45 = vld [vmem:[%s11067_s29 + $0x121c] ss:$36 sps:$4 sm:$0xff]  }
 0x459   : > { %6371 = vmatpush1.bf16.msra.mxu0 %v10167_v48  ;;  %v10230_v48 = vld [vmem:[%s11067_s29 + $0x458] ss:$36 sps:$4 sm:$0xff]  }
 0x45a   : > { %6346 = vmatpush2.bf16.msra.mxu1 %v10164_v47  ;;  %6372 = vmatprep.subr.bf16.mxu0 %v10175_v52  ;;  %v10227_v47 = vld [vmem:[%s11067_s29 + $0x1218] ss:$36 sps:$4 sm:$0xff]  }
 0x45b   : > { %6347 = vmatprep.subr.bf16.mxu1 %v10172_v51  ;;  %v10231_v51 = vld [vmem:[%s11067_s29 + $0x8d8] ss:$36 sps:$4 sm:$0xff]  }
 0x45c   : > { %v10232_v52 = vld [vmem:[%s11067_s29 + $0x218] ss:$36 sps:$4 sm:$0xff]  }
 0x45d   : > { %6373 = vmatpush1.bf16.msra.mxu0 %v10173_v61  ;;  %v10234_v61 = vld [vmem:[%s11067_s29 + $0x410] ss:$36 sps:$4 sm:$0xff]  }
 0x45e   : > { %6348 = vmatpush2.bf16.msra.mxu1 %v10170_v14  ;;  %6374 = vmatprep.subr.bf16.mxu0 %v10181_v62  ;;  %v10233_v14 = vld [vmem:[%s11067_s29 + $0x698] ss:$36 sps:$4 sm:$0xff]   ;;  %v10236_v62 = vld [vmem:[%s11067_s29 + $0x1d0] ss:$36 sps:$4 sm:$0xff]  }
 0x45f   : > { %6349 = vmatprep.subr.bf16.mxu1 %v10178_v15  ;;  %v10235_v15 = vld [vmem:[%s11067_s29 + $0x890] ss:$36 sps:$4 sm:$0xff]  }
 0x461   : > { %6375 = vmatpush1.bf16.msra.mxu0 %v10179_v56  ;;  %v10238_v56 = vld [vmem:[%s11067_s29 + $0x3c8] ss:$36 sps:$4 sm:$0xff]  }
 0x462   : > { %6350 = vmatpush2.bf16.msra.mxu1 %v10176_v16  ;;  %6376 = vmatprep.subr.bf16.mxu0 %v10184_v57  ;;  %v10237_v16 = vld [vmem:[%s11067_s29 + $0x650] ss:$36 sps:$4 sm:$0xff]   ;;  %v10239_v57 = vld [vmem:[%s11067_s29 + $0x848] ss:$36 sps:$4 sm:$0xff]  }
 0x463   : > { %6401 = vmatprep.subr.bf16.mxu1 %v10187_v0  ;;  %v10240_v0 = vld [vmem:[%s11067_s29 + $0x188] ss:$36 sps:$4 sm:$0xff]  }
 0x464   : > { %v6066_v11 = vpop.f32.mrf.mxu0 }
 0x465   : > { %v6107_v12 = vpop.f32.mrf.mxu1  ;;  %6352 = vmatmul.mubr.bf16.vlgmr.msra.gmra.mxu1 %v11373_v3  ;;  %6377 = vmatpush2.bf16.msra.mxu0 %v10182_v1  ;;  %v10241_v1 = vld [vmem:[%s11067_s29 + $0x608] ss:$36 sps:$4 sm:$0xff]  }
 0x466   : > { %v11868_v29 = vadd.f32 %v6107_v12, %v6066_v11  ;;  %6402 = vmatpush1.bf16.msra.mxu1 %v10185_v17  ;;  %v6068_v20 = vpop.f32.mrf.mxu0  ;;  %6378 = vmatprep.subr.bf16.mxu0 %v10190_v2  ;;  %v10242_v17 = vld [vmem:[%s11067_s29 + $0x380] ss:$36 sps:$4 sm:$0xff]   ;;  %v10247_v11 = vld [vmem:[%s11067_s29 + $0x7b8] ss:$36 sps:$4 sm:$0xff]  }
 0x467   : > { %v6109_v7 = vpop.f32.mrf.mxu1  ;;  %6403 = vmatprep.subr.bf16.mxu1 %v10193_v10  ;;  %6433 = vmatprep.mubr.bf16.mxu1 %v10763_v21  ;;  %v10200_v21 = vld [vmem:[%s11067_s29 + $0x10f8] ss:$36 sps:$4 sm:$0xff]   ;;  %v10243_v2 = vld [vmem:[%s11067_s29 + $0x800] ss:$36 sps:$4 sm:$0xff]  }
 0x468   : > { %v11874_v25 = vadd.f32 %v6109_v7, %v6068_v20  ;;  %v6070_v18 = vpop.f32.mrf.mxu0  ;;  %v10244_v10 = vld [vmem:[%s11067_s29 + $0x140] ss:$36 sps:$4 sm:$0xff]   ;;  %v10248_v12 = vld [vmem:[%s11067_s29 + $0xf8] ss:$36 sps:$4 sm:$0xff]   ;;  %v10251_v20 = vld [vmem:[%s11067_s29 + $0x770] ss:$36 sps:$4 sm:$0xff]  }
 0x469   : > { %v6111_v6 = vpop.f32.mrf.mxu1  ;;  %6379 = vmatpush2.bf16.msra.mxu0 %v10188_v19  ;;  %v10249_v19 = vld [vmem:[%s11067_s29 + $0x578] ss:$36 sps:$4 sm:$0xff]   ;;  %v10252_v7 = vld [vmem:[%s11067_s29 + $0xb0] ss:$36 sps:$4 sm:$0xff]   ;;  %v10255_v18 = vld [vmem:[%s11067_s29 + $0x728] ss:$36 sps:$4 sm:$0xff]  }
 0x46a   : > { %6404 = vmatpush1.bf16.msra.mxu1 %v10191_v5  ;;  %v6071_v28 = vpop.f32.mrf.mxu0  ;;  %6380 = vmatprep.subr.bf16.mxu0 %v10196_v40  ;;  %v10250_v5 = vld [vmem:[%s11067_s29 + $0x2f0] ss:$36 sps:$4 sm:$0xff]   ;;  %v10256_v6 = vld [vmem:[%s11067_s29 + $0x68] ss:$36 sps:$4 sm:$0xff]  }
 0x46b   : > { %6405 = vmatprep.subr.bf16.mxu1 %v10199_v22  ;;  %v6112_v55 = vpop.f32.mrf.mxu1  ;;  %v10253_v40 = vld [vmem:[%s11067_s29 + $0x530] ss:$36 sps:$4 sm:$0xff]   ;;  %v10254_v22 = vld [vmem:[%s11067_s29 + $0x2a8] ss:$36 sps:$4 sm:$0xff]   ;;  %v10259_v28 = vld [vmem:[%s11067_s29 + $0x6e0] ss:$36 sps:$4 sm:$0xff]  }
 0x46c   : > { %v10262_v55 = vld [vmem:[%s11067_s29 + $0xd58] ss:$36 sps:$4 sm:$0xff]  }
 0x46d   : > { %6381 = vmatpush2.bf16.msra.mxu0 %v10194_v8  ;;  %v10257_v8 = vld [vmem:[%s11067_s29 + $0x4e8] ss:$36 sps:$4 sm:$0xff]  }
 0x46e   : > { %6406 = vmatpush1.bf16.msra.mxu1 %v10197_v27  ;;  %6382 = vmatprep.subr.bf16.mxu0 %v10202_v54  ;;  %v10258_v27 = vld [vmem:[%s11067_s29 + $0x260] ss:$36 sps:$4 sm:$0xff]  }
 0x46f   : > { %6407 = vmatprep.subr.bf16.mxu1 %v10205_v23  ;;  %v10260_v54 = vld [vmem:[%s11067_s29 + $0x20] ss:$36 sps:$4 sm:$0xff]  }
 0x470   : > { %v10261_v23 = vld [vmem:[%s11067_s29 + $0x4a0] ss:$36 sps:$4 sm:$0xff]  }
 0x471   : > { %6383 = vmatpush2.bf16.msra.mxu0 %v10200_v21  ;;  %v10264_v21 = vld [vmem:[%s11067_s29 + $0x11d8] ss:$36 sps:$4 sm:$0xff]  }
 0x472   : > { %6408 = vmatpush1.bf16.msra.mxu1 %v10203_v32  ;;  %6384 = vmatprep.subr.bf16.mxu0 %v10208_v24  ;;  %v10263_v32 = vld [vmem:[%s11067_s29 + $0xb18] ss:$36 sps:$4 sm:$0xff]  }
 0x473   : > { %6409 = vmatprep.subr.bf16.mxu1 %v10211_v33  ;;  %v10265_v24 = vld [vmem:[%s11067_s29 + $0xf98] ss:$36 sps:$4 sm:$0xff]   ;;  %v10266_v33 = vld [vmem:[%s11067_s29 + $0xd10] ss:$36 sps:$4 sm:$0xff]  }
 0x475   : > { %6385 = vmatpush2.bf16.msra.mxu0 %v10206_v34  ;;  %v10268_v34 = vld [vmem:[%s11067_s29 + $0x1190] ss:$36 sps:$4 sm:$0xff]  }
 0x476   : > { %6410 = vmatpush1.bf16.msra.mxu1 %v10209_v35  ;;  %6386 = vmatprep.subr.bf16.mxu0 %v10214_v37 }
 0x477   : > { %6411 = vmatprep.subr.bf16.mxu1 %v10217_v38 }
 0x479   : > { %6387 = vmatpush2.bf16.msra.mxu0 %v10212_v41  ;;  %v10267_v41 = vld [vmem:[%s11067_s29 + $0xad0] ss:$36 sps:$4 sm:$0xff]  }
 0x47a   : > { %6412 = vmatpush1.bf16.msra.mxu1 %v10215_v63  ;;  %6388 = vmatprep.subr.bf16.mxu0 %v10220_v42  ;;  %v10269_v63 = vld [vmem:[%s11067_s29 + $0xf50] ss:$36 sps:$4 sm:$0xff]  }
 0x47b   : > { %6413 = vmatprep.subr.bf16.mxu1 %v10223_v13 }
 0x47d   : > { %6389 = vmatpush2.bf16.msra.mxu0 %v10218_v4  ;;  %v10270_v4 = vld [vmem:[%s11067_s29 + $0xcc8] ss:$36 sps:$4 sm:$0xff]  }
 0x47e   : > { %6414 = vmatpush1.bf16.msra.mxu1 %v10221_v43  ;;  %6390 = vmatprep.subr.bf16.mxu0 %v10226_v30  ;;  %v10272_v43 = vld [vmem:[%s11067_s29 + $0x1148] ss:$36 sps:$4 sm:$0xff]  }
 0x47f   : > { %6415 = vmatprep.subr.bf16.mxu1 %v10229_v45 }
 0x481   : > { %6391 = vmatpush2.bf16.msra.mxu0 %v10224_v46  ;;  %v10271_v46 = vld [vmem:[%s11067_s29 + $0xa88] ss:$36 sps:$4 sm:$0xff]  }
 0x482   : > { %6416 = vmatpush1.bf16.msra.mxu1 %v10227_v47  ;;  %8843 = vmatprep.subr.bf16.mxu0 %v10230_v48  ;;  %v10273_v47 = vld [vmem:[%s11067_s29 + $0xf08] ss:$36 sps:$4 sm:$0xff]  }
 0x483   : > { %8865 = vmatprep.subr.bf16.mxu1 %v10231_v51  ;;  %v10275_v51 = vld [vmem:[%s11067_s29 + $0xa40] ss:$36 sps:$4 sm:$0xff]  }
 0x484   : > { %6393 = vmatmul.mubr.bf16.vlgmr.msra.gmra.mxu0 %v11376_v9 }
 0x485   : > { %6434 = vmatmul.mubr.bf16.vlgmr.msra.gmra.mxu1 %v11413_v44  ;;  %8844 = vmatpush3.bf16.msra.mxu0 %v10232_v52  ;;  %v10277_v52 = vld [vmem:[%s11067_s29 + $0xec0] ss:$36 sps:$4 sm:$0xff]  }
 0x486   : > { %8866 = vmatpush3.bf16.msra.mxu1 %v10233_v14  ;;  %8845 = vmatprep.subr.bf16.mxu0 %v10234_v61  ;;  %v10278_v14 = vld [vmem:[%s11067_s29 + $0xc38] ss:$36 sps:$4 sm:$0xff]  }
 0x487   : > { %8867 = vmatprep.subr.bf16.mxu1 %v10235_v15  ;;  %6474 = vmatprep.mubr.bf16.mxu0 %v11273_v36  ;;  %v10245_v36 = vld [vmem:[%s11067_s29 + $0x5c0] ss:$36 sps:$4 sm:$0xff]   ;;  %v10280_v61 = vld [vmem:[%s11067_s29 + $0x10b8] ss:$36 sps:$4 sm:$0xff]  }
 0x488   : > { %6514 = vmatprep.mubr.bf16.mxu1 %v11276_v39  ;;  %v10246_v39 = vld [vmem:[%s11067_s29 + $0x338] ss:$36 sps:$4 sm:$0xff]  }
 0x489   : > { %8846 = vmatpush3.bf16.msra.mxu0 %v10236_v62  ;;  %v10279_v15 = vld [vmem:[%s11067_s29 + $0x9f8] ss:$36 sps:$4 sm:$0xff]  }
 0x48a   : > { %8868 = vmatpush3.bf16.msra.mxu1 %v10237_v16  ;;  %8847 = vmatprep.subr.bf16.mxu0 %v10238_v56  ;;  %v10281_v62 = vld [vmem:[%s11067_s29 + $0xe78] ss:$36 sps:$4 sm:$0xff]   ;;  %v10282_v16 = vld [vmem:[%s11067_s29 + $0xbf0] ss:$36 sps:$4 sm:$0xff]  }
 0x48b   : > { %8869 = vmatprep.subr.bf16.mxu1 %v10239_v57  ;;  %v10284_v56 = vld [vmem:[%s11067_s29 + $0x1070] ss:$36 sps:$4 sm:$0xff]  }
 0x48c   : > { %v10283_v57 = vld [vmem:[%s11067_s29 + $0x9b0] ss:$36 sps:$4 sm:$0xff]  }
 0x48d   : > { %8848 = vmatpush3.bf16.msra.mxu0 %v10240_v0  ;;  %v10285_v0 = vld [vmem:[%s11067_s29 + $0xe30] ss:$36 sps:$4 sm:$0xff]  }
 0x48e   : > { %8870 = vmatpush3.bf16.msra.mxu1 %v10241_v1  ;;  %8849 = vmatprep.subr.bf16.mxu0 %v10242_v17  ;;  %v10286_v1 = vld [vmem:[%s11067_s29 + $0xba8] ss:$36 sps:$4 sm:$0xff]  }
 0x48f   : > { %8871 = vmatprep.subr.bf16.mxu1 %v10243_v2  ;;  %v10288_v17 = vld [vmem:[%s11067_s29 + $0x1028] ss:$36 sps:$4 sm:$0xff]  }
 0x490   : > { %v10287_v2 = vld [vmem:[%s11067_s29 + $0x968] ss:$36 sps:$4 sm:$0xff]  }
 0x491   : > { %8850 = vmatpush3.bf16.msra.mxu0 %v10244_v10  ;;  %v10289_v10 = vld [vmem:[%s11067_s29 + $0xde8] ss:$36 sps:$4 sm:$0xff]  }
 0x492   : > { %8872 = vmatpush3.bf16.msra.mxu1 %v10245_v36  ;;  %8851 = vmatprep.subr.bf16.mxu0 %v10246_v39  ;;  %v10290_v36 = vld [vmem:[%s11067_s29 + $0xb60] ss:$36 sps:$4 sm:$0xff]  }
 0x493   : > { %8873 = vmatprep.subr.bf16.mxu1 %v10247_v11  ;;  %v10292_v39 = vld [vmem:[%s11067_s29 + $0xfe0] ss:$36 sps:$4 sm:$0xff]  }
 0x494   : > { %v10291_v11 = vld [vmem:[%s11067_s29 + $0x920] ss:$36 sps:$4 sm:$0xff]  }
 0x495   : > { %8852 = vmatpush3.bf16.msra.mxu0 %v10248_v12  ;;  %v10293_v12 = vld [vmem:[%s11067_s29 + $0xda0] ss:$36 sps:$4 sm:$0xff]  }
 0x496   : > { %8874 = vmatpush3.bf16.msra.mxu1 %v10249_v19  ;;  %8853 = vmatprep.subr.bf16.mxu0 %v10250_v5  ;;  %v10294_v19 = vld [vmem:[%s11067_s29 + $0x1418] ss:$36 sps:$4 sm:$0xff]   ;;  %v10764_v5 = vmov 0.0  }
 0x497   : > { %8875 = vmatprep.subr.bf16.mxu1 %v10251_v20 }
 0x499   : > { %8854 = vmatpush3.bf16.msra.mxu0 %v10252_v7 }
 0x49a   : > { %8876 = vmatpush3.bf16.msra.mxu1 %v10253_v40  ;;  %8855 = vmatprep.subr.bf16.mxu0 %v10254_v22  ;;  %v10295_v40 = vld [vmem:[%s11067_s29 + $0x13d0] ss:$36 sps:$4 sm:$0xff]  }
 0x49b   : > { %8877 = vmatprep.subr.bf16.mxu1 %v10255_v18 }
 0x49d   : > { %8856 = vmatpush3.bf16.msra.mxu0 %v10256_v6 }
 0x49e   : > { %8878 = vmatpush3.bf16.msra.mxu1 %v10257_v8  ;;  %8857 = vmatprep.subr.bf16.mxu0 %v10258_v27  ;;  %v10298_v27 = vld [vmem:[%s11067_s29 + $0x12f8] ss:$36 sps:$4 sm:$0xff]  }
 0x49f   : > { %8879 = vmatprep.subr.bf16.mxu1 %v10259_v28  ;;  %v10299_v28 = vld [vmem:[%s11067_s29 + $0x12b0] ss:$36 sps:$4 sm:$0xff]  }
 0x4a1   : > { %8858 = vmatpush3.bf16.msra.mxu0 %v10260_v54  ;;  %v10300_v54 = vld [vmem:[%s11067_s29 + $0x1268] ss:$36 sps:$4 sm:$0xff]  }
 0x4a2   : > { %8880 = vmatpush3.bf16.msra.mxu1 %v10261_v23  ;;  %8887 = vmatprep.subr.bf16.mxu0 %v10262_v55  ;;  %v10301_v23 = vld [vmem:[%s11067_s29 + $0x1220] ss:$36 sps:$4 sm:$0xff]  }
 0x4a3   : > { %8909 = vmatprep.subr.bf16.mxu1 %v10264_v21 }
 0x4a4   : > { %v6148_v35 = vpop.f32.mrf.mxu0  ;;  %6475 = vmatmul.mubr.bf16.vlgmr.msra.gmra.mxu0 %v11297_v58 }
 0x4a5   : > { %6515 = vmatmul.mubr.bf16.vlgmr.msra.gmra.mxu1 %v11299_v59  ;;  %v6189_v37 = vpop.f32.mrf.mxu1  ;;  %v6149_v38 = vadd.f32 %v6148_v35, %v11868_v29  ;;  %8888 = vmatpush3.bf16.msra.mxu0 %v10263_v32 }
 0x4a6   : > { %8910 = vmatpush3.bf16.msra.mxu1 %v10265_v24  ;;  %v6150_v42 = vpop.f32.mrf.mxu0  ;;  %8889 = vmatprep.subr.bf16.mxu0 %v10266_v33 }
 0x4a7   : > { %v6191_v13 = vpop.f32.mrf.mxu1  ;;  %8911 = vmatprep.subr.bf16.mxu1 %v10268_v34  ;;  %v6151_v58 = vadd.f32 %v6150_v42, %v11874_v25  ;;  %v6190_v59 = vadd.f32 %v6189_v37, %v6149_v38  ;;  %6554 = vmatprep.mubr.bf16.mxu0 %v11328_v26  ;;  %v10274_v26 = vld [vmem:[%s11067_s29 + $0xc80] ss:$36 sps:$4 sm:$0xff]  }
 0x4a8   : > { %6594 = vmatprep.mubr.bf16.mxu1 %v11332_v31  ;;  %v6152_v29 = vpop.f32.mrf.mxu0  ;;  %v10276_v25 = vld [vmem:[%s11067_s29 + $0x1100] ss:$36 sps:$4 sm:$0xff]  }
 0x4a9   : > { %v6193_v30 = vpop.f32.mrf.mxu1  ;;  %v11951_v45 = vadd.f32 %v6191_v13, %v6151_v58  ;;  %8890 = vmatpush3.bf16.msra.mxu0 %v10267_v41 }
 0x4aa   : > { %8912 = vmatpush3.bf16.msra.mxu1 %v10269_v63  ;;  %v6153_v48 = vpop.f32.mrf.mxu0  ;;  %8891 = vmatprep.subr.bf16.mxu0 %v10270_v4 }
 0x4ab   : > { %8913 = vmatprep.subr.bf16.mxu1 %v10272_v43  ;;  %v6194_v31 = vpop.f32.mrf.mxu1 }
 0x4ad   : > { %8892 = vmatpush3.bf16.msra.mxu0 %v10271_v46 }
 0x4ae   : > { %8914 = vmatpush3.bf16.msra.mxu1 %v10273_v47  ;;  %8893 = vmatprep.subr.bf16.mxu0 %v10274_v26 }
 0x4af   : > { %8915 = vmatprep.subr.bf16.mxu1 %v10276_v25 }
 0x4b1   : > { %8894 = vmatpush3.bf16.msra.mxu0 %v10275_v51 }
 0x4b2   : > { %8916 = vmatpush3.bf16.msra.mxu1 %v10277_v52  ;;  %8895 = vmatprep.subr.bf16.mxu0 %v10278_v14 }
 0x4b3   : > { %8917 = vmatprep.subr.bf16.mxu1 %v10280_v61 }
 0x4b5   : > { %8896 = vmatpush3.bf16.msra.mxu0 %v10279_v15 }
 0x4b6   : > { %8918 = vmatpush3.bf16.msra.mxu1 %v10281_v62  ;;  %8897 = vmatprep.subr.bf16.mxu0 %v10282_v16 }
 0x4b7   : > { %8919 = vmatprep.subr.bf16.mxu1 %v10284_v56 }
 0x4b9   : > { %8898 = vmatpush3.bf16.msra.mxu0 %v10283_v57 }
 0x4ba   : > { %8920 = vmatpush3.bf16.msra.mxu1 %v10285_v0  ;;  %8899 = vmatprep.subr.bf16.mxu0 %v10286_v1 }
 0x4bb   : > { %8921 = vmatprep.subr.bf16.mxu1 %v10288_v17 }
 0x4bd   : > { %8900 = vmatpush3.bf16.msra.mxu0 %v10287_v2 }
 0x4be   : > { %8922 = vmatpush3.bf16.msra.mxu1 %v10289_v10  ;;  %8901 = vmatprep.subr.bf16.mxu0 %v10290_v36 }
 0x4bf   : > { %8923 = vmatprep.subr.bf16.mxu1 %v10292_v39 }
 0x4c1   : > { %8902 = vmatpush3.bf16.msra.mxu0 %v10291_v11 }
 0x4c2   : > { %8924 = vmatpush3.bf16.msra.mxu1 %v10293_v12  ;;  %9057 = vmatprep.subr.bf16.mxu0 %v10764_v5 }
 0x4c4   : > { %v6230_v20 = vpop.f32.mrf.mxu0  ;;  %6555 = vmatmul.mubr.bf16.vlgmr.msra.gmra.mxu0 %v11373_v3  ;;  %v10296_v3 = vld [vmem:[%s11067_s29 + $0x1388] ss:$36 sps:$4 sm:$0xff]  }
 0x4c5   : > { %6595 = vmatmul.mubr.bf16.vlgmr.msra.gmra.mxu1 %v11376_v9  ;;  %v11978_v7 = vadd.f32 %v6230_v20, %v6190_v59  ;;  %9058 = vmatpush3.bf16.msra.mxu0 %v10294_v19  ;;  %v10297_v9 = vld [vmem:[%s11067_s29 + $0x1340] ss:$36 sps:$4 sm:$0xff]  }
 0x4c6   : > { %9073 = vmatprep.mubr.msk.bf16.mxu0 %vm10765_vm1, %v10764_v5  ;;  %v6232_v22 = vpop.f32.mrf.mxu0  ;;  %9059 = vmatprep.subr.bf16.mxu0 %v10764_v5 }
 0x4c7   : > { %v11982_v18 = vadd.f32 %v6232_v22, %v11951_v45 }
 0x4c8   : > { %v6234_v6 = vpop.f32.mrf.mxu0 }
 0x4c9   : > { %9060 = vmatpush3.bf16.msra.mxu0 %v10295_v40 }
 0x4ca   : > { %v6235_v8 = vpop.f32.mrf.mxu0  ;;  %9061 = vmatprep.subr.bf16.mxu0 %v10764_v5 }
 0x4cd   : > { %9062 = vmatpush3.bf16.msra.mxu0 %v10296_v3 }
 0x4ce   : > { %9063 = vmatprep.subr.bf16.mxu0 %v10764_v5 }
 0x4d1   : > { %9064 = vmatpush3.bf16.msra.mxu0 %v10297_v9 }
 0x4d2   : > { %9065 = vmatprep.subr.bf16.mxu0 %v10764_v5 }
 0x4d5   : > { %9066 = vmatpush3.bf16.msra.mxu0 %v10298_v27 }
 0x4d6   : > { %9067 = vmatprep.subr.bf16.mxu0 %v10764_v5 }
 0x4d9   : > { %9068 = vmatpush3.bf16.msra.mxu0 %v10299_v28 }
 0x4da   : > { %9069 = vmatprep.subr.bf16.mxu0 %v10764_v5 }
 0x4dd   : > { %9070 = vmatpush3.bf16.msra.mxu0 %v10300_v54 }
 0x4de   : > { %9071 = vmatprep.subr.bf16.mxu0 %v10764_v5 }
 0x4e1   : > { %9072 = vmatpush3.bf16.msra.mxu0 %v10301_v23 }
 0x4e4   : > { %9074 = vmatmul.mubr.bf16.vlgmr.msra.gmra.mxu0 %v11413_v44 }
 0x4e5   : > { %v6271_v55 = vpop.f32.mrf.mxu1 }
 0x4e7   : > { %v6273_v21 = vpop.f32.mrf.mxu1 }
 0x4e9   : > { %v6275_v32 = vpop.f32.mrf.mxu1 }
 0x4eb   : > { %v6276_v24 = vpop.f32.mrf.mxu1 }
 0x504   : > { %v6312_v33 = vpop.f32.mrf.mxu0 }
 0x505   : > { %v6313_v34 = vadd.f32 %v6312_v33, %v6271_v55 }
 0x506   : > { %v6314_v35 = vpop.f32.mrf.mxu0 }
 0x507   : > { %v6315_v37 = vadd.f32 %v6314_v35, %v6273_v21 }
 0x508   : > { %v6316_v38 = vpop.f32.mrf.mxu0 }
 0x50a   : > { %v6317_v41 = vpop.f32.mrf.mxu0 }
 0x525   : > { %v6353_v63 = vpop.f32.mrf.mxu1 }
 0x526   : > { %v6354_v42 = vadd.f32 %v6353_v63, %v6313_v34 }
 0x527   : > { %v6355_v13 = vpop.f32.mrf.mxu1 }
 0x528   : > { %v6356_v4 = vadd.f32 %v6355_v13, %v6315_v37 }
 0x529   : > { %v6357_v43 = vpop.f32.mrf.mxu1 }
 0x52b   : > { %v6358_v58 = vpop.f32.mrf.mxu1 }
 0x544   : > { %v6394_v59 = vpop.f32.mrf.mxu0 }
 0x545   : > { %v6435_v29 = vpop.f32.mrf.mxu1  ;;  %v6395_v30 = vadd.f32 %v6394_v59, %v6354_v42 }
 0x546   : > { %v6396_v44 = vpop.f32.mrf.mxu0 }
 0x547   : > { %v6437_v45 = vpop.f32.mrf.mxu1  ;;  %v6397_v46 = vadd.f32 %v6396_v44, %v6356_v4  ;;  %v11991_v47 = vadd.f32 %v6435_v29, %v6395_v30 }
 0x548   : > { %v6398_v48 = vpop.f32.mrf.mxu0 }
 0x549   : > { %v6439_v26 = vpop.f32.mrf.mxu1  ;;  %v11993_v25 = vadd.f32 %v6437_v45, %v6397_v46 }
 0x54a   : > { %v6399_v31 = vpop.f32.mrf.mxu0 }
 0x54b   : > { %v6440_v51 = vpop.f32.mrf.mxu1 }
 0x564   : > { %v8859_v52 = vpop.f32.mrf.mxu0 }
 0x565   : > { %v8881_v14 = vpop.f32.mrf.mxu1 }
 0x566   : > { %v8860_v61 = vpop.f32.mrf.mxu0 }
 0x567   : > { %v8882_v15 = vpop.f32.mrf.mxu1  ;;  %v8861_v12 = vadd.f32 %v8860_v61, %v8859_v52 }
 0x568   : > { %v8862_v62 = vpop.f32.mrf.mxu0  ;;  %v8883_v19 = vadd.f32 %v8882_v15, %v8881_v14 }
 0x569   : > { %v8884_v16 = vpop.f32.mrf.mxu1 }
 0x56a   : > { %v8863_v56 = vpop.f32.mrf.mxu0  ;;  %v6517_v20 = vadd.f32 %v8883_v19, %v8861_v12 }
 0x56b   : > { %v8885_v57 = vpop.f32.mrf.mxu1 }
 0x584   : > { %v8903_v0 = vpop.f32.mrf.mxu0 }
 0x585   : > { %v8925_v1 = vpop.f32.mrf.mxu1 }
 0x586   : > { %v8904_v17 = vpop.f32.mrf.mxu0 }
 0x587   : > { %v8926_v2 = vpop.f32.mrf.mxu1  ;;  %v8905_v5 = vadd.f32 %v8904_v17, %v8903_v0 }
 0x588   : > { %v8906_v10 = vpop.f32.mrf.mxu0  ;;  %v8927_v22 = vadd.f32 %v8926_v2, %v8925_v1 }
 0x589   : > { %v8928_v36 = vpop.f32.mrf.mxu1  ;;  %v6557_v40 = vadd.f32 %v8905_v5, %v6517_v20 }
 0x58a   : > { %v8907_v39 = vpop.f32.mrf.mxu0 }
 0x58b   : > { %v8929_v11 = vpop.f32.mrf.mxu1  ;;  %v6597_v6 = vadd.f32 %v8927_v22, %v6557_v40 }
 0x5a4   : > { %v6636_v3 = vpop.f32.mrf.mxu0 }
 0x5a5   : > { %v11995_v8 = vadd.f32 %v6636_v3, %v6597_v6 }
 0x5a6   : > { %v9075_v9 = vpop.f32.mrf.mxu0  ;;  %6644 = sbr.rel (%p12200_p10) target bundleno = 1467 (0x5bb), region = 112 }
 0x5a8   : > { %v6639_v27 = vpop.f32.mrf.mxu0 }
 0x5aa   : > { %v9076_v28 = vpop.f32.mrf.mxu0 }
 0x5ab   : > { %v6649_v54 = vlaneseq  ;;  %v8752_v23 = vld [vmem:[#allocation11 + $0x8] ss:$0 sm:$0xff]  ;;  %v6645_v32 = vld [vmem:[#allocation11] sm:$0xff] }
 0x5ac   : > { %v6702_v55 = vadd.f32 %v8752_v23, %v11995_v8 }
 0x5ad   : > { %v6650_v21 = vshrl.u32 %v6649_v54, 7 }
 0x5ae   : > { %v6711_v24 = vmax.f32 %v6702_v55, 0.0 }
 0x5af   : > { %v6651_v33 = vsub.s32 0, %v6650_v21  ;;  %v6655_v34 = vsub.s32 1, %v6650_v21  ;;  %v6659_v35 = vsub.s32 2, %v6650_v21  ;;  %v6663_v37 = vsub.s32 3, %v6650_v21 }
 0x5b0   : > { %v6667_v38 = vsub.s32 4, %v6650_v21  ;;  %v6671_v41 = vsub.s32 5, %v6650_v21  ;;  %v6675_v63 = vsub.s32 6, %v6650_v21  ;;  %v6679_v42 = vsub.s32 7, %v6650_v21  ;;  %6720 = vst [vmem:[#allocation2 + $0x8] sm:$0xff] %v6711_v24 }
 0x5b1   : > { %v6652_v13 = vrot.slane %v6645_v32, %v6651_v33  ;;  %v6656_v4 = vrot.slane %v6645_v32, %v6655_v34  ;;  %v6660_v43 = vrot.slane %v6645_v32, %v6659_v35  ;;  %v6664_v58 = vrot.slane %v6645_v32, %v6663_v37 }
 0x5b2   : > { %v6668_v59 = vrot.slane %v6645_v32, %v6667_v38  ;;  %v6672_v29 = vrot.slane %v6645_v32, %v6671_v41  ;;  %v6676_v30 = vrot.slane %v6645_v32, %v6675_v63  ;;  %v6680_v44 = vrot.slane %v6645_v32, %v6679_v42 }
 0x5b3   : > { %v6694_v45 = vadd.f32 %v6652_v13, %v11638_v50  ;;  %v6695_v46 = vadd.f32 %v6656_v4, %v11643_v60  ;;  %v6696_v48 = vadd.f32 %v6660_v43, %v11800_v49  ;;  %v6697_v26 = vadd.f32 %v6664_v58, %v11803_v53 }
 0x5b4   : > { %v6698_v31 = vadd.f32 %v6668_v59, %v11978_v7  ;;  %v6699_v51 = vadd.f32 %v6672_v29, %v11982_v18  ;;  %v6700_v52 = vadd.f32 %v6676_v30, %v11991_v47  ;;  %v6701_v14 = vadd.f32 %v6680_v44, %v11993_v25 }
 0x5b5   : > { %v6703_v61 = vmax.f32 %v6694_v45, 0.0  ;;  %v6704_v15 = vmax.f32 %v6695_v46, 0.0  ;;  %v6705_v62 = vmax.f32 %v6696_v48, 0.0  ;;  %v6706_v16 = vmax.f32 %v6697_v26, 0.0 }
 0x5b6   : > { %v6707_v56 = vmax.f32 %v6698_v31, 0.0  ;;  %v6708_v57 = vmax.f32 %v6699_v51, 0.0  ;;  %v6709_v0 = vmax.f32 %v6700_v52, 0.0  ;;  %v6710_v1 = vmax.f32 %v6701_v14, 0.0 }
 0x5b7   : > { %6712 = vst [vmem:[#allocation2 + $0x30] sm:$0xff] %v6703_v61  ;;  %6713 = vst [vmem:[#allocation2] sm:$0xff] %v6704_v15 }
 0x5b8   : > { %6714 = vst [vmem:[#allocation2 + $0x18] sm:$0xff] %v6705_v62  ;;  %6715 = vst [vmem:[#allocation2 + $0x10] sm:$0xff] %v6706_v16 }
 0x5b9   : > { %6716 = vst [vmem:[#allocation2 + $0x20] sm:$0xff] %v6707_v56  ;;  %6717 = vst [vmem:[#allocation2 + $0x28] sm:$0xff] %v6708_v57 }
 0x5ba   : > { %6718 = vst [vmem:[#allocation2 + $0x40] sm:$0xff] %v6709_v0  ;;  %6719 = vst [vmem:[#allocation2 + $0x38] sm:$0xff] %v6710_v1 }
 0x5bb PF: > { %p8753_p0 = scmp.le.s32.totalorder %s10850_s23, 0 }
 0x5bd   : > { %6724 = sbr.rel (%p8753_p0) target bundleno = 1567 (0x61f), region = 116 }
 0x5c2   : > { %v6729_v17 = vrot.slane %v11638_v50, 4  ;;  %v6735_v2 = vrot.slane %v11643_v60, 4  ;;  %v6741_v10 = vrot.slane %v11800_v49, 4  ;;  %v6747_v36 = vrot.slane %v11803_v53, 4 }
 0x5c3   : > { %v6753_v39 = vrot.slane %v11978_v7, 4  ;;  %v6759_v20 = vrot.slane %v11982_v18, 4  ;;  %v6765_v24 = vrot.slane %v11991_v47, 4 }
 0x5c4   : > { %v6730_v11 = vadd.f32 %v6729_v17, %v11638_v50  ;;  %v6736_v12 = vadd.f32 %v6735_v2, %v11643_v60  ;;  %v6742_v19 = vadd.f32 %v6741_v10, %v11800_v49  ;;  %v6748_v5 = vadd.f32 %v6747_v36, %v11803_v53 }
 0x5c5   : > { %v6754_v9 = vadd.f32 %v6753_v39, %v11978_v7  ;;  %v6760_v23 = vadd.f32 %v6759_v20, %v11982_v18  ;;  %v6766_v58 = vadd.f32 %v6765_v24, %v11991_v47  ;;  %v6903_v36 = vlaneseq }
 0x5c6   : > { %v6731_v40 = vrot.slane %v6730_v11, 2  ;;  %v6737_v22 = vrot.slane %v6736_v12, 2  ;;  %v6743_v6 = vrot.slane %v6742_v19, 2  ;;  %v6749_v3 = vrot.slane %v6748_v5, 2 }
 0x5c7   : > { %v6755_v34 = vrot.slane %v6754_v9, 2  ;;  %v6761_v42 = vrot.slane %v6760_v23, 2 }
 0x5c8   : > { %v6732_v27 = vadd.f32 %v6731_v40, %v6730_v11  ;;  %v6738_v28 = vadd.f32 %v6737_v22, %v6736_v12  ;;  %v6744_v54 = vadd.f32 %v6743_v6, %v6742_v19  ;;  %v6750_v32 = vadd.f32 %v6749_v3, %v6748_v5 }
 0x5c9   : > { %v6756_v63 = vadd.f32 %v6755_v34, %v6754_v9  ;;  %v6762_v30 = vadd.f32 %v6761_v42, %v6760_v23  ;;  %v6771_v3 = vrot.slane %v11993_v25, 4 }
 0x5ca   : > { %v6733_v55 = vrot.slane %v6732_v27, 1  ;;  %v6739_v21 = vrot.slane %v6738_v28, 1  ;;  %v6745_v33 = vrot.slane %v6744_v54, 1  ;;  %v6751_v38 = vrot.slane %v6750_v32, 1 }
 0x5cb   : > { %v6757_v29 = vrot.slane %v6756_v63, 1  ;;  %v6763_v31 = vrot.slane %v6762_v30, 1 }
 0x5cc   : > { %v6734_v35 = vadd.f32 %v6733_v55, %v6732_v27  ;;  %v6740_v37 = vadd.f32 %v6739_v21, %v6738_v28  ;;  %v6746_v41 = vadd.f32 %v6745_v33, %v6744_v54  ;;  %v6752_v43 = vadd.f32 %v6751_v38, %v6750_v32 }
 0x5cd   : > { %v6758_v26 = vadd.f32 %v6757_v29, %v6756_v63  ;;  %v6764_v15 = vadd.f32 %v6763_v31, %v6762_v30 }
 0x5ce   : > { %v6784_v13 = vmul.f32 0.125, %v6734_v35  ;;  %v6785_v4 = vmul.f32 0.125, %v6740_v37  ;;  %v6786_v59 = vmul.f32 0.125, %v6746_v41  ;;  %v6787_v46 = vmul.f32 0.125, %v6752_v43 }
 0x5cf   : > { %v6788_v61 = vmul.f32 0.125, %v6758_v26  ;;  %v6789_v1 = vmul.f32 0.125, %v6764_v15 }
 0x5d0   : > { %v12024_v44 = vsub.f32 %v11638_v50, %v6784_v13  ;;  %v12027_v45 = vsub.f32 %v11643_v60, %v6785_v4  ;;  %v12030_v48 = vsub.f32 %v11800_v49, %v6786_v59  ;;  %v12037_v14 = vsub.f32 %v11803_v53, %v6787_v46 }
 0x5d1   : > { %v6767_v50 = vrot.slane %v6766_v58, 2  ;;  %v12044_v0 = vsub.f32 %v11978_v7, %v6788_v61  ;;  %v12049_v12 = vsub.f32 %v11982_v18, %v6789_v1  ;;  %v6772_v18 = vadd.f32 %v6771_v3, %v11993_v25 }
 0x5d2   : > { %v6802_v51 = vmul.f32 %v12024_v44, %v12024_v44  ;;  %v6803_v52 = vmul.f32 %v12027_v45, %v12027_v45  ;;  %v6804_v60 = vmul.f32 %v12030_v48, %v12030_v48  ;;  %v6805_v16 = vmul.f32 %v12037_v14, %v12037_v14 }
 0x5d3   : > { %v6768_v56 = vadd.f32 %v6767_v50, %v6766_v58  ;;  %v6806_v11 = vmul.f32 %v12044_v0, %v12044_v0  ;;  %v6807_v6 = vmul.f32 %v12049_v12, %v12049_v12  ;;  %v6773_v41 = vrot.slane %v6772_v18, 2 }
 0x5d4   : > { %v6811_v62 = vrot.slane %v6802_v51, 4  ;;  %v6817_v49 = vrot.slane %v6803_v52, 4  ;;  %v6823_v57 = vrot.slane %v6804_v60, 4  ;;  %v6829_v2 = vrot.slane %v6805_v16, 4 }
 0x5d5   : > { %v6769_v10 = vrot.slane %v6768_v56, 1  ;;  %v6835_v7 = vrot.slane %v6806_v11, 4  ;;  %v6841_v21 = vrot.slane %v6807_v6, 4  ;;  %v6774_v29 = vadd.f32 %v6773_v41, %v6772_v18 }
 0x5d6   : > { %v6812_v17 = vadd.f32 %v6811_v62, %v6802_v51  ;;  %v6818_v53 = vadd.f32 %v6817_v49, %v6803_v52  ;;  %v6824_v39 = vadd.f32 %v6823_v57, %v6804_v60  ;;  %v6830_v20 = vadd.f32 %v6829_v2, %v6805_v16 }
 0x5d7   : > { %v6770_v40 = vadd.f32 %v6769_v10, %v6768_v56  ;;  %v6836_v55 = vadd.f32 %v6835_v7, %v6806_v11  ;;  %v6842_v38 = vadd.f32 %v6841_v21, %v6807_v6  ;;  %v6775_v50 = vrot.slane %v6774_v29, 1 }
 0x5d8   : > { %v6813_v19 = vrot.slane %v6812_v17, 2  ;;  %v6819_v5 = vrot.slane %v6818_v53, 2  ;;  %v6825_v22 = vrot.slane %v6824_v39, 2  ;;  %v6831_v28 = vrot.slane %v6830_v20, 2 }
 0x5d9   : > { %v6790_v54 = vmul.f32 0.125, %v6770_v40  ;;  %v6837_v37 = vrot.slane %v6836_v55, 2  ;;  %v6843_v59 = vrot.slane %v6842_v38, 2  ;;  %v6776_v57 = vadd.f32 %v6775_v50, %v6774_v29 }
 0x5da   : > { %v6814_v9 = vadd.f32 %v6813_v19, %v6812_v17  ;;  %v6820_v27 = vadd.f32 %v6819_v5, %v6818_v53  ;;  %v6826_v23 = vadd.f32 %v6825_v22, %v6824_v39  ;;  %v6832_v33 = vadd.f32 %v6831_v28, %v6830_v20  ;;  %v12072_v28 = vld [vmem:[%s497_s12] sm:$0xff] }
 0x5db   : > { %v12056_v34 = vsub.f32 %v11991_v47, %v6790_v54  ;;  %v6838_v58 = vadd.f32 %v6837_v37, %v6836_v55  ;;  %v6844_v52 = vadd.f32 %v6843_v59, %v6842_v38  ;;  %v6791_v10 = vmul.f32 0.125, %v6776_v57  ;;  %v12077_v55 = vld [vmem:[%s506_s16] sm:$0xff] }
 0x5dc   : > { %v6815_v32 = vrot.slane %v6814_v9, 1  ;;  %v6821_v24 = vrot.slane %v6820_v27, 1  ;;  %v6827_v35 = vrot.slane %v6826_v23, 1  ;;  %v6833_v13 = vrot.slane %v6832_v33, 1 }
 0x5dd   : > { %v6808_v4 = vmul.f32 %v12056_v34, %v12056_v34  ;;  %v6839_v51 = vrot.slane %v6838_v58, 1  ;;  %v6845_v56 = vrot.slane %v6844_v52, 1  ;;  %v12060_v39 = vshrl.u32 %v6903_v36, 7 }
 0x5de   : > { %v6816_v63 = vadd.f32 %v6815_v32, %v6814_v9  ;;  %v6822_v42 = vadd.f32 %v6821_v24, %v6820_v27  ;;  %v6828_v43 = vadd.f32 %v6827_v35, %v6826_v23  ;;  %v6834_v26 = vadd.f32 %v6833_v13, %v6832_v33 }
 0x5df   : > { %v6847_v31 = vrot.slane %v6808_v4, 4  ;;  %v6840_v16 = vadd.f32 %v6839_v51, %v6838_v58  ;;  %v6846_v2 = vadd.f32 %v6845_v56, %v6844_v52  ;;  %v12063_v20 = vsub.f32 %v11993_v25, %v6791_v10 }
 0x5e0   : > { %v6865_v30 = vmul.f32 0.125, %v6816_v63  ;;  %v6866_v46 = vmul.f32 0.125, %v6822_v42  ;;  %v6867_v47 = vmul.f32 0.125, %v6828_v43  ;;  %v6868_v15 = vmul.f32 0.125, %v6834_v26 }
 0x5e1   : > { %v6848_v62 = vadd.f32 %v6847_v31, %v6808_v4  ;;  %v6869_v53 = vmul.f32 0.125, %v6840_v16  ;;  %v6870_v5 = vmul.f32 0.125, %v6846_v2  ;;  %v6777_v22 = vrot.slane %v11995_v8, 4 }
 0x5e2   : > { %v6874_v60 = vadd.f32 1e-05, %v6865_v30  ;;  %v6875_v61 = vadd.f32 1e-05, %v6866_v46  ;;  %v6876_v49 = vadd.f32 1e-05, %v6867_v47  ;;  %v6809_v6 = vmul.f32 %v12063_v20, %v12063_v20 }
 0x5e3   : > { %v6877_v1 = vadd.f32 1e-05, %v6868_v15  ;;  %v6849_v17 = vrot.slane %v6848_v62, 2  ;;  %v6878_v19 = vadd.f32 1e-05, %v6869_v53  ;;  %v6778_v3 = vadd.f32 %v6777_v22, %v11995_v8 }
 0x5e4   : > { %10302 = vrsqrt.f32 %v6874_v60  ;;  %v6879_v7 = vadd.f32 1e-05, %v6870_v5  ;;  %v6905_v9 = vsub.s32 0, %v12060_v39  ;;  %v6853_v27 = vrot.slane %v6809_v6, 4 }
 0x5e5   : > { %10304 = vrsqrt.f32 %v6875_v61  ;;  %v6850_v11 = vadd.f32 %v6849_v17, %v6848_v62  ;;  %v6909_v25 = vsub.s32 1, %v12060_v39  ;;  %v6779_v23 = vrot.slane %v6778_v3, 2 }
 0x5e6   : > { %10306 = vrsqrt.f32 %v6876_v49  ;;  %v6913_v21 = vsub.s32 2, %v12060_v39  ;;  %v6854_v18 = vadd.f32 %v6853_v27, %v6809_v6  ;;  %v6917_v32 = vsub.s32 3, %v12060_v39 }
 0x5e7   : > { %10308 = vrsqrt.f32 %v6877_v1  ;;  %v6851_v40 = vrot.slane %v6850_v11, 1  ;;  %v6780_v33 = vadd.f32 %v6779_v23, %v6778_v3  ;;  %v6906_v35 = vrot.slane %v12072_v28, %v6905_v9 }
 0x5e8   : > { %10310 = vrsqrt.f32 %v6878_v19  ;;  %v6921_v37 = vsub.s32 4, %v12060_v39  ;;  %v6855_v38 = vrot.slane %v6854_v18, 2  ;;  %v6962_v41 = vrot.slane %v12077_v55, %v6905_v9 }
 0x5e9   : > { %v6852_v36 = vadd.f32 %v6851_v40, %v6850_v11  ;;  %10312 = vrsqrt.f32 %v6879_v7  ;;  %v6910_v63 = vrot.slane %v12072_v28, %v6909_v25  ;;  %v6781_v42 = vrot.slane %v6780_v33, 1 }
 0x5ea   : > { %v6966_v4 = vrot.slane %v12077_v55, %v6909_v25  ;;  %v6914_v43 = vrot.slane %v12072_v28, %v6913_v21  ;;  %v6925_v58 = vsub.s32 5, %v12060_v39  ;;  %v6856_v59 = vadd.f32 %v6855_v38, %v6854_v18 }
 0x5eb   : > { %v6871_v54 = vmul.f32 0.125, %v6852_v36  ;;  %v6970_v46 = vrot.slane %v12077_v55, %v6913_v21  ;;  %v6918_v26 = vrot.slane %v12072_v28, %v6917_v32  ;;  %v6782_v31 = vadd.f32 %v6781_v42, %v6780_v33 }
 0x5ec   : > { %v6974_v52 = vrot.slane %v12077_v55, %v6917_v32  ;;  %v6922_v50 = vrot.slane %v12072_v28, %v6921_v37  ;;  %v6857_v60 = vrot.slane %v6856_v59, 1  ;;  %v6978_v49 = vrot.slane %v12077_v55, %v6921_v37 }
 0x5ed   : > { %v6880_v24 = vadd.f32 1e-05, %v6871_v54  ;;  %v6926_v57 = vrot.slane %v12072_v28, %v6925_v58  ;;  %v6982_v2 = vrot.slane %v12077_v55, %v6925_v58  ;;  %v6933_v58 = vsub.s32 7, %v12060_v39 }
 0x5ee   : > { %v6858_v1 = vadd.f32 %v6857_v60, %v6856_v59 }
 0x5ef   : > { %10314 = vrsqrt.f32 %v6880_v24 }
 0x5f0   : > { %v6872_v5 = vmul.f32 0.125, %v6858_v1 }
 0x5f1   : > { %v10303_v13 = vpop.eup %10302 }
 0x5f2   : > { %v10305_v29 = vpop.eup %10304  ;;  %v6892_v30 = vmul.f32 %v10303_v13, %v12024_v44  ;;  %v6792_v44 = vmul.f32 0.125, %v6782_v31  ;;  %v6881_v54 = vadd.f32 1e-05, %v6872_v5  ;;  %v6990_v31 = vrot.slane %v12077_v55, %v6933_v58 }
 0x5f3   : > { %v10307_v47 = vpop.eup %10306  ;;  %v6893_v51 = vmul.f32 %v10305_v29, %v12027_v45 }
 0x5f4   : > { %v10309_v61 = vpop.eup %10308  ;;  %v6948_v15 = vmul.f32 %v6906_v35, %v6892_v30  ;;  %v6894_v62 = vmul.f32 %v10307_v47, %v12030_v48  ;;  %v6801_v10 = vsub.f32 %v11995_v8, %v6792_v44  ;;  %10316 = vrsqrt.f32 %v6881_v54 }
 0x5f5   : > { %v6949_v16 = vmul.f32 %v6910_v63, %v6893_v51  ;;  %v6895_v56 = vmul.f32 %v10309_v61, %v12037_v14  ;;  %v10311_v17 = vpop.eup %10310  ;;  %v6929_v14 = vsub.s32 6, %v12060_v39  ;;  %v8754_v39 = vld [vmem:[%s497_s12 + $0x8] ss:$0 sm:$0xff]  ;;  %v8755_v61 = vld [vmem:[%s506_s16 + $0x8] ss:$0 sm:$0xff] }
 0x5f6   : > { %v7004_v45 = vadd.f32 %v6962_v41, %v6948_v15  ;;  %v6950_v53 = vmul.f32 %v6914_v43, %v6894_v62  ;;  %v6896_v48 = vmul.f32 %v10311_v17, %v12044_v0  ;;  %v10313_v40 = vpop.eup %10312  ;;  %v6810_v6 = vmul.f32 %v6801_v10, %v6801_v10 }
 0x5f7   : > { %v7005_v11 = vadd.f32 %v6966_v4, %v6949_v16  ;;  %v6951_v19 = vmul.f32 %v6918_v26, %v6895_v56  ;;  %v6897_v27 = vmul.f32 %v10313_v40, %v12049_v12  ;;  %v6930_v18 = vrot.slane %v12072_v28, %v6929_v14 }
 0x5f8   : > { %v7013_v22 = vmax.f32 %v7004_v45, 0.0  ;;  %v7006_v7 = vadd.f32 %v6970_v46, %v6950_v53  ;;  %v6952_v9 = vmul.f32 %v6922_v50, %v6896_v48  ;;  %v6859_v8 = vrot.slane %v6810_v6, 4 }
 0x5f9   : > { %v7014_v36 = vmax.f32 %v7005_v11, 0.0  ;;  %v7007_v3 = vadd.f32 %v6974_v52, %v6951_v19  ;;  %v6953_v0 = vmul.f32 %v6926_v57, %v6897_v27  ;;  %v6986_v12 = vrot.slane %v12077_v55, %v6929_v14 }
 0x5fa   : > { %7022 = vst [vmem:[#allocation2 + $0x30] sm:$0xff] %v7013_v22  ;;  %v7015_v25 = vmax.f32 %v7006_v7, 0.0  ;;  %v7008_v21 = vadd.f32 %v6978_v49, %v6952_v9  ;;  %v6860_v32 = vadd.f32 %v6859_v8, %v6810_v6 }
 0x5fb   : > { %7023 = vst [vmem:[#allocation2] sm:$0xff] %v7014_v36  ;;  %v7016_v23 = vmax.f32 %v7007_v3, 0.0  ;;  %v7009_v35 = vadd.f32 %v6982_v2, %v6953_v0 }
 0x5fc   : > { %7024 = vst [vmem:[#allocation2 + $0x18] sm:$0xff] %v7015_v25  ;;  %v10315_v24 = vpop.eup %10314  ;;  %v7017_v33 = vmax.f32 %v7008_v21, 0.0  ;;  %v6861_v38 = vrot.slane %v6860_v32, 2 }
 0x5fd   : > { %7025 = vst [vmem:[#allocation2 + $0x10] sm:$0xff] %v7016_v23  ;;  %v6898_v37 = vmul.f32 %v10315_v24, %v12056_v34  ;;  %v7018_v41 = vmax.f32 %v7009_v35, 0.0  ;;  %v6934_v34 = vrot.slane %v12072_v28, %v6933_v58 }
 0x5fe   : > { %7026 = vst [vmem:[#allocation2 + $0x20] sm:$0xff] %v7017_v33  ;;  %v6862_v42 = vadd.f32 %v6861_v38, %v6860_v32 }
 0x5ff   : > { %v6954_v63 = vmul.f32 %v6930_v18, %v6898_v37  ;;  %7027 = vst [vmem:[#allocation2 + $0x28] sm:$0xff] %v7018_v41 }
 0x600   : > { %v6863_v4 = vrot.slane %v6862_v42, 1 }
 0x601   : > { %v7010_v13 = vadd.f32 %v6986_v12, %v6954_v63  ;;  %v10317_v46 = vpop.eup %10316 }
 0x602   : > { %v6864_v59 = vadd.f32 %v6863_v4, %v6862_v42  ;;  %v6899_v26 = vmul.f32 %v10317_v46, %v12063_v20 }
 0x603   : > { %v7019_v43 = vmax.f32 %v7010_v13, 0.0 }
 0x604   : > { %v6873_v29 = vmul.f32 0.125, %v6864_v59  ;;  %v6955_v47 = vmul.f32 %v6934_v34, %v6899_v26 }
 0x605   : > { %7028 = vst [vmem:[#allocation2 + $0x40] sm:$0xff] %v7019_v43 }
 0x606   : > { %v6882_v30 = vadd.f32 1e-05, %v6873_v29  ;;  %v7011_v51 = vadd.f32 %v6990_v31, %v6955_v47 }
 0x608   : > { %10318 = vrsqrt.f32 %v6882_v30  ;;  %v7020_v52 = vmax.f32 %v7011_v51, 0.0 }
 0x60a   : > { %7029 = vst [vmem:[#allocation2 + $0x38] sm:$0xff] %v7020_v52 }
 0x615   : > { %v10319_v50 = vpop.eup %10318 }
 0x616   : > { %v6900_v60 = vmul.f32 %v10319_v50, %v6801_v10 }
 0x618   : > { %v6956_v15 = vmul.f32 %v8754_v39, %v6900_v60 }
 0x61a   : > { %v7012_v62 = vadd.f32 %v8755_v61, %v6956_v15 }
 0x61c   : > { %v7021_v28 = vmax.f32 %v7012_v62, 0.0 }
 0x61e   : > { %7030 = vst [vmem:[#allocation2 + $0x8] sm:$0xff] %v7021_v28 }
 0x61f PF: > { %p8756_p4 = scmp.ne.s32.totalorder %s10850_s23, 4 }
 0x621   : > { %7034 = sbr.rel (%p8756_p4) target bundleno = 1870 (0x74e), region = 120 }
 0x626   : > { %v10320_v20 = vld [vmem:[#allocation17 + $0x78] sm:$0xff]   ;;  %v10324_v16 = vld [vmem:[#allocation17 + $0x70] sm:$0xff]   ;;  %v10328_v17 = vld [vmem:[#allocation17 + $0x68] sm:$0xff]   ;;  %vm10767_vm2 = vmmov 0  }
 0x627   : > { %v10321_v55 = vld [vmem:[#allocation17 + $0x38] sm:$0xff]   ;;  %8940 = vmatprep.subr.bf16.mxu0 %v10320_v20  ;;  %v10325_v56 = vld [vmem:[#allocation17 + $0x30] sm:$0xff]   ;;  %v10329_v45 = vld [vmem:[#allocation17 + $0x28] sm:$0xff]  }
 0x628   : > { %v10322_v49 = vld [vmem:[#allocation17 + $0xf8] sm:$0xff]   ;;  %8941 = vmatpush3.bf16.msra.mxu0 %v10321_v55  ;;  %v10326_v57 = vld [vmem:[#allocation17 + $0xf0] sm:$0xff]   ;;  %v10330_v53 = vld [vmem:[#allocation17 + $0xe8] sm:$0xff]  }
 0x629   : > { %v10323_v44 = vld [vmem:[#allocation17 + $0xb8] sm:$0xff]   ;;  %8962 = vmatprep.subr.bf16.mxu1 %v10322_v49  ;;  %8942 = vmatprep.subr.bf16.mxu0 %v10324_v16  ;;  %v10327_v1 = vld [vmem:[#allocation17 + $0xb0] sm:$0xff]   ;;  %v10331_v2 = vld [vmem:[#allocation17 + $0xa8] sm:$0xff]  }
 0x62a   : > { %8963 = vmatpush3.bf16.msra.mxu1 %v10323_v44  ;;  %v10332_v10 = vld [vmem:[#allocation17 + $0x60] sm:$0xff]   ;;  %v10336_v5 = vld [vmem:[#allocation17 + $0x58] sm:$0xff]   ;;  %v10340_v14 = vld [vmem:[#allocation17 + $0x50] sm:$0xff]  }
 0x62b   : > { %8964 = vmatprep.subr.bf16.mxu1 %v10326_v57  ;;  %v10333_v11 = vld [vmem:[#allocation17 + $0x20] sm:$0xff]   ;;  %v10337_v40 = vld [vmem:[#allocation17 + $0x18] sm:$0xff]   ;;  %v10341_v6 = vld [vmem:[#allocation17 + $0x10] sm:$0xff]  }
 0x62c   : > { %8943 = vmatpush3.bf16.msra.mxu0 %v10325_v56  ;;  %v10334_v19 = vld [vmem:[#allocation17 + $0xe0] sm:$0xff]   ;;  %v10338_v22 = vld [vmem:[#allocation17 + $0xd8] sm:$0xff]   ;;  %v10342_v36 = vld [vmem:[#allocation17 + $0xd0] sm:$0xff]  }
 0x62d   : > { %8944 = vmatprep.subr.bf16.mxu0 %v10328_v17  ;;  %v10335_v48 = vld [vmem:[#allocation17 + $0xa0] sm:$0xff]   ;;  %v10339_v7 = vld [vmem:[#allocation17 + $0x98] sm:$0xff]   ;;  %v10343_v3 = vld [vmem:[#allocation17 + $0x90] sm:$0xff]  }
 0x62e   : > { %8965 = vmatpush3.bf16.msra.mxu1 %v10327_v1  ;;  %v10344_v9 = vld [vmem:[#allocation17 + $0x48] sm:$0xff]   ;;  %v10348_v8 = vld [vmem:[#allocation17 + $0x40] sm:$0xff]   ;;  %v10352_v35 = vld [vmem:[#allocation17 + $0x178] sm:$0xff]  }
 0x62f   : > { %8966 = vmatprep.subr.bf16.mxu1 %v10330_v53  ;;  %v10345_v27 = vld [vmem:[#allocation17 + $0x8] sm:$0xff]   ;;  %v10349_v23 = vld [vmem:[#allocation17] sm:$0xff]   ;;  %v10353_v38 = vld [vmem:[#allocation17 + $0x138] sm:$0xff]  }
 0x630   : > { %8945 = vmatpush3.bf16.msra.mxu0 %v10329_v45  ;;  %v10346_v25 = vld [vmem:[#allocation17 + $0xc8] sm:$0xff]   ;;  %v10350_v21 = vld [vmem:[#allocation17 + $0xc0] sm:$0xff]   ;;  %v10354_v42 = vld [vmem:[#allocation17 + $0x1f8] sm:$0xff]  }
 0x631   : > { %8946 = vmatprep.subr.bf16.mxu0 %v10332_v10  ;;  %v10347_v54 = vld [vmem:[#allocation17 + $0x88] sm:$0xff]   ;;  %v10351_v32 = vld [vmem:[#allocation17 + $0x80] sm:$0xff]   ;;  %v10355_v13 = vld [vmem:[#allocation17 + $0x1b8] sm:$0xff]   ;;  %v10766_v10 = vmov 0.0  }
 0x632   : > { %8967 = vmatpush3.bf16.msra.mxu1 %v10331_v2  ;;  %v7036_v0 = vld [vmem:[#allocation2] sm:$0xff]  ;;  %v7035_v24 = vld [vmem:[#allocation2 + $0x30] sm:$0xff]  ;;  %v7037_v41 = vld [vmem:[#allocation2 + $0x18] sm:$0xff] }
 0x633   : > { %8968 = vmatprep.subr.bf16.mxu1 %v10334_v19  ;;  %v7045_v18 = vpack.c.bf16 %v7036_v0, %v7036_v0  ;;  %v7044_v33 = vpack.c.bf16 %v7035_v24, %v7035_v24  ;;  %v7038_v37 = vld [vmem:[#allocation2 + $0x10] sm:$0xff]  ;;  %v7046_v63 = vpack.c.bf16 %v7037_v41, %v7037_v41  ;;  %v10356_v4 = vld [vmem:[#allocation17 + $0x170] sm:$0xff]   ;;  %v10360_v29 = vld [vmem:[#allocation17 + $0x168] sm:$0xff]  }
 0x634   : > { %8947 = vmatpush3.bf16.msra.mxu0 %v10333_v11  ;;  %v7047_v12 = vpack.c.bf16 %v7038_v37, %v7038_v37  ;;  %v10357_v43 = vld [vmem:[#allocation17 + $0x130] sm:$0xff]   ;;  %v10361_v34 = vld [vmem:[#allocation17 + $0x128] sm:$0xff]   ;;  %v10364_v26 = vld [vmem:[#allocation17 + $0x160] sm:$0xff]  }
 0x635   : > { %8948 = vmatprep.subr.bf16.mxu0 %v10336_v5  ;;  %7668 = vmatprep.mubr.bf16.mxu0 %v7045_v18  ;;  %v10358_v58 = vld [vmem:[#allocation17 + $0x1f0] sm:$0xff]   ;;  %v10362_v30 = vld [vmem:[#allocation17 + $0x1e8] sm:$0xff]   ;;  %v10365_v31 = vld [vmem:[#allocation17 + $0x120] sm:$0xff]  }
 0x636   : > { %8969 = vmatpush3.bf16.msra.mxu1 %v10335_v48  ;;  %7708 = vmatprep.mubr.bf16.mxu1 %v7047_v12  ;;  %v10359_v59 = vld [vmem:[#allocation17 + $0x1b0] sm:$0xff]   ;;  %v10363_v46 = vld [vmem:[#allocation17 + $0x1a8] sm:$0xff]   ;;  %v10366_v47 = vld [vmem:[#allocation17 + $0x1e0] sm:$0xff]  }
 0x637   : > { %8970 = vmatprep.subr.bf16.mxu1 %v10338_v22  ;;  %v10367_v51 = vld [vmem:[#allocation17 + $0x1a0] sm:$0xff]   ;;  %v10368_v52 = vld [vmem:[#allocation17 + $0x158] sm:$0xff]   ;;  %v10372_v61 = vld [vmem:[#allocation17 + $0x150] sm:$0xff]  }
 0x638   : > { %8949 = vmatpush3.bf16.msra.mxu0 %v10337_v40  ;;  %v10369_v50 = vld [vmem:[#allocation17 + $0x118] sm:$0xff]   ;;  %v10373_v15 = vld [vmem:[#allocation17 + $0x110] sm:$0xff]   ;;  %v10376_v20 = vld [vmem:[#allocation17 + $0x148] sm:$0xff]  }
 0x639   : > { %8950 = vmatprep.subr.bf16.mxu0 %v10340_v14  ;;  %v10370_v39 = vld [vmem:[#allocation17 + $0x1d8] sm:$0xff]   ;;  %v10374_v62 = vld [vmem:[#allocation17 + $0x1d0] sm:$0xff]   ;;  %v10377_v55 = vld [vmem:[#allocation17 + $0x108] sm:$0xff]  }
 0x63a   : > { %8971 = vmatpush3.bf16.msra.mxu1 %v10339_v7  ;;  %v10371_v60 = vld [vmem:[#allocation17 + $0x198] sm:$0xff]   ;;  %v10375_v28 = vld [vmem:[#allocation17 + $0x190] sm:$0xff]   ;;  %v10378_v49 = vld [vmem:[#allocation17 + $0x1c8] sm:$0xff]  }
 0x63b   : > { %8972 = vmatprep.subr.bf16.mxu1 %v10342_v36  ;;  %v10379_v44 = vld [vmem:[#allocation17 + $0x188] sm:$0xff]   ;;  %v10380_v16 = vld [vmem:[#allocation17 + $0x140] sm:$0xff]   ;;  %v7040_v1 = vld [vmem:[#allocation2 + $0x28] sm:$0xff] }
 0x63c   : > { %8951 = vmatpush3.bf16.msra.mxu0 %v10341_v6  ;;  %v10381_v56 = vld [vmem:[#allocation17 + $0x100] sm:$0xff]   ;;  %v7049_v17 = vpack.c.bf16 %v7040_v1, %v7040_v1  ;;  %v7039_v53 = vld [vmem:[#allocation2 + $0x20] sm:$0xff]  ;;  %v10384_v48 = vld [vmem:[#allocation17 + $0x238] sm:$0xff]  }
 0x63d   : > { %8952 = vmatprep.subr.bf16.mxu0 %v10344_v9  ;;  %v10382_v57 = vld [vmem:[#allocation17 + $0x1c0] sm:$0xff]   ;;  %v7048_v2 = vpack.c.bf16 %v7039_v53, %v7039_v53  ;;  %v7041_v5 = vld [vmem:[#allocation2 + $0x40] sm:$0xff]  ;;  %v10388_v6 = vld [vmem:[#allocation17 + $0x218] sm:$0xff]  }
 0x63e   : > { %8973 = vmatpush3.bf16.msra.mxu1 %v10343_v3  ;;  %v10383_v45 = vld [vmem:[#allocation17 + $0x180] sm:$0xff]   ;;  %v7050_v40 = vpack.c.bf16 %v7041_v5, %v7041_v5  ;;  %v10385_v22 = vld [vmem:[#allocation17 + $0x230] sm:$0xff]   ;;  %v10386_v7 = vld [vmem:[#allocation17 + $0x228] sm:$0xff]  }
 0x63f   : > { %8974 = vmatprep.subr.bf16.mxu1 %v10346_v25  ;;  %v7042_v11 = vld [vmem:[#allocation2 + $0x38] sm:$0xff]  ;;  %v10389_v36 = vld [vmem:[#allocation17 + $0x210] sm:$0xff]  }
 0x640   : > { %8953 = vmatpush3.bf16.msra.mxu0 %v10345_v27  ;;  %v7051_v19 = vpack.c.bf16 %v7042_v11, %v7042_v11  ;;  %v10387_v14 = vld [vmem:[#allocation17 + $0x220] sm:$0xff]   ;;  %v10390_v3 = vld [vmem:[#allocation17 + $0x208] sm:$0xff]   ;;  %v7043_v27 = vld [vmem:[#allocation2 + $0x8] sm:$0xff] }
 0x641   : > { %8954 = vmatprep.subr.bf16.mxu0 %v10348_v8  ;;  %v10391_v9 = vld [vmem:[#allocation17 + $0x200] sm:$0xff]   ;;  %v7052_v25 = vpack.c.bf16 %v7043_v27, %v7043_v27 }
 0x642   : > { %8975 = vmatpush3.bf16.msra.mxu1 %v10347_v54 }
 0x643   : > { %8976 = vmatprep.subr.bf16.mxu1 %v10350_v21 }
 0x644   : > { %8955 = vmatpush3.bf16.msra.mxu0 %v10349_v23 }
 0x645   : > { %8984 = vmatprep.subr.bf16.mxu0 %v10352_v35 }
 0x646   : > { %8977 = vmatpush3.bf16.msra.mxu1 %v10351_v32 }
 0x647   : > { %7669 = vmatmul.mubr.bf16.vlgmr.msra.gmra.mxu0 %v7044_v33  ;;  %9006 = vmatprep.subr.bf16.mxu1 %v10354_v42 }
 0x648   : > { %8985 = vmatpush3.bf16.msra.mxu0 %v10353_v38  ;;  %7748 = vmatprep.mubr.bf16.mxu0 %v7049_v17 }
 0x649   : > { %7709 = vmatmul.mubr.bf16.vlgmr.msra.gmra.mxu1 %v7046_v63  ;;  %8986 = vmatprep.subr.bf16.mxu0 %v10356_v4  ;;  %v8757_v4 = vld [vmem:[#allocation18] ss:$0 sm:$0xff] }
 0x64a   : > { %9007 = vmatpush3.bf16.msra.mxu1 %v10355_v13  ;;  %7788 = vmatprep.mubr.bf16.mxu1 %v7051_v19 }
 0x64b   : > { %9008 = vmatprep.subr.bf16.mxu1 %v10358_v58 }
 0x64c   : > { %8987 = vmatpush3.bf16.msra.mxu0 %v10357_v43 }
 0x64d   : > { %8988 = vmatprep.subr.bf16.mxu0 %v10360_v29 }
 0x64e   : > { %9009 = vmatpush3.bf16.msra.mxu1 %v10359_v59 }
 0x64f   : > { %9010 = vmatprep.subr.bf16.mxu1 %v10362_v30 }
 0x650   : > { %8989 = vmatpush3.bf16.msra.mxu0 %v10361_v34 }
 0x651   : > { %8990 = vmatprep.subr.bf16.mxu0 %v10364_v26 }
 0x652   : > { %9011 = vmatpush3.bf16.msra.mxu1 %v10363_v46 }
 0x653   : > { %9012 = vmatprep.subr.bf16.mxu1 %v10366_v47 }
 0x654   : > { %8991 = vmatpush3.bf16.msra.mxu0 %v10365_v31 }
 0x655   : > { %8992 = vmatprep.subr.bf16.mxu0 %v10368_v52 }
 0x656   : > { %9013 = vmatpush3.bf16.msra.mxu1 %v10367_v51 }
 0x657   : > { %9014 = vmatprep.subr.bf16.mxu1 %v10370_v39 }
 0x658   : > { %8993 = vmatpush3.bf16.msra.mxu0 %v10369_v50 }
 0x659   : > { %8994 = vmatprep.subr.bf16.mxu0 %v10372_v61 }
 0x65a   : > { %9015 = vmatpush3.bf16.msra.mxu1 %v10371_v60 }
 0x65b   : > { %9016 = vmatprep.subr.bf16.mxu1 %v10374_v62 }
 0x65c   : > { %8995 = vmatpush3.bf16.msra.mxu0 %v10373_v15 }
 0x65d   : > { %8996 = vmatprep.subr.bf16.mxu0 %v10376_v20 }
 0x65e   : > { %9017 = vmatpush3.bf16.msra.mxu1 %v10375_v28 }
 0x65f   : > { %9018 = vmatprep.subr.bf16.mxu1 %v10378_v49 }
 0x660   : > { %8997 = vmatpush3.bf16.msra.mxu0 %v10377_v55 }
 0x661   : > { %8998 = vmatprep.subr.bf16.mxu0 %v10380_v16 }
 0x662   : > { %9019 = vmatpush3.bf16.msra.mxu1 %v10379_v44 }
 0x663   : > { %9020 = vmatprep.subr.bf16.mxu1 %v10382_v57 }
 0x664   : > { %8999 = vmatpush3.bf16.msra.mxu0 %v10381_v56 }
 0x665   : > { %9077 = vmatprep.subr.bf16.mxu0 %v10766_v10 }
 0x666   : > { %9021 = vmatpush3.bf16.msra.mxu1 %v10383_v45 }
 0x667   : > { %7749 = vmatmul.mubr.bf16.vlgmr.msra.gmra.mxu0 %v7048_v2 }
 0x668   : > { %9078 = vmatpush3.bf16.msra.mxu0 %v10384_v48  ;;  %9093 = vmatprep.mubr.msk.bf16.mxu0 %vm10767_vm2, %v10766_v10 }
 0x669   : > { %7789 = vmatmul.mubr.bf16.vlgmr.msra.gmra.mxu1 %v7050_v40  ;;  %9079 = vmatprep.subr.bf16.mxu0 %v10766_v10 }
 0x66c   : > { %9080 = vmatpush3.bf16.msra.mxu0 %v10385_v22 }
 0x66d   : > { %9081 = vmatprep.subr.bf16.mxu0 %v10766_v10 }
 0x670   : > { %9082 = vmatpush3.bf16.msra.mxu0 %v10386_v7 }
 0x671   : > { %9083 = vmatprep.subr.bf16.mxu0 %v10766_v10 }
 0x674   : > { %9084 = vmatpush3.bf16.msra.mxu0 %v10387_v14 }
 0x675   : > { %9085 = vmatprep.subr.bf16.mxu0 %v10766_v10 }
 0x678   : > { %9086 = vmatpush3.bf16.msra.mxu0 %v10388_v6 }
 0x679   : > { %9087 = vmatprep.subr.bf16.mxu0 %v10766_v10 }
 0x67c   : > { %9088 = vmatpush3.bf16.msra.mxu0 %v10389_v36 }
 0x67d   : > { %9089 = vmatprep.subr.bf16.mxu0 %v10766_v10 }
 0x680   : > { %9090 = vmatpush3.bf16.msra.mxu0 %v10390_v3 }
 0x681   : > { %9091 = vmatprep.subr.bf16.mxu0 %v10766_v10 }
 0x684   : > { %9092 = vmatpush3.bf16.msra.mxu0 %v10391_v9 }
 0x687   : > { %9094 = vmatmul.mubr.bf16.vlgmr.msra.gmra.mxu0 %v7052_v25 }
 0x707   : > { %v8956_v54 = vpop.f32.mrf.mxu0 }
 0x709   : > { %v8957_v8 = vpop.f32.mrf.mxu0  ;;  %v8978_v23 = vpop.f32.mrf.mxu1 }
 0x70a   : > { %v8958_v13 = vadd.f32 %v8957_v8, %v8956_v54 }
 0x70b   : > { %v8959_v21 = vpop.f32.mrf.mxu0  ;;  %v8979_v0 = vpop.f32.mrf.mxu1 }
 0x70c   : > { %v7671_v43 = vadd.f32 %v8958_v13, %v8757_v4  ;;  %v8980_v58 = vadd.f32 %v8979_v0, %v8978_v23 }
 0x70d   : > { %v8960_v18 = vpop.f32.mrf.mxu0  ;;  %v8981_v32 = vpop.f32.mrf.mxu1 }
 0x70e   : > { %v7711_v29 = vadd.f32 %v8980_v58, %v7671_v43 }
 0x70f   : > { %v8982_v24 = vpop.f32.mrf.mxu1 }
 0x727   : > { %v9000_v33 = vpop.f32.mrf.mxu0 }
 0x729   : > { %v9001_v35 = vpop.f32.mrf.mxu0  ;;  %v9022_v37 = vpop.f32.mrf.mxu1 }
 0x72a   : > { %v9002_v59 = vadd.f32 %v9001_v35, %v9000_v33 }
 0x72b   : > { %v9003_v12 = vpop.f32.mrf.mxu0  ;;  %v9023_v38 = vpop.f32.mrf.mxu1 }
 0x72c   : > { %v7751_v34 = vadd.f32 %v9002_v59, %v7711_v29  ;;  %v9024_v30 = vadd.f32 %v9023_v38, %v9022_v37 }
 0x72d   : > { %v9004_v41 = vpop.f32.mrf.mxu0  ;;  %v9025_v63 = vpop.f32.mrf.mxu1 }
 0x72e   : > { %v7791_v46 = vadd.f32 %v9024_v30, %v7751_v34 }
 0x72f   : > { %v9026_v42 = vpop.f32.mrf.mxu1 }
 0x747   : > { %v7830_v26 = vpop.f32.mrf.mxu0 }
 0x748   : > { %v7831_v31 = vadd.f32 %v7830_v26, %v7791_v46 }
 0x749   : > { %v9095_v47 = vpop.f32.mrf.mxu0 }
 0x74a   : > { %7836 = vst [vmem:[#allocation20] sm:$0xff] %v7831_v31 }
 0x74b   : > { %v7833_v51 = vpop.f32.mrf.mxu0 }
 0x74d   : > { %v9096_v52 = vpop.f32.mrf.mxu0 }
 0x74e PF: > { %p9190_p1 = scmp.eq.s32.totalorder %s10850_s23, 4  ;;  %s10768_s9 = smov [#allocation20]  }
 0x74f   : > { %s7844_s4 = sshll.u32 %s10768_s9, 4  ;;  %s7845_s4 = int_to_ptr.vmem [resolvable:$true] %s7844_s4 }
 0x750   : > { %s10658_s17 = scalar_lea.vmem %s7845_s4, 128  ;;  %p10665_p7 = scmp.lt.s32.totalorder %s7845_s4, %s7845_s4 }
 0x751   : > { %p10659_p3 = scmp.ne.s32.totalorder %s7845_s4, %s10658_s17  ;;  %p10666_p8 = scmp.lt.s32.totalorder %s10658_s17, %s10658_s17 }
 0x753   : > { %p10660_p13 = pnand %p10659_p3, %p9190_p1  ;;  %p10667_p9 = por %p10666_p8, %p10665_p7 }
 0x755   : > { %p10661_p5 = pneg %p10660_p13 }
 0x757   : > { %p10668_p11 = pnand %p10667_p9, %p10661_p5 }
 0x759   : > { %10671 = shalt.err (!%p10668_p11)
}
 0x75a   : > { %9140 = dma.vmem_to_hbm [thread:$0]  (%p9190_p1), %s7845_s4, 128, %s12151_s11, [#allocation5]  }
 0x75b   : > { %10727 = dma.done.wait (%p9190_p1), [#allocation5], 128  }
 0x75c   : > { %10729 = vsyncadd (%p9190_p1), [#allocation5], 4294967168 }
 0x75d PF: > { %s12201_s20 = sld [smem:[#allocation29_spill]]  ;;  %s12203_s17 = smov %s10736_s18 }
 0x75e   : > { %s12202_s28 = sld [smem:[#allocation30_spill]]  ;;  %s12204_s18 = smov %s10740_s19 }
 0x763   : > { %p29_p6 = scmp.ge.s32.totalorder %s12201_s20, 7  }
 0x764   : > { %s12205_s19 = smov %s12202_s28 }
 0x765   :  { %31 = sbr.rel (!%p29_p6) target bundleno = 15 (0xf), region = 170 }
 0x76a   :  { %7857 = vsyncpa [#allocation4], 1 }
 0x76b   :  { %7859 = vsyncpa [#allocation4 + $0x1], 1 }
 0x76c   :  { %7860 = vsyncpa [#allocation7], 1 }
 0x76d   :  { %7861 = vsyncpa [#allocation10], 1 }
 0x76e   :  { %7862 = vsyncpa [#allocation13], 1 }
 0x76f   :  { %7864 = vsyncpa [#allocation13 + $0x1], 1 }
 0x770   :  { %7865 = vsyncpa [#allocation16], 1 }
 0x771   :  { %7867 = vsyncpa [#allocation16 + $0x1], 1 }
 0x772   :  { %7868 = vsyncpa [#allocation19], 1 }
 0x773   :  { %7869 = vsyncpa [#allocation5], 1 }
 0x774   :  { %7871 = vsyncpa [#allocation5 + $0x1], 1 }

</bundles_post_ra>
